<compile_context>
chip_gen: v5e
topology: v5e:2x2
jax: 0.10.0
libtpu: 0.0.40
codegen_flags: <defaults>
</compile_context>

<pallas_src>
import functools

import jax
import jax.numpy as jnp
from jax import lax
from jax.experimental import pallas as pl
from jax.experimental.pallas import tpu as pltpu

CONV_CH = 8        # CNN output channels
CA_HIDDEN = 4      # channel-attention MLP hidden (reduction ratio 2)
LSTM_HIDDEN = 32   # LSTM hidden size
HEAD_DIM = 4 + 19 + 13 + 7 + 6  # keys, mouse_x, mouse_y, weapon, 6 probs = 49
SA_K = 7           # CBAM spatial-attention kernel size
SA_R = SA_K // 2

# Weight-slab row offsets (all multiples of 8 so ref slices stay sublane
# aligned).  Columns: 4*LSTM_HIDDEN = 128 lanes.
_SLAB_LSTM_WX = 0     # rows  0:8   cols 0:128  -> lstm_wx (C, 4H)
_SLAB_LSTM_B = 8      # row   8     cols 0:128  -> lstm_b
_SLAB_HEAD_W = 16     # rows 16:48  cols 0:49   -> head_w (H, HEAD_DIM)
_SLAB_HEAD_B = 48     # row  48     cols 0:49   -> head_b
_SLAB_SMALL = 56      # rows 56:56+B*C col 0    -> conv bias (per b,c)
                      # rows 56:64  cols 1:5    -> ca_w1 (C, CA)
                      # rows 56:64  cols 5:9    -> ca_w2.T (C, CA)
_SLAB_COLS = 4 * LSTM_HIDDEN


# ---------------------------------------------------------------------------
# The fused kernel: whole batch in one invocation, feat carried as (B*C, HW).
# ---------------------------------------------------------------------------
def _fused_agent_kernel(x_ref, convw_ref, slab_ref, sa_ref, out_ref, *,
                        batch, H, W, cin, cout, ca_hidden, hidden, head_dim):
    HW = H * W

    # ---- pixel row/col indices from an in-kernel iota (no mask DMA) -------
    pix = lax.broadcasted_iota(jnp.int32, (1, HW), 1).astype(jnp.float32)
    rows = jnp.floor((pix + 0.5) * (1.0 / W))            # pixel y, (1, HW)
    cols = pix - rows * W                                # pixel x, (1, HW)

    def _valid(idx, delta, limit):                       # 1.0 where in-image
        ok = (idx + delta >= 0.0) & (idx + delta <= limit - 1.0)
        return jnp.where(ok, 1.0, 0.0)

    rmask = [_valid(rows, dy, H) for dy in range(-SA_R, SA_R + 1)]  # 7x(1,HW)
    cmask = [_valid(cols, dx, W) for dx in range(-SA_R, SA_R + 1)]  # 7x(1,HW)

    def shift(v, off):
        # value at pixel p becomes v[(p + off) mod HW]; wrap-around reads are
        # killed by the row/col masks.
        return pltpu.roll(v, shift=(-off) % HW, axis=1)

    # ---- 3x3 conv: 9 lane-rolled windows + block-diag MXU matmuls ---------
    x = x_ref[...]                                       # (B*cin, HW)
    feat = jnp.zeros((batch * cout, HW), jnp.float32)
    for i in range(3):
        for j in range(3):
            dy, dx = i - 1, j - 1
            m = rmask[SA_R + dy] * cmask[SA_R + dx]      # (1, HW)
            win = shift(x, dy * W + dx) * m              # (B*cin, HW)
            feat = feat + jnp.dot(convw_ref[i * 3 + j], win,
                                  preferred_element_type=jnp.float32)
    conv_b = slab_ref[_SLAB_SMALL:_SLAB_SMALL + batch * cout, 0:1]
    feat = jnp.maximum(feat + conv_b, 0.0)               # (B*C, HW)

    # ---- CBAM channel attention (spatial avg/max = lane reductions) -------
    ca_w1 = slab_ref[_SLAB_SMALL:_SLAB_SMALL + cout, 1:1 + ca_hidden]
    ca_w2t = slab_ref[_SLAB_SMALL:_SLAB_SMALL + cout,
                      1 + ca_hidden:1 + 2 * ca_hidden]

    def ca_mlp(v):   # (C, 1) -> (C, 1); == relu(v.T @ W1) @ W2
        h = jnp.maximum(jnp.sum(v * ca_w1, axis=0, keepdims=True), 0.0)
        return jnp.sum(ca_w2t * h, axis=1, keepdims=True)

    per_b = []
    for b in range(batch):
        fb = feat[b * cout:(b + 1) * cout, :]            # (C, HW)
        att = jax.nn.sigmoid(
            ca_mlp(jnp.mean(fb, axis=1, keepdims=True))
            + ca_mlp(jnp.max(fb, axis=1, keepdims=True)))
        per_b.append(fb * att)
    feat = jnp.concatenate(per_b, axis=0)                # (B*C, HW)

    # ---- CBAM spatial attention: channel mean/max + 7x7 "same" conv -------
    avg_map = jnp.concatenate(
        [jnp.mean(feat[b * cout:(b + 1) * cout, :], axis=0, keepdims=True)
         for b in range(batch)], axis=0)                 # (B, HW)
    max_map = jnp.concatenate(
        [jnp.max(feat[b * cout:(b + 1) * cout, :], axis=0, keepdims=True)
         for b in range(batch)], axis=0)                 # (B, HW)

    # Vertical pre-shift with the row mask folded in (7 per map, XLU rolls).
    v_avg = [rmask[SA_R + dy] * shift(avg_map, dy * W)
             for dy in range(-SA_R, SA_R + 1)]
    v_max = [rmask[SA_R + dy] * shift(max_map, dy * W)
             for dy in range(-SA_R, SA_R + 1)]

    acc = jnp.zeros((batch, HW), jnp.float32)
    for j in range(SA_K):            # dx outer -> one column-mask mul per j
        dx = j - SA_R
        inner = jnp.zeros((batch, HW), jnp.float32)
        for i in range(SA_K):        # dy inner, scalar tap weights from SMEM
            inner = (inner
                     + sa_ref[0, i * SA_K + j] * shift(v_avg[i], dx)
                     + sa_ref[1, i * SA_K + j] * shift(v_max[i], dx))
        acc = acc + cmask[j] * inner
    sp_att = jax.nn.sigmoid(acc + sa_ref[0, SA_K * SA_K])    # (B, HW)

    # ---- global average pool -> LSTM cell (h0=c0=0) -> output heads -------
    lstm_wx = slab_ref[_SLAB_LSTM_WX:_SLAB_LSTM_WX + cout, :]        # (C, 4H)
    lstm_b = slab_ref[_SLAB_LSTM_B:_SLAB_LSTM_B + 1, :]              # (1, 4H)
    head_w = slab_ref[_SLAB_HEAD_W:_SLAB_HEAD_W + hidden, 0:head_dim]
    head_b = slab_ref[_SLAB_HEAD_B:_SLAB_HEAD_B + 1, 0:head_dim]

    outs = []
    for b in range(batch):
        fb = feat[b * cout:(b + 1) * cout, :] * sp_att[b:b + 1, :]
        xin = jnp.mean(fb, axis=1, keepdims=True)                    # (C, 1)
        gates = jnp.sum(xin * lstm_wx, axis=0, keepdims=True) + lstm_b
        i_g = jax.nn.sigmoid(gates[:, 0 * hidden:1 * hidden])
        # forget gate contributes f * c0 == 0 with zero initial state.
        g_g = jnp.tanh(gates[:, 2 * hidden:3 * hidden])
        o_g = jax.nn.sigmoid(gates[:, 3 * hidden:4 * hidden])
        h_new = o_g * jnp.tanh(i_g * g_g)                            # (1, H)
        outs.append(jnp.dot(h_new, head_w,
                            preferred_element_type=jnp.float32) + head_b)
    out_ref[...] = jnp.concatenate(outs, axis=0).astype(out_ref.dtype)


# ---------------------------------------------------------------------------
# JAX glue.
# ---------------------------------------------------------------------------
def init_params(key, in_ch=3):
    ks = jax.random.split(key, 10)

    def rnd(k, shape, scale=0.1):
        return jax.random.normal(k, shape, jnp.float32) * scale

    return {
        "conv1_w": rnd(ks[0], (3 * 3 * in_ch, CONV_CH)),
        "conv1_b": rnd(ks[1], (1, CONV_CH)),
        "ca_w1": rnd(ks[2], (CONV_CH, CA_HIDDEN)),
        "ca_w2": rnd(ks[3], (CA_HIDDEN, CONV_CH)),
        "sa_w": rnd(ks[4], (SA_K * SA_K * 2, 1)),
        "sa_b": rnd(ks[5], (1, 1)),
        "lstm_wx": rnd(ks[6], (CONV_CH, 4 * LSTM_HIDDEN)),
        "lstm_b": rnd(ks[7], (1, 4 * LSTM_HIDDEN)),
        "head_w": rnd(ks[8], (LSTM_HIDDEN, HEAD_DIM)),
        "head_b": rnd(ks[9], (1, HEAD_DIM)),
    }


def _pack_params(params, batch, cin):
    """Pack the tiny weights into: per-tap block-diag conv mats, one VMEM
    weight slab and one SMEM scalar table (few DMA descriptors)."""
    eye_b = jnp.eye(batch, dtype=jnp.float32)
    w = params["conv1_w"]                                    # (9*cin, C)
    conv_bd = jnp.stack(
        [jnp.kron(eye_b, w[k * cin:(k + 1) * cin, :].T) for k in range(9)],
        axis=0)                                              # (9, B*C, B*cin)

    rows = _SLAB_SMALL + batch * CONV_CH                     # 72 for B=2
    slab = jnp.zeros((rows, _SLAB_COLS), jnp.float32)
    slab = slab.at[_SLAB_LSTM_WX:_SLAB_LSTM_WX + CONV_CH, :].set(
        params["lstm_wx"])
    slab = slab.at[_SLAB_LSTM_B, :].set(params["lstm_b"].reshape(-1))
    slab = slab.at[_SLAB_HEAD_W:_SLAB_HEAD_W + LSTM_HIDDEN, 0:HEAD_DIM].set(
        params["head_w"])
    slab = slab.at[_SLAB_HEAD_B, 0:HEAD_DIM].set(params["head_b"].reshape(-1))
    slab = slab.at[_SLAB_SMALL:_SLAB_SMALL + batch * CONV_CH, 0].set(
        jnp.tile(params["conv1_b"].reshape(-1), batch))
    slab = slab.at[_SLAB_SMALL:_SLAB_SMALL + CONV_CH,
                   1:1 + CA_HIDDEN].set(params["ca_w1"])
    slab = slab.at[_SLAB_SMALL:_SLAB_SMALL + CONV_CH,
                   1 + CA_HIDDEN:1 + 2 * CA_HIDDEN].set(params["ca_w2"].T)

    # Spatial-attention tap weights + bias as SMEM scalars: row 0 = mean-map
    # weights, row 1 = max-map weights, [0, 49] = bias.
    sa_tbl = jnp.zeros((2, SA_K * SA_K + 1), jnp.float32)
    sa_tbl = sa_tbl.at[:, 0:SA_K * SA_K].set(
        params["sa_w"].reshape(SA_K * SA_K, 2).T)
    sa_tbl = sa_tbl.at[0, SA_K * SA_K].set(params["sa_b"][0, 0])
    return conv_bd, slab, sa_tbl


def agent_logits(params, x_nchw):
    """Fused forward pass up to the (B, HEAD_DIM) head logits."""
    x = x_nchw.astype(jnp.float32)
    B, cin, H, W = x.shape
    x_flat = x.reshape(B * cin, H * W)                       # lane-dense HW

    conv_bd, slab, sa_tbl = _pack_params(params, B, cin)

    kernel = functools.partial(
        _fused_agent_kernel, batch=B, H=H, W=W, cin=cin, cout=CONV_CH,
        ca_hidden=CA_HIDDEN, hidden=LSTM_HIDDEN, head_dim=HEAD_DIM)

    return pl.pallas_call(
        kernel,
        out_shape=jax.ShapeDtypeStruct((B, HEAD_DIM), jnp.float32),
        in_specs=[
            pl.BlockSpec(memory_space=pltpu.MemorySpace.VMEM),   # image
            pl.BlockSpec(memory_space=pltpu.MemorySpace.VMEM),   # conv taps
            pl.BlockSpec(memory_space=pltpu.MemorySpace.VMEM),   # weight slab
            pl.BlockSpec(memory_space=pltpu.MemorySpace.SMEM),   # SA scalars
        ],
        out_specs=pl.BlockSpec(memory_space=pltpu.MemorySpace.VMEM),
    )(x_flat, conv_bd, slab, sa_tbl)


def _split_heads(logits):
    return {
        "keys": jax.nn.sigmoid(logits[:, 0:4]),                       # (B, 4)
        "mouse_x": jax.nn.softmax(logits[:, 4:23], axis=-1),          # (B, 19)
        "mouse_y": jax.nn.softmax(logits[:, 23:36], axis=-1),         # (B, 13)
        "weapon_switch": jax.nn.softmax(logits[:, 36:43], axis=-1),   # (B, 7)
        "fire": jax.nn.sigmoid(logits[:, 43:44]),                     # (B, 1)
        "reload": jax.nn.sigmoid(logits[:, 44:45]),                   # (B, 1)
        "jump": jax.nn.sigmoid(logits[:, 45:46]),                     # (B, 1)
        "plant_bomb": jax.nn.sigmoid(logits[:, 46:47]),               # (B, 1)
        "crouch": jax.nn.sigmoid(logits[:, 47:48]),                   # (B, 1)
        "walk": jax.nn.sigmoid(logits[:, 48:49]),                     # (B, 1)
    }


@jax.jit
def agent_forward(params, x_nchw):
    return _split_heads(agent_logits(params, x_nchw))


# ---------------------------------------------------------------------------
# Pure-JAX oracle (unfused im2col formulation) for self-checking.
# ---------------------------------------------------------------------------
def im2col(x, kh, kw, pad):
    """x: (B, H, W, C) NHWC -> (B, H, W, kh*kw*C) patches (same padding)."""
    B, H, W, C = x.shape
    xp = jnp.pad(x, ((0, 0), (pad, pad), (pad, pad), (0, 0)))
    cols = [xp[:, i:i + H, j:j + W, :] for i in range(kh) for j in range(kw)]
    return jnp.concatenate(cols, axis=-1)


def _logits_ref(params, x_nchw):
    x = jnp.transpose(x_nchw, (0, 2, 3, 1)).astype(jnp.float32)
    B, H, W, _ = x.shape
    HW = H * W
    patches = im2col(x, 3, 3, 1).reshape(B * HW, -1)
    feat = jnp.maximum(patches @ params["conv1_w"] + params["conv1_b"], 0.0)
    feat = feat.reshape(B, HW, CONV_CH)
    avg, mx = feat.mean(axis=1), feat.max(axis=1)

    def mlp(v):
        return jnp.maximum(v @ params["ca_w1"], 0.0) @ params["ca_w2"]

    att = jax.nn.sigmoid(mlp(avg) + mlp(mx))
    feat = feat * att[:, None, :]
    pooled = jnp.concatenate([feat.mean(axis=-1, keepdims=True),
                              feat.max(axis=-1, keepdims=True)], axis=-1)
    sp = im2col(pooled.reshape(B, H, W, 2), SA_K, SA_K, SA_K // 2)
    satt = jax.nn.sigmoid(sp.reshape(B * HW, -1) @ params["sa_w"]
                          + params["sa_b"]).reshape(B, HW, 1)
    feat = feat * satt
    xin = feat.mean(axis=1)
    gates = xin @ params["lstm_wx"] + params["lstm_b"]
    hd = LSTM_HIDDEN
    i = jax.nn.sigmoid(gates[:, 0:hd])
    g = jnp.tanh(gates[:, 2 * hd:3 * hd])
    o = jax.nn.sigmoid(gates[:, 3 * hd:4 * hd])
    h = o * jnp.tanh(i * g)
    return h @ params["head_w"] + params["head_b"]


if __name__ == "__main__":
    key = jax.random.PRNGKey(0)
    k_param, k_x = jax.random.split(key)
    params = init_params(k_param)

    # Small image consistent with the (B, 3, H, W) input convention.
    x = jax.random.normal(k_x, (2, 3, 16, 16), jnp.float32)

    out = agent_forward(params, x)
    jax.block_until_ready(out)

    expected = {
        "keys": (2, 4), "mouse_x": (2, 19), "mouse_y": (2, 13),
        "weapon_switch": (2, 7), "fire": (2, 1), "reload": (2, 1),
        "jump": (2, 1), "plant_bomb": (2, 1), "crouch": (2, 1), "walk": (2, 1),
    }
    for name, shape in expected.items():
        assert out[name].shape == shape, (name, out[name].shape)
        assert bool(jnp.all(jnp.isfinite(out[name]))), name

    # Numerical self-check against the pure-JAX oracle (generous tolerance to
    # allow for MXU matmul precision differences).
    lk = agent_logits(params, x)
    lr = _logits_ref(params, x)
    err = float(jnp.max(jnp.abs(lk - lr)))
    assert err < 5e-3, f"kernel/reference mismatch: max|diff|={err}"

    print("KERNEL_OK")
</pallas_src>

<mosaic_0001>
module attributes {stable_mosaic.version = 11 : i64} {
  func.func @_fused_agent_kernel(%arg0: memref<6x256xf32, #tpu.memory_space<vmem>>, %arg1: memref<9x16x6xf32, #tpu.memory_space<vmem>>, %arg2: memref<72x128xf32, #tpu.memory_space<vmem>>, %arg3: memref<2x50xf32, #tpu.memory_space<smem>>, %arg4: memref<2x49xf32, #tpu.memory_space<vmem>>) attributes {dimension_semantics = [], scalar_prefetch = 0 : i64, scratch_operands = 0 : i64, tpu.core_type = #tpu.core_type<tc>} {
    %0 = tpu.iota {dimensions = array<i32: 1>} : vector<1x256xi32>
    %1 = arith.sitofp %0 : vector<1x256xi32> to vector<1x256xf32>
    %cst = arith.constant 5.000000e-01 : f32
    %2 = vector.broadcast %cst : f32 to vector<1x256xf32>
    %3 = arith.addf %1, %2 : vector<1x256xf32>
    %cst_0 = arith.constant 6.250000e-02 : f32
    %4 = vector.broadcast %cst_0 : f32 to vector<1x256xf32>
    %5 = arith.mulf %3, %4 : vector<1x256xf32>
    %6 = math.floor %5 : vector<1x256xf32>
    %cst_1 = arith.constant 1.600000e+01 : f32
    %7 = vector.broadcast %cst_1 : f32 to vector<1x256xf32>
    %8 = arith.mulf %6, %7 : vector<1x256xf32>
    %9 = arith.subf %1, %8 : vector<1x256xf32>
    %cst_2 = arith.constant -3.000000e+00 : f32
    %10 = vector.broadcast %cst_2 : f32 to vector<1x256xf32>
    %11 = arith.addf %6, %10 : vector<1x256xf32>
    %cst_3 = arith.constant 0.000000e+00 : f32
    %12 = vector.broadcast %cst_3 : f32 to vector<1x256xf32>
    %13 = arith.cmpf oge, %11, %12 : vector<1x256xf32>
    %cst_4 = arith.constant -3.000000e+00 : f32
    %14 = vector.broadcast %cst_4 : f32 to vector<1x256xf32>
    %15 = arith.addf %6, %14 : vector<1x256xf32>
    %cst_5 = arith.constant 1.500000e+01 : f32
    %16 = vector.broadcast %cst_5 : f32 to vector<1x256xf32>
    %17 = arith.cmpf ole, %15, %16 : vector<1x256xf32>
    %18 = arith.andi %13, %17 : vector<1x256xi1>
    %cst_6 = arith.constant 1.000000e+00 : f32
    %cst_7 = arith.constant 0.000000e+00 : f32
    %19 = vector.broadcast %cst_6 : f32 to vector<1x256xf32>
    %20 = vector.broadcast %cst_7 : f32 to vector<1x256xf32>
    %21 = arith.select %18, %19, %20 : vector<1x256xi1>, vector<1x256xf32>
    %cst_8 = arith.constant -2.000000e+00 : f32
    %22 = vector.broadcast %cst_8 : f32 to vector<1x256xf32>
    %23 = arith.addf %6, %22 : vector<1x256xf32>
    %cst_9 = arith.constant 0.000000e+00 : f32
    %24 = vector.broadcast %cst_9 : f32 to vector<1x256xf32>
    %25 = arith.cmpf oge, %23, %24 : vector<1x256xf32>
    %cst_10 = arith.constant -2.000000e+00 : f32
    %26 = vector.broadcast %cst_10 : f32 to vector<1x256xf32>
    %27 = arith.addf %6, %26 : vector<1x256xf32>
    %cst_11 = arith.constant 1.500000e+01 : f32
    %28 = vector.broadcast %cst_11 : f32 to vector<1x256xf32>
    %29 = arith.cmpf ole, %27, %28 : vector<1x256xf32>
    %30 = arith.andi %25, %29 : vector<1x256xi1>
    %cst_12 = arith.constant 1.000000e+00 : f32
    %cst_13 = arith.constant 0.000000e+00 : f32
    %31 = vector.broadcast %cst_12 : f32 to vector<1x256xf32>
    %32 = vector.broadcast %cst_13 : f32 to vector<1x256xf32>
    %33 = arith.select %30, %31, %32 : vector<1x256xi1>, vector<1x256xf32>
    %cst_14 = arith.constant -1.000000e+00 : f32
    %34 = vector.broadcast %cst_14 : f32 to vector<1x256xf32>
    %35 = arith.addf %6, %34 : vector<1x256xf32>
    %cst_15 = arith.constant 0.000000e+00 : f32
    %36 = vector.broadcast %cst_15 : f32 to vector<1x256xf32>
    %37 = arith.cmpf oge, %35, %36 : vector<1x256xf32>
    %cst_16 = arith.constant -1.000000e+00 : f32
    %38 = vector.broadcast %cst_16 : f32 to vector<1x256xf32>
    %39 = arith.addf %6, %38 : vector<1x256xf32>
    %cst_17 = arith.constant 1.500000e+01 : f32
    %40 = vector.broadcast %cst_17 : f32 to vector<1x256xf32>
    %41 = arith.cmpf ole, %39, %40 : vector<1x256xf32>
    %42 = arith.andi %37, %41 : vector<1x256xi1>
    %cst_18 = arith.constant 1.000000e+00 : f32
    %cst_19 = arith.constant 0.000000e+00 : f32
    %43 = vector.broadcast %cst_18 : f32 to vector<1x256xf32>
    %44 = vector.broadcast %cst_19 : f32 to vector<1x256xf32>
    %45 = arith.select %42, %43, %44 : vector<1x256xi1>, vector<1x256xf32>
    %cst_20 = arith.constant 0.000000e+00 : f32
    %46 = vector.broadcast %cst_20 : f32 to vector<1x256xf32>
    %47 = arith.addf %6, %46 : vector<1x256xf32>
    %cst_21 = arith.constant 0.000000e+00 : f32
    %48 = vector.broadcast %cst_21 : f32 to vector<1x256xf32>
    %49 = arith.cmpf oge, %47, %48 : vector<1x256xf32>
    %cst_22 = arith.constant 0.000000e+00 : f32
    %50 = vector.broadcast %cst_22 : f32 to vector<1x256xf32>
    %51 = arith.addf %6, %50 : vector<1x256xf32>
    %cst_23 = arith.constant 1.500000e+01 : f32
    %52 = vector.broadcast %cst_23 : f32 to vector<1x256xf32>
    %53 = arith.cmpf ole, %51, %52 : vector<1x256xf32>
    %54 = arith.andi %49, %53 : vector<1x256xi1>
    %cst_24 = arith.constant 1.000000e+00 : f32
    %cst_25 = arith.constant 0.000000e+00 : f32
    %55 = vector.broadcast %cst_24 : f32 to vector<1x256xf32>
    %56 = vector.broadcast %cst_25 : f32 to vector<1x256xf32>
    %57 = arith.select %54, %55, %56 : vector<1x256xi1>, vector<1x256xf32>
    %cst_26 = arith.constant 1.000000e+00 : f32
    %58 = vector.broadcast %cst_26 : f32 to vector<1x256xf32>
    %59 = arith.addf %6, %58 : vector<1x256xf32>
    %cst_27 = arith.constant 0.000000e+00 : f32
    %60 = vector.broadcast %cst_27 : f32 to vector<1x256xf32>
    %61 = arith.cmpf oge, %59, %60 : vector<1x256xf32>
    %cst_28 = arith.constant 1.000000e+00 : f32
    %62 = vector.broadcast %cst_28 : f32 to vector<1x256xf32>
    %63 = arith.addf %6, %62 : vector<1x256xf32>
    %cst_29 = arith.constant 1.500000e+01 : f32
    %64 = vector.broadcast %cst_29 : f32 to vector<1x256xf32>
    %65 = arith.cmpf ole, %63, %64 : vector<1x256xf32>
    %66 = arith.andi %61, %65 : vector<1x256xi1>
    %cst_30 = arith.constant 1.000000e+00 : f32
    %cst_31 = arith.constant 0.000000e+00 : f32
    %67 = vector.broadcast %cst_30 : f32 to vector<1x256xf32>
    %68 = vector.broadcast %cst_31 : f32 to vector<1x256xf32>
    %69 = arith.select %66, %67, %68 : vector<1x256xi1>, vector<1x256xf32>
    %cst_32 = arith.constant 2.000000e+00 : f32
    %70 = vector.broadcast %cst_32 : f32 to vector<1x256xf32>
    %71 = arith.addf %6, %70 : vector<1x256xf32>
    %cst_33 = arith.constant 0.000000e+00 : f32
    %72 = vector.broadcast %cst_33 : f32 to vector<1x256xf32>
    %73 = arith.cmpf oge, %71, %72 : vector<1x256xf32>
    %cst_34 = arith.constant 2.000000e+00 : f32
    %74 = vector.broadcast %cst_34 : f32 to vector<1x256xf32>
    %75 = arith.addf %6, %74 : vector<1x256xf32>
    %cst_35 = arith.constant 1.500000e+01 : f32
    %76 = vector.broadcast %cst_35 : f32 to vector<1x256xf32>
    %77 = arith.cmpf ole, %75, %76 : vector<1x256xf32>
    %78 = arith.andi %73, %77 : vector<1x256xi1>
    %cst_36 = arith.constant 1.000000e+00 : f32
    %cst_37 = arith.constant 0.000000e+00 : f32
    %79 = vector.broadcast %cst_36 : f32 to vector<1x256xf32>
    %80 = vector.broadcast %cst_37 : f32 to vector<1x256xf32>
    %81 = arith.select %78, %79, %80 : vector<1x256xi1>, vector<1x256xf32>
    %cst_38 = arith.constant 3.000000e+00 : f32
    %82 = vector.broadcast %cst_38 : f32 to vector<1x256xf32>
    %83 = arith.addf %6, %82 : vector<1x256xf32>
    %cst_39 = arith.constant 0.000000e+00 : f32
    %84 = vector.broadcast %cst_39 : f32 to vector<1x256xf32>
    %85 = arith.cmpf oge, %83, %84 : vector<1x256xf32>
    %cst_40 = arith.constant 3.000000e+00 : f32
    %86 = vector.broadcast %cst_40 : f32 to vector<1x256xf32>
    %87 = arith.addf %6, %86 : vector<1x256xf32>
    %cst_41 = arith.constant 1.500000e+01 : f32
    %88 = vector.broadcast %cst_41 : f32 to vector<1x256xf32>
    %89 = arith.cmpf ole, %87, %88 : vector<1x256xf32>
    %90 = arith.andi %85, %89 : vector<1x256xi1>
    %cst_42 = arith.constant 1.000000e+00 : f32
    %cst_43 = arith.constant 0.000000e+00 : f32
    %91 = vector.broadcast %cst_42 : f32 to vector<1x256xf32>
    %92 = vector.broadcast %cst_43 : f32 to vector<1x256xf32>
    %93 = arith.select %90, %91, %92 : vector<1x256xi1>, vector<1x256xf32>
    %cst_44 = arith.constant -3.000000e+00 : f32
    %94 = vector.broadcast %cst_44 : f32 to vector<1x256xf32>
    %95 = arith.addf %9, %94 : vector<1x256xf32>
    %cst_45 = arith.constant 0.000000e+00 : f32
    %96 = vector.broadcast %cst_45 : f32 to vector<1x256xf32>
    %97 = arith.cmpf oge, %95, %96 : vector<1x256xf32>
    %cst_46 = arith.constant -3.000000e+00 : f32
    %98 = vector.broadcast %cst_46 : f32 to vector<1x256xf32>
    %99 = arith.addf %9, %98 : vector<1x256xf32>
    %cst_47 = arith.constant 1.500000e+01 : f32
    %100 = vector.broadcast %cst_47 : f32 to vector<1x256xf32>
    %101 = arith.cmpf ole, %99, %100 : vector<1x256xf32>
    %102 = arith.andi %97, %101 : vector<1x256xi1>
    %cst_48 = arith.constant 1.000000e+00 : f32
    %cst_49 = arith.constant 0.000000e+00 : f32
    %103 = vector.broadcast %cst_48 : f32 to vector<1x256xf32>
    %104 = vector.broadcast %cst_49 : f32 to vector<1x256xf32>
    %105 = arith.select %102, %103, %104 : vector<1x256xi1>, vector<1x256xf32>
    %cst_50 = arith.constant -2.000000e+00 : f32
    %106 = vector.broadcast %cst_50 : f32 to vector<1x256xf32>
    %107 = arith.addf %9, %106 : vector<1x256xf32>
    %cst_51 = arith.constant 0.000000e+00 : f32
    %108 = vector.broadcast %cst_51 : f32 to vector<1x256xf32>
    %109 = arith.cmpf oge, %107, %108 : vector<1x256xf32>
    %cst_52 = arith.constant -2.000000e+00 : f32
    %110 = vector.broadcast %cst_52 : f32 to vector<1x256xf32>
    %111 = arith.addf %9, %110 : vector<1x256xf32>
    %cst_53 = arith.constant 1.500000e+01 : f32
    %112 = vector.broadcast %cst_53 : f32 to vector<1x256xf32>
    %113 = arith.cmpf ole, %111, %112 : vector<1x256xf32>
    %114 = arith.andi %109, %113 : vector<1x256xi1>
    %cst_54 = arith.constant 1.000000e+00 : f32
    %cst_55 = arith.constant 0.000000e+00 : f32
    %115 = vector.broadcast %cst_54 : f32 to vector<1x256xf32>
    %116 = vector.broadcast %cst_55 : f32 to vector<1x256xf32>
    %117 = arith.select %114, %115, %116 : vector<1x256xi1>, vector<1x256xf32>
    %cst_56 = arith.constant -1.000000e+00 : f32
    %118 = vector.broadcast %cst_56 : f32 to vector<1x256xf32>
    %119 = arith.addf %9, %118 : vector<1x256xf32>
    %cst_57 = arith.constant 0.000000e+00 : f32
    %120 = vector.broadcast %cst_57 : f32 to vector<1x256xf32>
    %121 = arith.cmpf oge, %119, %120 : vector<1x256xf32>
    %cst_58 = arith.constant -1.000000e+00 : f32
    %122 = vector.broadcast %cst_58 : f32 to vector<1x256xf32>
    %123 = arith.addf %9, %122 : vector<1x256xf32>
    %cst_59 = arith.constant 1.500000e+01 : f32
    %124 = vector.broadcast %cst_59 : f32 to vector<1x256xf32>
    %125 = arith.cmpf ole, %123, %124 : vector<1x256xf32>
    %126 = arith.andi %121, %125 : vector<1x256xi1>
    %cst_60 = arith.constant 1.000000e+00 : f32
    %cst_61 = arith.constant 0.000000e+00 : f32
    %127 = vector.broadcast %cst_60 : f32 to vector<1x256xf32>
    %128 = vector.broadcast %cst_61 : f32 to vector<1x256xf32>
    %129 = arith.select %126, %127, %128 : vector<1x256xi1>, vector<1x256xf32>
    %cst_62 = arith.constant 0.000000e+00 : f32
    %130 = vector.broadcast %cst_62 : f32 to vector<1x256xf32>
    %131 = arith.addf %9, %130 : vector<1x256xf32>
    %cst_63 = arith.constant 0.000000e+00 : f32
    %132 = vector.broadcast %cst_63 : f32 to vector<1x256xf32>
    %133 = arith.cmpf oge, %131, %132 : vector<1x256xf32>
    %cst_64 = arith.constant 0.000000e+00 : f32
    %134 = vector.broadcast %cst_64 : f32 to vector<1x256xf32>
    %135 = arith.addf %9, %134 : vector<1x256xf32>
    %cst_65 = arith.constant 1.500000e+01 : f32
    %136 = vector.broadcast %cst_65 : f32 to vector<1x256xf32>
    %137 = arith.cmpf ole, %135, %136 : vector<1x256xf32>
    %138 = arith.andi %133, %137 : vector<1x256xi1>
    %cst_66 = arith.constant 1.000000e+00 : f32
    %cst_67 = arith.constant 0.000000e+00 : f32
    %139 = vector.broadcast %cst_66 : f32 to vector<1x256xf32>
    %140 = vector.broadcast %cst_67 : f32 to vector<1x256xf32>
    %141 = arith.select %138, %139, %140 : vector<1x256xi1>, vector<1x256xf32>
    %cst_68 = arith.constant 1.000000e+00 : f32
    %142 = vector.broadcast %cst_68 : f32 to vector<1x256xf32>
    %143 = arith.addf %9, %142 : vector<1x256xf32>
    %cst_69 = arith.constant 0.000000e+00 : f32
    %144 = vector.broadcast %cst_69 : f32 to vector<1x256xf32>
    %145 = arith.cmpf oge, %143, %144 : vector<1x256xf32>
    %cst_70 = arith.constant 1.000000e+00 : f32
    %146 = vector.broadcast %cst_70 : f32 to vector<1x256xf32>
    %147 = arith.addf %9, %146 : vector<1x256xf32>
    %cst_71 = arith.constant 1.500000e+01 : f32
    %148 = vector.broadcast %cst_71 : f32 to vector<1x256xf32>
    %149 = arith.cmpf ole, %147, %148 : vector<1x256xf32>
    %150 = arith.andi %145, %149 : vector<1x256xi1>
    %cst_72 = arith.constant 1.000000e+00 : f32
    %cst_73 = arith.constant 0.000000e+00 : f32
    %151 = vector.broadcast %cst_72 : f32 to vector<1x256xf32>
    %152 = vector.broadcast %cst_73 : f32 to vector<1x256xf32>
    %153 = arith.select %150, %151, %152 : vector<1x256xi1>, vector<1x256xf32>
    %cst_74 = arith.constant 2.000000e+00 : f32
    %154 = vector.broadcast %cst_74 : f32 to vector<1x256xf32>
    %155 = arith.addf %9, %154 : vector<1x256xf32>
    %cst_75 = arith.constant 0.000000e+00 : f32
    %156 = vector.broadcast %cst_75 : f32 to vector<1x256xf32>
    %157 = arith.cmpf oge, %155, %156 : vector<1x256xf32>
    %cst_76 = arith.constant 2.000000e+00 : f32
    %158 = vector.broadcast %cst_76 : f32 to vector<1x256xf32>
    %159 = arith.addf %9, %158 : vector<1x256xf32>
    %cst_77 = arith.constant 1.500000e+01 : f32
    %160 = vector.broadcast %cst_77 : f32 to vector<1x256xf32>
    %161 = arith.cmpf ole, %159, %160 : vector<1x256xf32>
    %162 = arith.andi %157, %161 : vector<1x256xi1>
    %cst_78 = arith.constant 1.000000e+00 : f32
    %cst_79 = arith.constant 0.000000e+00 : f32
    %163 = vector.broadcast %cst_78 : f32 to vector<1x256xf32>
    %164 = vector.broadcast %cst_79 : f32 to vector<1x256xf32>
    %165 = arith.select %162, %163, %164 : vector<1x256xi1>, vector<1x256xf32>
    %cst_80 = arith.constant 3.000000e+00 : f32
    %166 = vector.broadcast %cst_80 : f32 to vector<1x256xf32>
    %167 = arith.addf %9, %166 : vector<1x256xf32>
    %cst_81 = arith.constant 0.000000e+00 : f32
    %168 = vector.broadcast %cst_81 : f32 to vector<1x256xf32>
    %169 = arith.cmpf oge, %167, %168 : vector<1x256xf32>
    %cst_82 = arith.constant 3.000000e+00 : f32
    %170 = vector.broadcast %cst_82 : f32 to vector<1x256xf32>
    %171 = arith.addf %9, %170 : vector<1x256xf32>
    %cst_83 = arith.constant 1.500000e+01 : f32
    %172 = vector.broadcast %cst_83 : f32 to vector<1x256xf32>
    %173 = arith.cmpf ole, %171, %172 : vector<1x256xf32>
    %174 = arith.andi %169, %173 : vector<1x256xi1>
    %cst_84 = arith.constant 1.000000e+00 : f32
    %cst_85 = arith.constant 0.000000e+00 : f32
    %175 = vector.broadcast %cst_84 : f32 to vector<1x256xf32>
    %176 = vector.broadcast %cst_85 : f32 to vector<1x256xf32>
    %177 = arith.select %174, %175, %176 : vector<1x256xi1>, vector<1x256xf32>
    %c0 = arith.constant 0 : index
    %c0_86 = arith.constant 0 : index
    %178 = vector.load %arg0[%c0, %c0_86] : memref<6x256xf32, #tpu.memory_space<vmem>>, vector<6x256xf32>
    %cst_87 = arith.constant 0.000000e+00 : f32
    %179 = vector.broadcast %cst_87 : f32 to vector<16x256xf32>
    %180 = arith.mulf %45, %129 : vector<1x256xf32>
    %c17_i32 = arith.constant 17 : i32
    %181 = tpu.dynamic_rotate %178 by %c17_i32 dim 1 : vector<6x256xf32>, i32 -> vector<6x256xf32>
    %182 = vector.broadcast %180 : vector<1x256xf32> to vector<6x256xf32>
    %183 = arith.mulf %181, %182 : vector<6x256xf32>
    %c0_88 = arith.constant 0 : index
    %c0_89 = arith.constant 0 : index
    %c0_90 = arith.constant 0 : index
    %184 = vector.load %arg1[%c0_88, %c0_89, %c0_90] : memref<9x16x6xf32, #tpu.memory_space<vmem>>, vector<1x16x6xf32>
    %185 = vector.shape_cast %184 : vector<1x16x6xf32> to vector<16x6xf32>
    %cst_91 = arith.constant dense<0.000000e+00> : vector<16x256xf32>
    %186 = tpu.matmul %185, %183, %cst_91 {dimension_numbers = #tpu.dot_dimension_numbers<[1], [0], [0], [1], [0, 0, 1, 1], [], []>} : vector<16x6xf32>, vector<6x256xf32>, vector<16x256xf32> -> vector<16x256xf32>
    %187 = arith.addf %179, %186 : vector<16x256xf32>
    %188 = arith.mulf %45, %141 : vector<1x256xf32>
    %c16_i32 = arith.constant 16 : i32
    %189 = tpu.dynamic_rotate %178 by %c16_i32 dim 1 : vector<6x256xf32>, i32 -> vector<6x256xf32>
    %190 = vector.broadcast %188 : vector<1x256xf32> to vector<6x256xf32>
    %191 = arith.mulf %189, %190 : vector<6x256xf32>
    %c1 = arith.constant 1 : index
    %c0_92 = arith.constant 0 : index
    %c0_93 = arith.constant 0 : index
    %192 = vector.load %arg1[%c1, %c0_92, %c0_93] : memref<9x16x6xf32, #tpu.memory_space<vmem>>, vector<1x16x6xf32>
    %193 = vector.shape_cast %192 : vector<1x16x6xf32> to vector<16x6xf32>
    %cst_94 = arith.constant dense<0.000000e+00> : vector<16x256xf32>
    %194 = tpu.matmul %193, %191, %cst_94 {dimension_numbers = #tpu.dot_dimension_numbers<[1], [0], [0], [1], [0, 0, 1, 1], [], []>} : vector<16x6xf32>, vector<6x256xf32>, vector<16x256xf32> -> vector<16x256xf32>
    %195 = arith.addf %187, %194 : vector<16x256xf32>
    %196 = arith.mulf %45, %153 : vector<1x256xf32>
    %c15_i32 = arith.constant 15 : i32
    %197 = tpu.dynamic_rotate %178 by %c15_i32 dim 1 : vector<6x256xf32>, i32 -> vector<6x256xf32>
    %198 = vector.broadcast %196 : vector<1x256xf32> to vector<6x256xf32>
    %199 = arith.mulf %197, %198 : vector<6x256xf32>
    %c2 = arith.constant 2 : index
    %c0_95 = arith.constant 0 : index
    %c0_96 = arith.constant 0 : index
    %200 = vector.load %arg1[%c2, %c0_95, %c0_96] : memref<9x16x6xf32, #tpu.memory_space<vmem>>, vector<1x16x6xf32>
    %201 = vector.shape_cast %200 : vector<1x16x6xf32> to vector<16x6xf32>
    %cst_97 = arith.constant dense<0.000000e+00> : vector<16x256xf32>
    %202 = tpu.matmul %201, %199, %cst_97 {dimension_numbers = #tpu.dot_dimension_numbers<[1], [0], [0], [1], [0, 0, 1, 1], [], []>} : vector<16x6xf32>, vector<6x256xf32>, vector<16x256xf32> -> vector<16x256xf32>
    %203 = arith.addf %195, %202 : vector<16x256xf32>
    %204 = arith.mulf %57, %129 : vector<1x256xf32>
    %c1_i32 = arith.constant 1 : i32
    %205 = tpu.dynamic_rotate %178 by %c1_i32 dim 1 : vector<6x256xf32>, i32 -> vector<6x256xf32>
    %206 = vector.broadcast %204 : vector<1x256xf32> to vector<6x256xf32>
    %207 = arith.mulf %205, %206 : vector<6x256xf32>
    %c3 = arith.constant 3 : index
    %c0_98 = arith.constant 0 : index
    %c0_99 = arith.constant 0 : index
    %208 = vector.load %arg1[%c3, %c0_98, %c0_99] : memref<9x16x6xf32, #tpu.memory_space<vmem>>, vector<1x16x6xf32>
    %209 = vector.shape_cast %208 : vector<1x16x6xf32> to vector<16x6xf32>
    %cst_100 = arith.constant dense<0.000000e+00> : vector<16x256xf32>
    %210 = tpu.matmul %209, %207, %cst_100 {dimension_numbers = #tpu.dot_dimension_numbers<[1], [0], [0], [1], [0, 0, 1, 1], [], []>} : vector<16x6xf32>, vector<6x256xf32>, vector<16x256xf32> -> vector<16x256xf32>
    %211 = arith.addf %203, %210 : vector<16x256xf32>
    %212 = arith.mulf %57, %141 : vector<1x256xf32>
    %c0_i32 = arith.constant 0 : i32
    %213 = tpu.dynamic_rotate %178 by %c0_i32 dim 1 : vector<6x256xf32>, i32 -> vector<6x256xf32>
    %214 = vector.broadcast %212 : vector<1x256xf32> to vector<6x256xf32>
    %215 = arith.mulf %213, %214 : vector<6x256xf32>
    %c4 = arith.constant 4 : index
    %c0_101 = arith.constant 0 : index
    %c0_102 = arith.constant 0 : index
    %216 = vector.load %arg1[%c4, %c0_101, %c0_102] : memref<9x16x6xf32, #tpu.memory_space<vmem>>, vector<1x16x6xf32>
    %217 = vector.shape_cast %216 : vector<1x16x6xf32> to vector<16x6xf32>
    %cst_103 = arith.constant dense<0.000000e+00> : vector<16x256xf32>
    %218 = tpu.matmul %217, %215, %cst_103 {dimension_numbers = #tpu.dot_dimension_numbers<[1], [0], [0], [1], [0, 0, 1, 1], [], []>} : vector<16x6xf32>, vector<6x256xf32>, vector<16x256xf32> -> vector<16x256xf32>
    %219 = arith.addf %211, %218 : vector<16x256xf32>
    %220 = arith.mulf %57, %153 : vector<1x256xf32>
    %c255_i32 = arith.constant 255 : i32
    %221 = tpu.dynamic_rotate %178 by %c255_i32 dim 1 : vector<6x256xf32>, i32 -> vector<6x256xf32>
    %222 = vector.broadcast %220 : vector<1x256xf32> to vector<6x256xf32>
    %223 = arith.mulf %221, %222 : vector<6x256xf32>
    %c5 = arith.constant 5 : index
    %c0_104 = arith.constant 0 : index
    %c0_105 = arith.constant 0 : index
    %224 = vector.load %arg1[%c5, %c0_104, %c0_105] : memref<9x16x6xf32, #tpu.memory_space<vmem>>, vector<1x16x6xf32>
    %225 = vector.shape_cast %224 : vector<1x16x6xf32> to vector<16x6xf32>
    %cst_106 = arith.constant dense<0.000000e+00> : vector<16x256xf32>
    %226 = tpu.matmul %225, %223, %cst_106 {dimension_numbers = #tpu.dot_dimension_numbers<[1], [0], [0], [1], [0, 0, 1, 1], [], []>} : vector<16x6xf32>, vector<6x256xf32>, vector<16x256xf32> -> vector<16x256xf32>
    %227 = arith.addf %219, %226 : vector<16x256xf32>
    %228 = arith.mulf %69, %129 : vector<1x256xf32>
    %c241_i32 = arith.constant 241 : i32
    %229 = tpu.dynamic_rotate %178 by %c241_i32 dim 1 : vector<6x256xf32>, i32 -> vector<6x256xf32>
    %230 = vector.broadcast %228 : vector<1x256xf32> to vector<6x256xf32>
    %231 = arith.mulf %229, %230 : vector<6x256xf32>
    %c6 = arith.constant 6 : index
    %c0_107 = arith.constant 0 : index
    %c0_108 = arith.constant 0 : index
    %232 = vector.load %arg1[%c6, %c0_107, %c0_108] : memref<9x16x6xf32, #tpu.memory_space<vmem>>, vector<1x16x6xf32>
    %233 = vector.shape_cast %232 : vector<1x16x6xf32> to vector<16x6xf32>
    %cst_109 = arith.constant dense<0.000000e+00> : vector<16x256xf32>
    %234 = tpu.matmul %233, %231, %cst_109 {dimension_numbers = #tpu.dot_dimension_numbers<[1], [0], [0], [1], [0, 0, 1, 1], [], []>} : vector<16x6xf32>, vector<6x256xf32>, vector<16x256xf32> -> vector<16x256xf32>
    %235 = arith.addf %227, %234 : vector<16x256xf32>
    %236 = arith.mulf %69, %141 : vector<1x256xf32>
    %c240_i32 = arith.constant 240 : i32
    %237 = tpu.dynamic_rotate %178 by %c240_i32 dim 1 : vector<6x256xf32>, i32 -> vector<6x256xf32>
    %238 = vector.broadcast %236 : vector<1x256xf32> to vector<6x256xf32>
    %239 = arith.mulf %237, %238 : vector<6x256xf32>
    %c7 = arith.constant 7 : index
    %c0_110 = arith.constant 0 : index
    %c0_111 = arith.constant 0 : index
    %240 = vector.load %arg1[%c7, %c0_110, %c0_111] : memref<9x16x6xf32, #tpu.memory_space<vmem>>, vector<1x16x6xf32>
    %241 = vector.shape_cast %240 : vector<1x16x6xf32> to vector<16x6xf32>
    %cst_112 = arith.constant dense<0.000000e+00> : vector<16x256xf32>
    %242 = tpu.matmul %241, %239, %cst_112 {dimension_numbers = #tpu.dot_dimension_numbers<[1], [0], [0], [1], [0, 0, 1, 1], [], []>} : vector<16x6xf32>, vector<6x256xf32>, vector<16x256xf32> -> vector<16x256xf32>
    %243 = arith.addf %235, %242 : vector<16x256xf32>
    %244 = arith.mulf %69, %153 : vector<1x256xf32>
    %c239_i32 = arith.constant 239 : i32
    %245 = tpu.dynamic_rotate %178 by %c239_i32 dim 1 : vector<6x256xf32>, i32 -> vector<6x256xf32>
    %246 = vector.broadcast %244 : vector<1x256xf32> to vector<6x256xf32>
    %247 = arith.mulf %245, %246 : vector<6x256xf32>
    %c8 = arith.constant 8 : index
    %c0_113 = arith.constant 0 : index
    %c0_114 = arith.constant 0 : index
    %248 = vector.load %arg1[%c8, %c0_113, %c0_114] : memref<9x16x6xf32, #tpu.memory_space<vmem>>, vector<1x16x6xf32>
    %249 = vector.shape_cast %248 : vector<1x16x6xf32> to vector<16x6xf32>
    %cst_115 = arith.constant dense<0.000000e+00> : vector<16x256xf32>
    %250 = tpu.matmul %249, %247, %cst_115 {dimension_numbers = #tpu.dot_dimension_numbers<[1], [0], [0], [1], [0, 0, 1, 1], [], []>} : vector<16x6xf32>, vector<6x256xf32>, vector<16x256xf32> -> vector<16x256xf32>
    %251 = arith.addf %243, %250 : vector<16x256xf32>
    %c56 = arith.constant 56 : index
    %c0_116 = arith.constant 0 : index
    %252 = vector.load %arg2[%c56, %c0_116] : memref<72x128xf32, #tpu.memory_space<vmem>>, vector<16x1xf32>
    %253 = vector.broadcast %252 : vector<16x1xf32> to vector<16x256xf32>
    %254 = arith.addf %251, %253 : vector<16x256xf32>
    %cst_117 = arith.constant 0.000000e+00 : f32
    %255 = vector.broadcast %cst_117 : f32 to vector<16x256xf32>
    %256 = arith.maximumf %254, %255 : vector<16x256xf32>
    %c56_118 = arith.constant 56 : index
    %c1_119 = arith.constant 1 : index
    %257 = vector.load %arg2[%c56_118, %c1_119] : memref<72x128xf32, #tpu.memory_space<vmem>>, vector<8x4xf32>
    %c56_120 = arith.constant 56 : index
    %c5_121 = arith.constant 5 : index
    %258 = vector.load %arg2[%c56_120, %c5_121] : memref<72x128xf32, #tpu.memory_space<vmem>>, vector<8x4xf32>
    %259 = vector.extract_strided_slice %256 {offsets = [0, 0], sizes = [8, 256], strides = [1, 1]} : vector<16x256xf32> to vector<8x256xf32>
    %cst_122 = arith.constant dense<0.000000e+00> : vector<8xf32>
    %260 = vector.multi_reduction <add>, %259, %cst_122 [1] : vector<8x256xf32> to vector<8xf32>
    %261 = vector.shape_cast %260 : vector<8xf32> to vector<8x1xf32>
    %cst_123 = arith.constant 2.560000e+02 : f32
    %262 = vector.broadcast %cst_123 : f32 to vector<8x1xf32>
    %263 = arith.divf %261, %262 : vector<8x1xf32>
    %264 = vector.broadcast %263 : vector<8x1xf32> to vector<8x4xf32>
    %265 = arith.mulf %264, %257 : vector<8x4xf32>
    %cst_124 = arith.constant dense<0.000000e+00> : vector<4xf32>
    %266 = vector.multi_reduction <add>, %265, %cst_124 [0] : vector<8x4xf32> to vector<4xf32>
    %267 = vector.shape_cast %266 : vector<4xf32> to vector<1x4xf32>
    %cst_125 = arith.constant 0.000000e+00 : f32
    %268 = vector.broadcast %cst_125 : f32 to vector<1x4xf32>
    %269 = arith.maximumf %267, %268 : vector<1x4xf32>
    %270 = vector.broadcast %269 : vector<1x4xf32> to vector<8x4xf32>
    %271 = arith.mulf %258, %270 : vector<8x4xf32>
    %cst_126 = arith.constant dense<0.000000e+00> : vector<8xf32>
    %272 = vector.multi_reduction <add>, %271, %cst_126 [1] : vector<8x4xf32> to vector<8xf32>
    %273 = vector.shape_cast %272 : vector<8xf32> to vector<8x1xf32>
    %cst_127 = arith.constant dense<0xFF800000> : vector<8xf32>
    %274 = vector.multi_reduction <maximumf>, %259, %cst_127 [1] : vector<8x256xf32> to vector<8xf32>
    %275 = vector.shape_cast %274 : vector<8xf32> to vector<8x1xf32>
    %276 = vector.broadcast %275 : vector<8x1xf32> to vector<8x4xf32>
    %277 = arith.mulf %276, %257 : vector<8x4xf32>
    %cst_128 = arith.constant dense<0.000000e+00> : vector<4xf32>
    %278 = vector.multi_reduction <add>, %277, %cst_128 [0] : vector<8x4xf32> to vector<4xf32>
    %279 = vector.shape_cast %278 : vector<4xf32> to vector<1x4xf32>
    %cst_129 = arith.constant 0.000000e+00 : f32
    %280 = vector.broadcast %cst_129 : f32 to vector<1x4xf32>
    %281 = arith.maximumf %279, %280 : vector<1x4xf32>
    %282 = vector.broadcast %281 : vector<1x4xf32> to vector<8x4xf32>
    %283 = arith.mulf %258, %282 : vector<8x4xf32>
    %cst_130 = arith.constant dense<0.000000e+00> : vector<8xf32>
    %284 = vector.multi_reduction <add>, %283, %cst_130 [1] : vector<8x4xf32> to vector<8xf32>
    %285 = vector.shape_cast %284 : vector<8xf32> to vector<8x1xf32>
    %286 = arith.addf %273, %285 : vector<8x1xf32>
    %287 = arith.negf %286 : vector<8x1xf32>
    %288 = math.exp %287 : vector<8x1xf32>
    %cst_131 = arith.constant 1.000000e+00 : f32
    %289 = vector.broadcast %cst_131 : f32 to vector<8x1xf32>
    %290 = arith.addf %289, %288 : vector<8x1xf32>
    %291 = arith.divf %289, %290 : vector<8x1xf32>
    %292 = vector.broadcast %291 : vector<8x1xf32> to vector<8x256xf32>
    %293 = arith.mulf %259, %292 : vector<8x256xf32>
    %294 = vector.extract_strided_slice %256 {offsets = [8, 0], sizes = [8, 256], strides = [1, 1]} : vector<16x256xf32> to vector<8x256xf32>
    %cst_132 = arith.constant dense<0.000000e+00> : vector<8xf32>
    %295 = vector.multi_reduction <add>, %294, %cst_132 [1] : vector<8x256xf32> to vector<8xf32>
    %296 = vector.shape_cast %295 : vector<8xf32> to vector<8x1xf32>
    %cst_133 = arith.constant 2.560000e+02 : f32
    %297 = vector.broadcast %cst_133 : f32 to vector<8x1xf32>
    %298 = arith.divf %296, %297 : vector<8x1xf32>
    %299 = vector.broadcast %298 : vector<8x1xf32> to vector<8x4xf32>
    %300 = arith.mulf %299, %257 : vector<8x4xf32>
    %cst_134 = arith.constant dense<0.000000e+00> : vector<4xf32>
    %301 = vector.multi_reduction <add>, %300, %cst_134 [0] : vector<8x4xf32> to vector<4xf32>
    %302 = vector.shape_cast %301 : vector<4xf32> to vector<1x4xf32>
    %cst_135 = arith.constant 0.000000e+00 : f32
    %303 = vector.broadcast %cst_135 : f32 to vector<1x4xf32>
    %304 = arith.maximumf %302, %303 : vector<1x4xf32>
    %305 = vector.broadcast %304 : vector<1x4xf32> to vector<8x4xf32>
    %306 = arith.mulf %258, %305 : vector<8x4xf32>
    %cst_136 = arith.constant dense<0.000000e+00> : vector<8xf32>
    %307 = vector.multi_reduction <add>, %306, %cst_136 [1] : vector<8x4xf32> to vector<8xf32>
    %308 = vector.shape_cast %307 : vector<8xf32> to vector<8x1xf32>
    %cst_137 = arith.constant dense<0xFF800000> : vector<8xf32>
    %309 = vector.multi_reduction <maximumf>, %294, %cst_137 [1] : vector<8x256xf32> to vector<8xf32>
    %310 = vector.shape_cast %309 : vector<8xf32> to vector<8x1xf32>
    %311 = vector.broadcast %310 : vector<8x1xf32> to vector<8x4xf32>
    %312 = arith.mulf %311, %257 : vector<8x4xf32>
    %cst_138 = arith.constant dense<0.000000e+00> : vector<4xf32>
    %313 = vector.multi_reduction <add>, %312, %cst_138 [0] : vector<8x4xf32> to vector<4xf32>
    %314 = vector.shape_cast %313 : vector<4xf32> to vector<1x4xf32>
    %cst_139 = arith.constant 0.000000e+00 : f32
    %315 = vector.broadcast %cst_139 : f32 to vector<1x4xf32>
    %316 = arith.maximumf %314, %315 : vector<1x4xf32>
    %317 = vector.broadcast %316 : vector<1x4xf32> to vector<8x4xf32>
    %318 = arith.mulf %258, %317 : vector<8x4xf32>
    %cst_140 = arith.constant dense<0.000000e+00> : vector<8xf32>
    %319 = vector.multi_reduction <add>, %318, %cst_140 [1] : vector<8x4xf32> to vector<8xf32>
    %320 = vector.shape_cast %319 : vector<8xf32> to vector<8x1xf32>
    %321 = arith.addf %308, %320 : vector<8x1xf32>
    %322 = arith.negf %321 : vector<8x1xf32>
    %323 = math.exp %322 : vector<8x1xf32>
    %cst_141 = arith.constant 1.000000e+00 : f32
    %324 = vector.broadcast %cst_141 : f32 to vector<8x1xf32>
    %325 = arith.addf %324, %323 : vector<8x1xf32>
    %326 = arith.divf %324, %325 : vector<8x1xf32>
    %327 = vector.broadcast %326 : vector<8x1xf32> to vector<8x256xf32>
    %328 = arith.mulf %294, %327 : vector<8x256xf32>
    %329 = tpu.concatenate %293, %328 in 0 : vector<8x256xf32>, vector<8x256xf32> -> vector<16x256xf32>
    %330 = vector.extract_strided_slice %329 {offsets = [0, 0], sizes = [8, 256], strides = [1, 1]} : vector<16x256xf32> to vector<8x256xf32>
    %cst_142 = arith.constant dense<0.000000e+00> : vector<256xf32>
    %331 = vector.multi_reduction <add>, %330, %cst_142 [0] : vector<8x256xf32> to vector<256xf32>
    %332 = vector.shape_cast %331 : vector<256xf32> to vector<1x256xf32>
    %cst_143 = arith.constant 8.000000e+00 : f32
    %333 = vector.broadcast %cst_143 : f32 to vector<1x256xf32>
    %334 = arith.divf %332, %333 : vector<1x256xf32>
    %335 = vector.extract_strided_slice %329 {offsets = [8, 0], sizes = [8, 256], strides = [1, 1]} : vector<16x256xf32> to vector<8x256xf32>
    %cst_144 = arith.constant dense<0.000000e+00> : vector<256xf32>
    %336 = vector.multi_reduction <add>, %335, %cst_144 [0] : vector<8x256xf32> to vector<256xf32>
    %337 = vector.shape_cast %336 : vector<256xf32> to vector<1x256xf32>
    %cst_145 = arith.constant 8.000000e+00 : f32
    %338 = vector.broadcast %cst_145 : f32 to vector<1x256xf32>
    %339 = arith.divf %337, %338 : vector<1x256xf32>
    %340 = tpu.concatenate %334, %339 in 0 : vector<1x256xf32>, vector<1x256xf32> -> vector<2x256xf32>
    %341 = vector.extract_strided_slice %329 {offsets = [0, 0], sizes = [8, 256], strides = [1, 1]} : vector<16x256xf32> to vector<8x256xf32>
    %cst_146 = arith.constant dense<0xFF800000> : vector<256xf32>
    %342 = vector.multi_reduction <maximumf>, %341, %cst_146 [0] : vector<8x256xf32> to vector<256xf32>
    %343 = vector.shape_cast %342 : vector<256xf32> to vector<1x256xf32>
    %344 = vector.extract_strided_slice %329 {offsets = [8, 0], sizes = [8, 256], strides = [1, 1]} : vector<16x256xf32> to vector<8x256xf32>
    %cst_147 = arith.constant dense<0xFF800000> : vector<256xf32>
    %345 = vector.multi_reduction <maximumf>, %344, %cst_147 [0] : vector<8x256xf32> to vector<256xf32>
    %346 = vector.shape_cast %345 : vector<256xf32> to vector<1x256xf32>
    %347 = tpu.concatenate %343, %346 in 0 : vector<1x256xf32>, vector<1x256xf32> -> vector<2x256xf32>
    %c48_i32 = arith.constant 48 : i32
    %348 = tpu.dynamic_rotate %340 by %c48_i32 dim 1 : vector<2x256xf32>, i32 -> vector<2x256xf32>
    %349 = vector.broadcast %21 : vector<1x256xf32> to vector<2x256xf32>
    %350 = arith.mulf %349, %348 : vector<2x256xf32>
    %c32_i32 = arith.constant 32 : i32
    %351 = tpu.dynamic_rotate %340 by %c32_i32 dim 1 : vector<2x256xf32>, i32 -> vector<2x256xf32>
    %352 = vector.broadcast %33 : vector<1x256xf32> to vector<2x256xf32>
    %353 = arith.mulf %352, %351 : vector<2x256xf32>
    %c16_i32_148 = arith.constant 16 : i32
    %354 = tpu.dynamic_rotate %340 by %c16_i32_148 dim 1 : vector<2x256xf32>, i32 -> vector<2x256xf32>
    %355 = vector.broadcast %45 : vector<1x256xf32> to vector<2x256xf32>
    %356 = arith.mulf %355, %354 : vector<2x256xf32>
    %c0_i32_149 = arith.constant 0 : i32
    %357 = tpu.dynamic_rotate %340 by %c0_i32_149 dim 1 : vector<2x256xf32>, i32 -> vector<2x256xf32>
    %358 = vector.broadcast %57 : vector<1x256xf32> to vector<2x256xf32>
    %359 = arith.mulf %358, %357 : vector<2x256xf32>
    %c240_i32_150 = arith.constant 240 : i32
    %360 = tpu.dynamic_rotate %340 by %c240_i32_150 dim 1 : vector<2x256xf32>, i32 -> vector<2x256xf32>
    %361 = vector.broadcast %69 : vector<1x256xf32> to vector<2x256xf32>
    %362 = arith.mulf %361, %360 : vector<2x256xf32>
    %c224_i32 = arith.constant 224 : i32
    %363 = tpu.dynamic_rotate %340 by %c224_i32 dim 1 : vector<2x256xf32>, i32 -> vector<2x256xf32>
    %364 = vector.broadcast %81 : vector<1x256xf32> to vector<2x256xf32>
    %365 = arith.mulf %364, %363 : vector<2x256xf32>
    %c208_i32 = arith.constant 208 : i32
    %366 = tpu.dynamic_rotate %340 by %c208_i32 dim 1 : vector<2x256xf32>, i32 -> vector<2x256xf32>
    %367 = vector.broadcast %93 : vector<1x256xf32> to vector<2x256xf32>
    %368 = arith.mulf %367, %366 : vector<2x256xf32>
    %c48_i32_151 = arith.constant 48 : i32
    %369 = tpu.dynamic_rotate %347 by %c48_i32_151 dim 1 : vector<2x256xf32>, i32 -> vector<2x256xf32>
    %370 = vector.broadcast %21 : vector<1x256xf32> to vector<2x256xf32>
    %371 = arith.mulf %370, %369 : vector<2x256xf32>
    %c32_i32_152 = arith.constant 32 : i32
    %372 = tpu.dynamic_rotate %347 by %c32_i32_152 dim 1 : vector<2x256xf32>, i32 -> vector<2x256xf32>
    %373 = vector.broadcast %33 : vector<1x256xf32> to vector<2x256xf32>
    %374 = arith.mulf %373, %372 : vector<2x256xf32>
    %c16_i32_153 = arith.constant 16 : i32
    %375 = tpu.dynamic_rotate %347 by %c16_i32_153 dim 1 : vector<2x256xf32>, i32 -> vector<2x256xf32>
    %376 = vector.broadcast %45 : vector<1x256xf32> to vector<2x256xf32>
    %377 = arith.mulf %376, %375 : vector<2x256xf32>
    %c0_i32_154 = arith.constant 0 : i32
    %378 = tpu.dynamic_rotate %347 by %c0_i32_154 dim 1 : vector<2x256xf32>, i32 -> vector<2x256xf32>
    %379 = vector.broadcast %57 : vector<1x256xf32> to vector<2x256xf32>
    %380 = arith.mulf %379, %378 : vector<2x256xf32>
    %c240_i32_155 = arith.constant 240 : i32
    %381 = tpu.dynamic_rotate %347 by %c240_i32_155 dim 1 : vector<2x256xf32>, i32 -> vector<2x256xf32>
    %382 = vector.broadcast %69 : vector<1x256xf32> to vector<2x256xf32>
    %383 = arith.mulf %382, %381 : vector<2x256xf32>
    %c224_i32_156 = arith.constant 224 : i32
    %384 = tpu.dynamic_rotate %347 by %c224_i32_156 dim 1 : vector<2x256xf32>, i32 -> vector<2x256xf32>
    %385 = vector.broadcast %81 : vector<1x256xf32> to vector<2x256xf32>
    %386 = arith.mulf %385, %384 : vector<2x256xf32>
    %c208_i32_157 = arith.constant 208 : i32
    %387 = tpu.dynamic_rotate %347 by %c208_i32_157 dim 1 : vector<2x256xf32>, i32 -> vector<2x256xf32>
    %388 = vector.broadcast %93 : vector<1x256xf32> to vector<2x256xf32>
    %389 = arith.mulf %388, %387 : vector<2x256xf32>
    %cst_158 = arith.constant 0.000000e+00 : f32
    %390 = vector.broadcast %cst_158 : f32 to vector<2x256xf32>
    %cst_159 = arith.constant 0.000000e+00 : f32
    %391 = vector.broadcast %cst_159 : f32 to vector<2x256xf32>
    %c0_160 = arith.constant 0 : index
    %c0_161 = arith.constant 0 : index
    %392 = memref.load %arg3[%c0_160, %c0_161] : memref<2x50xf32, #tpu.memory_space<smem>>
    %c3_i32 = arith.constant 3 : i32
    %393 = tpu.dynamic_rotate %350 by %c3_i32 dim 1 : vector<2x256xf32>, i32 -> vector<2x256xf32>
    %394 = vector.broadcast %392 : f32 to vector<2x256xf32>
    %395 = arith.mulf %394, %393 : vector<2x256xf32>
    %396 = arith.addf %391, %395 : vector<2x256xf32>
    %c1_162 = arith.constant 1 : index
    %c0_163 = arith.constant 0 : index
    %397 = memref.load %arg3[%c1_162, %c0_163] : memref<2x50xf32, #tpu.memory_space<smem>>
    %c3_i32_164 = arith.constant 3 : i32
    %398 = tpu.dynamic_rotate %371 by %c3_i32_164 dim 1 : vector<2x256xf32>, i32 -> vector<2x256xf32>
    %399 = vector.broadcast %397 : f32 to vector<2x256xf32>
    %400 = arith.mulf %399, %398 : vector<2x256xf32>
    %401 = arith.addf %396, %400 : vector<2x256xf32>
    %c0_165 = arith.constant 0 : index
    %c7_166 = arith.constant 7 : index
    %402 = memref.load %arg3[%c0_165, %c7_166] : memref<2x50xf32, #tpu.memory_space<smem>>
    %c3_i32_167 = arith.constant 3 : i32
    %403 = tpu.dynamic_rotate %353 by %c3_i32_167 dim 1 : vector<2x256xf32>, i32 -> vector<2x256xf32>
    %404 = vector.broadcast %402 : f32 to vector<2x256xf32>
    %405 = arith.mulf %404, %403 : vector<2x256xf32>
    %406 = arith.addf %401, %405 : vector<2x256xf32>
    %c1_168 = arith.constant 1 : index
    %c7_169 = arith.constant 7 : index
    %407 = memref.load %arg3[%c1_168, %c7_169] : memref<2x50xf32, #tpu.memory_space<smem>>
    %c3_i32_170 = arith.constant 3 : i32
    %408 = tpu.dynamic_rotate %374 by %c3_i32_170 dim 1 : vector<2x256xf32>, i32 -> vector<2x256xf32>
    %409 = vector.broadcast %407 : f32 to vector<2x256xf32>
    %410 = arith.mulf %409, %408 : vector<2x256xf32>
    %411 = arith.addf %406, %410 : vector<2x256xf32>
    %c0_171 = arith.constant 0 : index
    %c14 = arith.constant 14 : index
    %412 = memref.load %arg3[%c0_171, %c14] : memref<2x50xf32, #tpu.memory_space<smem>>
    %c3_i32_172 = arith.constant 3 : i32
    %413 = tpu.dynamic_rotate %356 by %c3_i32_172 dim 1 : vector<2x256xf32>, i32 -> vector<2x256xf32>
    %414 = vector.broadcast %412 : f32 to vector<2x256xf32>
    %415 = arith.mulf %414, %413 : vector<2x256xf32>
    %416 = arith.addf %411, %415 : vector<2x256xf32>
    %c1_173 = arith.constant 1 : index
    %c14_174 = arith.constant 14 : index
    %417 = memref.load %arg3[%c1_173, %c14_174] : memref<2x50xf32, #tpu.memory_space<smem>>
    %c3_i32_175 = arith.constant 3 : i32
    %418 = tpu.dynamic_rotate %377 by %c3_i32_175 dim 1 : vector<2x256xf32>, i32 -> vector<2x256xf32>
    %419 = vector.broadcast %417 : f32 to vector<2x256xf32>
    %420 = arith.mulf %419, %418 : vector<2x256xf32>
    %421 = arith.addf %416, %420 : vector<2x256xf32>
    %c0_176 = arith.constant 0 : index
    %c21 = arith.constant 21 : index
    %422 = memref.load %arg3[%c0_176, %c21] : memref<2x50xf32, #tpu.memory_space<smem>>
    %c3_i32_177 = arith.constant 3 : i32
    %423 = tpu.dynamic_rotate %359 by %c3_i32_177 dim 1 : vector<2x256xf32>, i32 -> vector<2x256xf32>
    %424 = vector.broadcast %422 : f32 to vector<2x256xf32>
    %425 = arith.mulf %424, %423 : vector<2x256xf32>
    %426 = arith.addf %421, %425 : vector<2x256xf32>
    %c1_178 = arith.constant 1 : index
    %c21_179 = arith.constant 21 : index
    %427 = memref.load %arg3[%c1_178, %c21_179] : memref<2x50xf32, #tpu.memory_space<smem>>
    %c3_i32_180 = arith.constant 3 : i32
    %428 = tpu.dynamic_rotate %380 by %c3_i32_180 dim 1 : vector<2x256xf32>, i32 -> vector<2x256xf32>
    %429 = vector.broadcast %427 : f32 to vector<2x256xf32>
    %430 = arith.mulf %429, %428 : vector<2x256xf32>
    %431 = arith.addf %426, %430 : vector<2x256xf32>
    %c0_181 = arith.constant 0 : index
    %c28 = arith.constant 28 : index
    %432 = memref.load %arg3[%c0_181, %c28] : memref<2x50xf32, #tpu.memory_space<smem>>
    %c3_i32_182 = arith.constant 3 : i32
    %433 = tpu.dynamic_rotate %362 by %c3_i32_182 dim 1 : vector<2x256xf32>, i32 -> vector<2x256xf32>
    %434 = vector.broadcast %432 : f32 to vector<2x256xf32>
    %435 = arith.mulf %434, %433 : vector<2x256xf32>
    %436 = arith.addf %431, %435 : vector<2x256xf32>
    %c1_183 = arith.constant 1 : index
    %c28_184 = arith.constant 28 : index
    %437 = memref.load %arg3[%c1_183, %c28_184] : memref<2x50xf32, #tpu.memory_space<smem>>
    %c3_i32_185 = arith.constant 3 : i32
    %438 = tpu.dynamic_rotate %383 by %c3_i32_185 dim 1 : vector<2x256xf32>, i32 -> vector<2x256xf32>
    %439 = vector.broadcast %437 : f32 to vector<2x256xf32>
    %440 = arith.mulf %439, %438 : vector<2x256xf32>
    %441 = arith.addf %436, %440 : vector<2x256xf32>
    %c0_186 = arith.constant 0 : index
    %c35 = arith.constant 35 : index
    %442 = memref.load %arg3[%c0_186, %c35] : memref<2x50xf32, #tpu.memory_space<smem>>
    %c3_i32_187 = arith.constant 3 : i32
    %443 = tpu.dynamic_rotate %365 by %c3_i32_187 dim 1 : vector<2x256xf32>, i32 -> vector<2x256xf32>
    %444 = vector.broadcast %442 : f32 to vector<2x256xf32>
    %445 = arith.mulf %444, %443 : vector<2x256xf32>
    %446 = arith.addf %441, %445 : vector<2x256xf32>
    %c1_188 = arith.constant 1 : index
    %c35_189 = arith.constant 35 : index
    %447 = memref.load %arg3[%c1_188, %c35_189] : memref<2x50xf32, #tpu.memory_space<smem>>
    %c3_i32_190 = arith.constant 3 : i32
    %448 = tpu.dynamic_rotate %386 by %c3_i32_190 dim 1 : vector<2x256xf32>, i32 -> vector<2x256xf32>
    %449 = vector.broadcast %447 : f32 to vector<2x256xf32>
    %450 = arith.mulf %449, %448 : vector<2x256xf32>
    %451 = arith.addf %446, %450 : vector<2x256xf32>
    %c0_191 = arith.constant 0 : index
    %c42 = arith.constant 42 : index
    %452 = memref.load %arg3[%c0_191, %c42] : memref<2x50xf32, #tpu.memory_space<smem>>
    %c3_i32_192 = arith.constant 3 : i32
    %453 = tpu.dynamic_rotate %368 by %c3_i32_192 dim 1 : vector<2x256xf32>, i32 -> vector<2x256xf32>
    %454 = vector.broadcast %452 : f32 to vector<2x256xf32>
    %455 = arith.mulf %454, %453 : vector<2x256xf32>
    %456 = arith.addf %451, %455 : vector<2x256xf32>
    %c1_193 = arith.constant 1 : index
    %c42_194 = arith.constant 42 : index
    %457 = memref.load %arg3[%c1_193, %c42_194] : memref<2x50xf32, #tpu.memory_space<smem>>
    %c3_i32_195 = arith.constant 3 : i32
    %458 = tpu.dynamic_rotate %389 by %c3_i32_195 dim 1 : vector<2x256xf32>, i32 -> vector<2x256xf32>
    %459 = vector.broadcast %457 : f32 to vector<2x256xf32>
    %460 = arith.mulf %459, %458 : vector<2x256xf32>
    %461 = arith.addf %456, %460 : vector<2x256xf32>
    %462 = vector.broadcast %105 : vector<1x256xf32> to vector<2x256xf32>
    %463 = arith.mulf %462, %461 : vector<2x256xf32>
    %464 = arith.addf %390, %463 : vector<2x256xf32>
    %cst_196 = arith.constant 0.000000e+00 : f32
    %465 = vector.broadcast %cst_196 : f32 to vector<2x256xf32>
    %c0_197 = arith.constant 0 : index
    %c1_198 = arith.constant 1 : index
    %466 = memref.load %arg3[%c0_197, %c1_198] : memref<2x50xf32, #tpu.memory_space<smem>>
    %c2_i32 = arith.constant 2 : i32
    %467 = tpu.dynamic_rotate %350 by %c2_i32 dim 1 : vector<2x256xf32>, i32 -> vector<2x256xf32>
    %468 = vector.broadcast %466 : f32 to vector<2x256xf32>
    %469 = arith.mulf %468, %467 : vector<2x256xf32>
    %470 = arith.addf %465, %469 : vector<2x256xf32>
    %c1_199 = arith.constant 1 : index
    %c1_200 = arith.constant 1 : index
    %471 = memref.load %arg3[%c1_199, %c1_200] : memref<2x50xf32, #tpu.memory_space<smem>>
    %c2_i32_201 = arith.constant 2 : i32
    %472 = tpu.dynamic_rotate %371 by %c2_i32_201 dim 1 : vector<2x256xf32>, i32 -> vector<2x256xf32>
    %473 = vector.broadcast %471 : f32 to vector<2x256xf32>
    %474 = arith.mulf %473, %472 : vector<2x256xf32>
    %475 = arith.addf %470, %474 : vector<2x256xf32>
    %c0_202 = arith.constant 0 : index
    %c8_203 = arith.constant 8 : index
    %476 = memref.load %arg3[%c0_202, %c8_203] : memref<2x50xf32, #tpu.memory_space<smem>>
    %c2_i32_204 = arith.constant 2 : i32
    %477 = tpu.dynamic_rotate %353 by %c2_i32_204 dim 1 : vector<2x256xf32>, i32 -> vector<2x256xf32>
    %478 = vector.broadcast %476 : f32 to vector<2x256xf32>
    %479 = arith.mulf %478, %477 : vector<2x256xf32>
    %480 = arith.addf %475, %479 : vector<2x256xf32>
    %c1_205 = arith.constant 1 : index
    %c8_206 = arith.constant 8 : index
    %481 = memref.load %arg3[%c1_205, %c8_206] : memref<2x50xf32, #tpu.memory_space<smem>>
    %c2_i32_207 = arith.constant 2 : i32
    %482 = tpu.dynamic_rotate %374 by %c2_i32_207 dim 1 : vector<2x256xf32>, i32 -> vector<2x256xf32>
    %483 = vector.broadcast %481 : f32 to vector<2x256xf32>
    %484 = arith.mulf %483, %482 : vector<2x256xf32>
    %485 = arith.addf %480, %484 : vector<2x256xf32>
    %c0_208 = arith.constant 0 : index
    %c15 = arith.constant 15 : index
    %486 = memref.load %arg3[%c0_208, %c15] : memref<2x50xf32, #tpu.memory_space<smem>>
    %c2_i32_209 = arith.constant 2 : i32
    %487 = tpu.dynamic_rotate %356 by %c2_i32_209 dim 1 : vector<2x256xf32>, i32 -> vector<2x256xf32>
    %488 = vector.broadcast %486 : f32 to vector<2x256xf32>
    %489 = arith.mulf %488, %487 : vector<2x256xf32>
    %490 = arith.addf %485, %489 : vector<2x256xf32>
    %c1_210 = arith.constant 1 : index
    %c15_211 = arith.constant 15 : index
    %491 = memref.load %arg3[%c1_210, %c15_211] : memref<2x50xf32, #tpu.memory_space<smem>>
    %c2_i32_212 = arith.constant 2 : i32
    %492 = tpu.dynamic_rotate %377 by %c2_i32_212 dim 1 : vector<2x256xf32>, i32 -> vector<2x256xf32>
    %493 = vector.broadcast %491 : f32 to vector<2x256xf32>
    %494 = arith.mulf %493, %492 : vector<2x256xf32>
    %495 = arith.addf %490, %494 : vector<2x256xf32>
    %c0_213 = arith.constant 0 : index
    %c22 = arith.constant 22 : index
    %496 = memref.load %arg3[%c0_213, %c22] : memref<2x50xf32, #tpu.memory_space<smem>>
    %c2_i32_214 = arith.constant 2 : i32
    %497 = tpu.dynamic_rotate %359 by %c2_i32_214 dim 1 : vector<2x256xf32>, i32 -> vector<2x256xf32>
    %498 = vector.broadcast %496 : f32 to vector<2x256xf32>
    %499 = arith.mulf %498, %497 : vector<2x256xf32>
    %500 = arith.addf %495, %499 : vector<2x256xf32>
    %c1_215 = arith.constant 1 : index
    %c22_216 = arith.constant 22 : index
    %501 = memref.load %arg3[%c1_215, %c22_216] : memref<2x50xf32, #tpu.memory_space<smem>>
    %c2_i32_217 = arith.constant 2 : i32
    %502 = tpu.dynamic_rotate %380 by %c2_i32_217 dim 1 : vector<2x256xf32>, i32 -> vector<2x256xf32>
    %503 = vector.broadcast %501 : f32 to vector<2x256xf32>
    %504 = arith.mulf %503, %502 : vector<2x256xf32>
    %505 = arith.addf %500, %504 : vector<2x256xf32>
    %c0_218 = arith.constant 0 : index
    %c29 = arith.constant 29 : index
    %506 = memref.load %arg3[%c0_218, %c29] : memref<2x50xf32, #tpu.memory_space<smem>>
    %c2_i32_219 = arith.constant 2 : i32
    %507 = tpu.dynamic_rotate %362 by %c2_i32_219 dim 1 : vector<2x256xf32>, i32 -> vector<2x256xf32>
    %508 = vector.broadcast %506 : f32 to vector<2x256xf32>
    %509 = arith.mulf %508, %507 : vector<2x256xf32>
    %510 = arith.addf %505, %509 : vector<2x256xf32>
    %c1_220 = arith.constant 1 : index
    %c29_221 = arith.constant 29 : index
    %511 = memref.load %arg3[%c1_220, %c29_221] : memref<2x50xf32, #tpu.memory_space<smem>>
    %c2_i32_222 = arith.constant 2 : i32
    %512 = tpu.dynamic_rotate %383 by %c2_i32_222 dim 1 : vector<2x256xf32>, i32 -> vector<2x256xf32>
    %513 = vector.broadcast %511 : f32 to vector<2x256xf32>
    %514 = arith.mulf %513, %512 : vector<2x256xf32>
    %515 = arith.addf %510, %514 : vector<2x256xf32>
    %c0_223 = arith.constant 0 : index
    %c36 = arith.constant 36 : index
    %516 = memref.load %arg3[%c0_223, %c36] : memref<2x50xf32, #tpu.memory_space<smem>>
    %c2_i32_224 = arith.constant 2 : i32
    %517 = tpu.dynamic_rotate %365 by %c2_i32_224 dim 1 : vector<2x256xf32>, i32 -> vector<2x256xf32>
    %518 = vector.broadcast %516 : f32 to vector<2x256xf32>
    %519 = arith.mulf %518, %517 : vector<2x256xf32>
    %520 = arith.addf %515, %519 : vector<2x256xf32>
    %c1_225 = arith.constant 1 : index
    %c36_226 = arith.constant 36 : index
    %521 = memref.load %arg3[%c1_225, %c36_226] : memref<2x50xf32, #tpu.memory_space<smem>>
    %c2_i32_227 = arith.constant 2 : i32
    %522 = tpu.dynamic_rotate %386 by %c2_i32_227 dim 1 : vector<2x256xf32>, i32 -> vector<2x256xf32>
    %523 = vector.broadcast %521 : f32 to vector<2x256xf32>
    %524 = arith.mulf %523, %522 : vector<2x256xf32>
    %525 = arith.addf %520, %524 : vector<2x256xf32>
    %c0_228 = arith.constant 0 : index
    %c43 = arith.constant 43 : index
    %526 = memref.load %arg3[%c0_228, %c43] : memref<2x50xf32, #tpu.memory_space<smem>>
    %c2_i32_229 = arith.constant 2 : i32
    %527 = tpu.dynamic_rotate %368 by %c2_i32_229 dim 1 : vector<2x256xf32>, i32 -> vector<2x256xf32>
    %528 = vector.broadcast %526 : f32 to vector<2x256xf32>
    %529 = arith.mulf %528, %527 : vector<2x256xf32>
    %530 = arith.addf %525, %529 : vector<2x256xf32>
    %c1_230 = arith.constant 1 : index
    %c43_231 = arith.constant 43 : index
    %531 = memref.load %arg3[%c1_230, %c43_231] : memref<2x50xf32, #tpu.memory_space<smem>>
    %c2_i32_232 = arith.constant 2 : i32
    %532 = tpu.dynamic_rotate %389 by %c2_i32_232 dim 1 : vector<2x256xf32>, i32 -> vector<2x256xf32>
    %533 = vector.broadcast %531 : f32 to vector<2x256xf32>
    %534 = arith.mulf %533, %532 : vector<2x256xf32>
    %535 = arith.addf %530, %534 : vector<2x256xf32>
    %536 = vector.broadcast %117 : vector<1x256xf32> to vector<2x256xf32>
    %537 = arith.mulf %536, %535 : vector<2x256xf32>
    %538 = arith.addf %464, %537 : vector<2x256xf32>
    %cst_233 = arith.constant 0.000000e+00 : f32
    %539 = vector.broadcast %cst_233 : f32 to vector<2x256xf32>
    %c0_234 = arith.constant 0 : index
    %c2_235 = arith.constant 2 : index
    %540 = memref.load %arg3[%c0_234, %c2_235] : memref<2x50xf32, #tpu.memory_space<smem>>
    %c1_i32_236 = arith.constant 1 : i32
    %541 = tpu.dynamic_rotate %350 by %c1_i32_236 dim 1 : vector<2x256xf32>, i32 -> vector<2x256xf32>
    %542 = vector.broadcast %540 : f32 to vector<2x256xf32>
    %543 = arith.mulf %542, %541 : vector<2x256xf32>
    %544 = arith.addf %539, %543 : vector<2x256xf32>
    %c1_237 = arith.constant 1 : index
    %c2_238 = arith.constant 2 : index
    %545 = memref.load %arg3[%c1_237, %c2_238] : memref<2x50xf32, #tpu.memory_space<smem>>
    %c1_i32_239 = arith.constant 1 : i32
    %546 = tpu.dynamic_rotate %371 by %c1_i32_239 dim 1 : vector<2x256xf32>, i32 -> vector<2x256xf32>
    %547 = vector.broadcast %545 : f32 to vector<2x256xf32>
    %548 = arith.mulf %547, %546 : vector<2x256xf32>
    %549 = arith.addf %544, %548 : vector<2x256xf32>
    %c0_240 = arith.constant 0 : index
    %c9 = arith.constant 9 : index
    %550 = memref.load %arg3[%c0_240, %c9] : memref<2x50xf32, #tpu.memory_space<smem>>
    %c1_i32_241 = arith.constant 1 : i32
    %551 = tpu.dynamic_rotate %353 by %c1_i32_241 dim 1 : vector<2x256xf32>, i32 -> vector<2x256xf32>
    %552 = vector.broadcast %550 : f32 to vector<2x256xf32>
    %553 = arith.mulf %552, %551 : vector<2x256xf32>
    %554 = arith.addf %549, %553 : vector<2x256xf32>
    %c1_242 = arith.constant 1 : index
    %c9_243 = arith.constant 9 : index
    %555 = memref.load %arg3[%c1_242, %c9_243] : memref<2x50xf32, #tpu.memory_space<smem>>
    %c1_i32_244 = arith.constant 1 : i32
    %556 = tpu.dynamic_rotate %374 by %c1_i32_244 dim 1 : vector<2x256xf32>, i32 -> vector<2x256xf32>
    %557 = vector.broadcast %555 : f32 to vector<2x256xf32>
    %558 = arith.mulf %557, %556 : vector<2x256xf32>
    %559 = arith.addf %554, %558 : vector<2x256xf32>
    %c0_245 = arith.constant 0 : index
    %c16 = arith.constant 16 : index
    %560 = memref.load %arg3[%c0_245, %c16] : memref<2x50xf32, #tpu.memory_space<smem>>
    %c1_i32_246 = arith.constant 1 : i32
    %561 = tpu.dynamic_rotate %356 by %c1_i32_246 dim 1 : vector<2x256xf32>, i32 -> vector<2x256xf32>
    %562 = vector.broadcast %560 : f32 to vector<2x256xf32>
    %563 = arith.mulf %562, %561 : vector<2x256xf32>
    %564 = arith.addf %559, %563 : vector<2x256xf32>
    %c1_247 = arith.constant 1 : index
    %c16_248 = arith.constant 16 : index
    %565 = memref.load %arg3[%c1_247, %c16_248] : memref<2x50xf32, #tpu.memory_space<smem>>
    %c1_i32_249 = arith.constant 1 : i32
    %566 = tpu.dynamic_rotate %377 by %c1_i32_249 dim 1 : vector<2x256xf32>, i32 -> vector<2x256xf32>
    %567 = vector.broadcast %565 : f32 to vector<2x256xf32>
    %568 = arith.mulf %567, %566 : vector<2x256xf32>
    %569 = arith.addf %564, %568 : vector<2x256xf32>
    %c0_250 = arith.constant 0 : index
    %c23 = arith.constant 23 : index
    %570 = memref.load %arg3[%c0_250, %c23] : memref<2x50xf32, #tpu.memory_space<smem>>
    %c1_i32_251 = arith.constant 1 : i32
    %571 = tpu.dynamic_rotate %359 by %c1_i32_251 dim 1 : vector<2x256xf32>, i32 -> vector<2x256xf32>
    %572 = vector.broadcast %570 : f32 to vector<2x256xf32>
    %573 = arith.mulf %572, %571 : vector<2x256xf32>
    %574 = arith.addf %569, %573 : vector<2x256xf32>
    %c1_252 = arith.constant 1 : index
    %c23_253 = arith.constant 23 : index
    %575 = memref.load %arg3[%c1_252, %c23_253] : memref<2x50xf32, #tpu.memory_space<smem>>
    %c1_i32_254 = arith.constant 1 : i32
    %576 = tpu.dynamic_rotate %380 by %c1_i32_254 dim 1 : vector<2x256xf32>, i32 -> vector<2x256xf32>
    %577 = vector.broadcast %575 : f32 to vector<2x256xf32>
    %578 = arith.mulf %577, %576 : vector<2x256xf32>
    %579 = arith.addf %574, %578 : vector<2x256xf32>
    %c0_255 = arith.constant 0 : index
    %c30 = arith.constant 30 : index
    %580 = memref.load %arg3[%c0_255, %c30] : memref<2x50xf32, #tpu.memory_space<smem>>
    %c1_i32_256 = arith.constant 1 : i32
    %581 = tpu.dynamic_rotate %362 by %c1_i32_256 dim 1 : vector<2x256xf32>, i32 -> vector<2x256xf32>
    %582 = vector.broadcast %580 : f32 to vector<2x256xf32>
    %583 = arith.mulf %582, %581 : vector<2x256xf32>
    %584 = arith.addf %579, %583 : vector<2x256xf32>
    %c1_257 = arith.constant 1 : index
    %c30_258 = arith.constant 30 : index
    %585 = memref.load %arg3[%c1_257, %c30_258] : memref<2x50xf32, #tpu.memory_space<smem>>
    %c1_i32_259 = arith.constant 1 : i32
    %586 = tpu.dynamic_rotate %383 by %c1_i32_259 dim 1 : vector<2x256xf32>, i32 -> vector<2x256xf32>
    %587 = vector.broadcast %585 : f32 to vector<2x256xf32>
    %588 = arith.mulf %587, %586 : vector<2x256xf32>
    %589 = arith.addf %584, %588 : vector<2x256xf32>
    %c0_260 = arith.constant 0 : index
    %c37 = arith.constant 37 : index
    %590 = memref.load %arg3[%c0_260, %c37] : memref<2x50xf32, #tpu.memory_space<smem>>
    %c1_i32_261 = arith.constant 1 : i32
    %591 = tpu.dynamic_rotate %365 by %c1_i32_261 dim 1 : vector<2x256xf32>, i32 -> vector<2x256xf32>
    %592 = vector.broadcast %590 : f32 to vector<2x256xf32>
    %593 = arith.mulf %592, %591 : vector<2x256xf32>
    %594 = arith.addf %589, %593 : vector<2x256xf32>
    %c1_262 = arith.constant 1 : index
    %c37_263 = arith.constant 37 : index
    %595 = memref.load %arg3[%c1_262, %c37_263] : memref<2x50xf32, #tpu.memory_space<smem>>
    %c1_i32_264 = arith.constant 1 : i32
    %596 = tpu.dynamic_rotate %386 by %c1_i32_264 dim 1 : vector<2x256xf32>, i32 -> vector<2x256xf32>
    %597 = vector.broadcast %595 : f32 to vector<2x256xf32>
    %598 = arith.mulf %597, %596 : vector<2x256xf32>
    %599 = arith.addf %594, %598 : vector<2x256xf32>
    %c0_265 = arith.constant 0 : index
    %c44 = arith.constant 44 : index
    %600 = memref.load %arg3[%c0_265, %c44] : memref<2x50xf32, #tpu.memory_space<smem>>
    %c1_i32_266 = arith.constant 1 : i32
    %601 = tpu.dynamic_rotate %368 by %c1_i32_266 dim 1 : vector<2x256xf32>, i32 -> vector<2x256xf32>
    %602 = vector.broadcast %600 : f32 to vector<2x256xf32>
    %603 = arith.mulf %602, %601 : vector<2x256xf32>
    %604 = arith.addf %599, %603 : vector<2x256xf32>
    %c1_267 = arith.constant 1 : index
    %c44_268 = arith.constant 44 : index
    %605 = memref.load %arg3[%c1_267, %c44_268] : memref<2x50xf32, #tpu.memory_space<smem>>
    %c1_i32_269 = arith.constant 1 : i32
    %606 = tpu.dynamic_rotate %389 by %c1_i32_269 dim 1 : vector<2x256xf32>, i32 -> vector<2x256xf32>
    %607 = vector.broadcast %605 : f32 to vector<2x256xf32>
    %608 = arith.mulf %607, %606 : vector<2x256xf32>
    %609 = arith.addf %604, %608 : vector<2x256xf32>
    %610 = vector.broadcast %129 : vector<1x256xf32> to vector<2x256xf32>
    %611 = arith.mulf %610, %609 : vector<2x256xf32>
    %612 = arith.addf %538, %611 : vector<2x256xf32>
    %cst_270 = arith.constant 0.000000e+00 : f32
    %613 = vector.broadcast %cst_270 : f32 to vector<2x256xf32>
    %c0_271 = arith.constant 0 : index
    %c3_272 = arith.constant 3 : index
    %614 = memref.load %arg3[%c0_271, %c3_272] : memref<2x50xf32, #tpu.memory_space<smem>>
    %c0_i32_273 = arith.constant 0 : i32
    %615 = tpu.dynamic_rotate %350 by %c0_i32_273 dim 1 : vector<2x256xf32>, i32 -> vector<2x256xf32>
    %616 = vector.broadcast %614 : f32 to vector<2x256xf32>
    %617 = arith.mulf %616, %615 : vector<2x256xf32>
    %618 = arith.addf %613, %617 : vector<2x256xf32>
    %c1_274 = arith.constant 1 : index
    %c3_275 = arith.constant 3 : index
    %619 = memref.load %arg3[%c1_274, %c3_275] : memref<2x50xf32, #tpu.memory_space<smem>>
    %c0_i32_276 = arith.constant 0 : i32
    %620 = tpu.dynamic_rotate %371 by %c0_i32_276 dim 1 : vector<2x256xf32>, i32 -> vector<2x256xf32>
    %621 = vector.broadcast %619 : f32 to vector<2x256xf32>
    %622 = arith.mulf %621, %620 : vector<2x256xf32>
    %623 = arith.addf %618, %622 : vector<2x256xf32>
    %c0_277 = arith.constant 0 : index
    %c10 = arith.constant 10 : index
    %624 = memref.load %arg3[%c0_277, %c10] : memref<2x50xf32, #tpu.memory_space<smem>>
    %c0_i32_278 = arith.constant 0 : i32
    %625 = tpu.dynamic_rotate %353 by %c0_i32_278 dim 1 : vector<2x256xf32>, i32 -> vector<2x256xf32>
    %626 = vector.broadcast %624 : f32 to vector<2x256xf32>
    %627 = arith.mulf %626, %625 : vector<2x256xf32>
    %628 = arith.addf %623, %627 : vector<2x256xf32>
    %c1_279 = arith.constant 1 : index
    %c10_280 = arith.constant 10 : index
    %629 = memref.load %arg3[%c1_279, %c10_280] : memref<2x50xf32, #tpu.memory_space<smem>>
    %c0_i32_281 = arith.constant 0 : i32
    %630 = tpu.dynamic_rotate %374 by %c0_i32_281 dim 1 : vector<2x256xf32>, i32 -> vector<2x256xf32>
    %631 = vector.broadcast %629 : f32 to vector<2x256xf32>
    %632 = arith.mulf %631, %630 : vector<2x256xf32>
    %633 = arith.addf %628, %632 : vector<2x256xf32>
    %c0_282 = arith.constant 0 : index
    %c17 = arith.constant 17 : index
    %634 = memref.load %arg3[%c0_282, %c17] : memref<2x50xf32, #tpu.memory_space<smem>>
    %c0_i32_283 = arith.constant 0 : i32
    %635 = tpu.dynamic_rotate %356 by %c0_i32_283 dim 1 : vector<2x256xf32>, i32 -> vector<2x256xf32>
    %636 = vector.broadcast %634 : f32 to vector<2x256xf32>
    %637 = arith.mulf %636, %635 : vector<2x256xf32>
    %638 = arith.addf %633, %637 : vector<2x256xf32>
    %c1_284 = arith.constant 1 : index
    %c17_285 = arith.constant 17 : index
    %639 = memref.load %arg3[%c1_284, %c17_285] : memref<2x50xf32, #tpu.memory_space<smem>>
    %c0_i32_286 = arith.constant 0 : i32
    %640 = tpu.dynamic_rotate %377 by %c0_i32_286 dim 1 : vector<2x256xf32>, i32 -> vector<2x256xf32>
    %641 = vector.broadcast %639 : f32 to vector<2x256xf32>
    %642 = arith.mulf %641, %640 : vector<2x256xf32>
    %643 = arith.addf %638, %642 : vector<2x256xf32>
    %c0_287 = arith.constant 0 : index
    %c24 = arith.constant 24 : index
    %644 = memref.load %arg3[%c0_287, %c24] : memref<2x50xf32, #tpu.memory_space<smem>>
    %c0_i32_288 = arith.constant 0 : i32
    %645 = tpu.dynamic_rotate %359 by %c0_i32_288 dim 1 : vector<2x256xf32>, i32 -> vector<2x256xf32>
    %646 = vector.broadcast %644 : f32 to vector<2x256xf32>
    %647 = arith.mulf %646, %645 : vector<2x256xf32>
    %648 = arith.addf %643, %647 : vector<2x256xf32>
    %c1_289 = arith.constant 1 : index
    %c24_290 = arith.constant 24 : index
    %649 = memref.load %arg3[%c1_289, %c24_290] : memref<2x50xf32, #tpu.memory_space<smem>>
    %c0_i32_291 = arith.constant 0 : i32
    %650 = tpu.dynamic_rotate %380 by %c0_i32_291 dim 1 : vector<2x256xf32>, i32 -> vector<2x256xf32>
    %651 = vector.broadcast %649 : f32 to vector<2x256xf32>
    %652 = arith.mulf %651, %650 : vector<2x256xf32>
    %653 = arith.addf %648, %652 : vector<2x256xf32>
    %c0_292 = arith.constant 0 : index
    %c31 = arith.constant 31 : index
    %654 = memref.load %arg3[%c0_292, %c31] : memref<2x50xf32, #tpu.memory_space<smem>>
    %c0_i32_293 = arith.constant 0 : i32
    %655 = tpu.dynamic_rotate %362 by %c0_i32_293 dim 1 : vector<2x256xf32>, i32 -> vector<2x256xf32>
    %656 = vector.broadcast %654 : f32 to vector<2x256xf32>
    %657 = arith.mulf %656, %655 : vector<2x256xf32>
    %658 = arith.addf %653, %657 : vector<2x256xf32>
    %c1_294 = arith.constant 1 : index
    %c31_295 = arith.constant 31 : index
    %659 = memref.load %arg3[%c1_294, %c31_295] : memref<2x50xf32, #tpu.memory_space<smem>>
    %c0_i32_296 = arith.constant 0 : i32
    %660 = tpu.dynamic_rotate %383 by %c0_i32_296 dim 1 : vector<2x256xf32>, i32 -> vector<2x256xf32>
    %661 = vector.broadcast %659 : f32 to vector<2x256xf32>
    %662 = arith.mulf %661, %660 : vector<2x256xf32>
    %663 = arith.addf %658, %662 : vector<2x256xf32>
    %c0_297 = arith.constant 0 : index
    %c38 = arith.constant 38 : index
    %664 = memref.load %arg3[%c0_297, %c38] : memref<2x50xf32, #tpu.memory_space<smem>>
    %c0_i32_298 = arith.constant 0 : i32
    %665 = tpu.dynamic_rotate %365 by %c0_i32_298 dim 1 : vector<2x256xf32>, i32 -> vector<2x256xf32>
    %666 = vector.broadcast %664 : f32 to vector<2x256xf32>
    %667 = arith.mulf %666, %665 : vector<2x256xf32>
    %668 = arith.addf %663, %667 : vector<2x256xf32>
    %c1_299 = arith.constant 1 : index
    %c38_300 = arith.constant 38 : index
    %669 = memref.load %arg3[%c1_299, %c38_300] : memref<2x50xf32, #tpu.memory_space<smem>>
    %c0_i32_301 = arith.constant 0 : i32
    %670 = tpu.dynamic_rotate %386 by %c0_i32_301 dim 1 : vector<2x256xf32>, i32 -> vector<2x256xf32>
    %671 = vector.broadcast %669 : f32 to vector<2x256xf32>
    %672 = arith.mulf %671, %670 : vector<2x256xf32>
    %673 = arith.addf %668, %672 : vector<2x256xf32>
    %c0_302 = arith.constant 0 : index
    %c45 = arith.constant 45 : index
    %674 = memref.load %arg3[%c0_302, %c45] : memref<2x50xf32, #tpu.memory_space<smem>>
    %c0_i32_303 = arith.constant 0 : i32
    %675 = tpu.dynamic_rotate %368 by %c0_i32_303 dim 1 : vector<2x256xf32>, i32 -> vector<2x256xf32>
    %676 = vector.broadcast %674 : f32 to vector<2x256xf32>
    %677 = arith.mulf %676, %675 : vector<2x256xf32>
    %678 = arith.addf %673, %677 : vector<2x256xf32>
    %c1_304 = arith.constant 1 : index
    %c45_305 = arith.constant 45 : index
    %679 = memref.load %arg3[%c1_304, %c45_305] : memref<2x50xf32, #tpu.memory_space<smem>>
    %c0_i32_306 = arith.constant 0 : i32
    %680 = tpu.dynamic_rotate %389 by %c0_i32_306 dim 1 : vector<2x256xf32>, i32 -> vector<2x256xf32>
    %681 = vector.broadcast %679 : f32 to vector<2x256xf32>
    %682 = arith.mulf %681, %680 : vector<2x256xf32>
    %683 = arith.addf %678, %682 : vector<2x256xf32>
    %684 = vector.broadcast %141 : vector<1x256xf32> to vector<2x256xf32>
    %685 = arith.mulf %684, %683 : vector<2x256xf32>
    %686 = arith.addf %612, %685 : vector<2x256xf32>
    %cst_307 = arith.constant 0.000000e+00 : f32
    %687 = vector.broadcast %cst_307 : f32 to vector<2x256xf32>
    %c0_308 = arith.constant 0 : index
    %c4_309 = arith.constant 4 : index
    %688 = memref.load %arg3[%c0_308, %c4_309] : memref<2x50xf32, #tpu.memory_space<smem>>
    %c255_i32_310 = arith.constant 255 : i32
    %689 = tpu.dynamic_rotate %350 by %c255_i32_310 dim 1 : vector<2x256xf32>, i32 -> vector<2x256xf32>
    %690 = vector.broadcast %688 : f32 to vector<2x256xf32>
    %691 = arith.mulf %690, %689 : vector<2x256xf32>
    %692 = arith.addf %687, %691 : vector<2x256xf32>
    %c1_311 = arith.constant 1 : index
    %c4_312 = arith.constant 4 : index
    %693 = memref.load %arg3[%c1_311, %c4_312] : memref<2x50xf32, #tpu.memory_space<smem>>
    %c255_i32_313 = arith.constant 255 : i32
    %694 = tpu.dynamic_rotate %371 by %c255_i32_313 dim 1 : vector<2x256xf32>, i32 -> vector<2x256xf32>
    %695 = vector.broadcast %693 : f32 to vector<2x256xf32>
    %696 = arith.mulf %695, %694 : vector<2x256xf32>
    %697 = arith.addf %692, %696 : vector<2x256xf32>
    %c0_314 = arith.constant 0 : index
    %c11 = arith.constant 11 : index
    %698 = memref.load %arg3[%c0_314, %c11] : memref<2x50xf32, #tpu.memory_space<smem>>
    %c255_i32_315 = arith.constant 255 : i32
    %699 = tpu.dynamic_rotate %353 by %c255_i32_315 dim 1 : vector<2x256xf32>, i32 -> vector<2x256xf32>
    %700 = vector.broadcast %698 : f32 to vector<2x256xf32>
    %701 = arith.mulf %700, %699 : vector<2x256xf32>
    %702 = arith.addf %697, %701 : vector<2x256xf32>
    %c1_316 = arith.constant 1 : index
    %c11_317 = arith.constant 11 : index
    %703 = memref.load %arg3[%c1_316, %c11_317] : memref<2x50xf32, #tpu.memory_space<smem>>
    %c255_i32_318 = arith.constant 255 : i32
    %704 = tpu.dynamic_rotate %374 by %c255_i32_318 dim 1 : vector<2x256xf32>, i32 -> vector<2x256xf32>
    %705 = vector.broadcast %703 : f32 to vector<2x256xf32>
    %706 = arith.mulf %705, %704 : vector<2x256xf32>
    %707 = arith.addf %702, %706 : vector<2x256xf32>
    %c0_319 = arith.constant 0 : index
    %c18 = arith.constant 18 : index
    %708 = memref.load %arg3[%c0_319, %c18] : memref<2x50xf32, #tpu.memory_space<smem>>
    %c255_i32_320 = arith.constant 255 : i32
    %709 = tpu.dynamic_rotate %356 by %c255_i32_320 dim 1 : vector<2x256xf32>, i32 -> vector<2x256xf32>
    %710 = vector.broadcast %708 : f32 to vector<2x256xf32>
    %711 = arith.mulf %710, %709 : vector<2x256xf32>
    %712 = arith.addf %707, %711 : vector<2x256xf32>
    %c1_321 = arith.constant 1 : index
    %c18_322 = arith.constant 18 : index
    %713 = memref.load %arg3[%c1_321, %c18_322] : memref<2x50xf32, #tpu.memory_space<smem>>
    %c255_i32_323 = arith.constant 255 : i32
    %714 = tpu.dynamic_rotate %377 by %c255_i32_323 dim 1 : vector<2x256xf32>, i32 -> vector<2x256xf32>
    %715 = vector.broadcast %713 : f32 to vector<2x256xf32>
    %716 = arith.mulf %715, %714 : vector<2x256xf32>
    %717 = arith.addf %712, %716 : vector<2x256xf32>
    %c0_324 = arith.constant 0 : index
    %c25 = arith.constant 25 : index
    %718 = memref.load %arg3[%c0_324, %c25] : memref<2x50xf32, #tpu.memory_space<smem>>
    %c255_i32_325 = arith.constant 255 : i32
    %719 = tpu.dynamic_rotate %359 by %c255_i32_325 dim 1 : vector<2x256xf32>, i32 -> vector<2x256xf32>
    %720 = vector.broadcast %718 : f32 to vector<2x256xf32>
    %721 = arith.mulf %720, %719 : vector<2x256xf32>
    %722 = arith.addf %717, %721 : vector<2x256xf32>
    %c1_326 = arith.constant 1 : index
    %c25_327 = arith.constant 25 : index
    %723 = memref.load %arg3[%c1_326, %c25_327] : memref<2x50xf32, #tpu.memory_space<smem>>
    %c255_i32_328 = arith.constant 255 : i32
    %724 = tpu.dynamic_rotate %380 by %c255_i32_328 dim 1 : vector<2x256xf32>, i32 -> vector<2x256xf32>
    %725 = vector.broadcast %723 : f32 to vector<2x256xf32>
    %726 = arith.mulf %725, %724 : vector<2x256xf32>
    %727 = arith.addf %722, %726 : vector<2x256xf32>
    %c0_329 = arith.constant 0 : index
    %c32 = arith.constant 32 : index
    %728 = memref.load %arg3[%c0_329, %c32] : memref<2x50xf32, #tpu.memory_space<smem>>
    %c255_i32_330 = arith.constant 255 : i32
    %729 = tpu.dynamic_rotate %362 by %c255_i32_330 dim 1 : vector<2x256xf32>, i32 -> vector<2x256xf32>
    %730 = vector.broadcast %728 : f32 to vector<2x256xf32>
    %731 = arith.mulf %730, %729 : vector<2x256xf32>
    %732 = arith.addf %727, %731 : vector<2x256xf32>
    %c1_331 = arith.constant 1 : index
    %c32_332 = arith.constant 32 : index
    %733 = memref.load %arg3[%c1_331, %c32_332] : memref<2x50xf32, #tpu.memory_space<smem>>
    %c255_i32_333 = arith.constant 255 : i32
    %734 = tpu.dynamic_rotate %383 by %c255_i32_333 dim 1 : vector<2x256xf32>, i32 -> vector<2x256xf32>
    %735 = vector.broadcast %733 : f32 to vector<2x256xf32>
    %736 = arith.mulf %735, %734 : vector<2x256xf32>
    %737 = arith.addf %732, %736 : vector<2x256xf32>
    %c0_334 = arith.constant 0 : index
    %c39 = arith.constant 39 : index
    %738 = memref.load %arg3[%c0_334, %c39] : memref<2x50xf32, #tpu.memory_space<smem>>
    %c255_i32_335 = arith.constant 255 : i32
    %739 = tpu.dynamic_rotate %365 by %c255_i32_335 dim 1 : vector<2x256xf32>, i32 -> vector<2x256xf32>
    %740 = vector.broadcast %738 : f32 to vector<2x256xf32>
    %741 = arith.mulf %740, %739 : vector<2x256xf32>
    %742 = arith.addf %737, %741 : vector<2x256xf32>
    %c1_336 = arith.constant 1 : index
    %c39_337 = arith.constant 39 : index
    %743 = memref.load %arg3[%c1_336, %c39_337] : memref<2x50xf32, #tpu.memory_space<smem>>
    %c255_i32_338 = arith.constant 255 : i32
    %744 = tpu.dynamic_rotate %386 by %c255_i32_338 dim 1 : vector<2x256xf32>, i32 -> vector<2x256xf32>
    %745 = vector.broadcast %743 : f32 to vector<2x256xf32>
    %746 = arith.mulf %745, %744 : vector<2x256xf32>
    %747 = arith.addf %742, %746 : vector<2x256xf32>
    %c0_339 = arith.constant 0 : index
    %c46 = arith.constant 46 : index
    %748 = memref.load %arg3[%c0_339, %c46] : memref<2x50xf32, #tpu.memory_space<smem>>
    %c255_i32_340 = arith.constant 255 : i32
    %749 = tpu.dynamic_rotate %368 by %c255_i32_340 dim 1 : vector<2x256xf32>, i32 -> vector<2x256xf32>
    %750 = vector.broadcast %748 : f32 to vector<2x256xf32>
    %751 = arith.mulf %750, %749 : vector<2x256xf32>
    %752 = arith.addf %747, %751 : vector<2x256xf32>
    %c1_341 = arith.constant 1 : index
    %c46_342 = arith.constant 46 : index
    %753 = memref.load %arg3[%c1_341, %c46_342] : memref<2x50xf32, #tpu.memory_space<smem>>
    %c255_i32_343 = arith.constant 255 : i32
    %754 = tpu.dynamic_rotate %389 by %c255_i32_343 dim 1 : vector<2x256xf32>, i32 -> vector<2x256xf32>
    %755 = vector.broadcast %753 : f32 to vector<2x256xf32>
    %756 = arith.mulf %755, %754 : vector<2x256xf32>
    %757 = arith.addf %752, %756 : vector<2x256xf32>
    %758 = vector.broadcast %153 : vector<1x256xf32> to vector<2x256xf32>
    %759 = arith.mulf %758, %757 : vector<2x256xf32>
    %760 = arith.addf %686, %759 : vector<2x256xf32>
    %cst_344 = arith.constant 0.000000e+00 : f32
    %761 = vector.broadcast %cst_344 : f32 to vector<2x256xf32>
    %c0_345 = arith.constant 0 : index
    %c5_346 = arith.constant 5 : index
    %762 = memref.load %arg3[%c0_345, %c5_346] : memref<2x50xf32, #tpu.memory_space<smem>>
    %c254_i32 = arith.constant 254 : i32
    %763 = tpu.dynamic_rotate %350 by %c254_i32 dim 1 : vector<2x256xf32>, i32 -> vector<2x256xf32>
    %764 = vector.broadcast %762 : f32 to vector<2x256xf32>
    %765 = arith.mulf %764, %763 : vector<2x256xf32>
    %766 = arith.addf %761, %765 : vector<2x256xf32>
    %c1_347 = arith.constant 1 : index
    %c5_348 = arith.constant 5 : index
    %767 = memref.load %arg3[%c1_347, %c5_348] : memref<2x50xf32, #tpu.memory_space<smem>>
    %c254_i32_349 = arith.constant 254 : i32
    %768 = tpu.dynamic_rotate %371 by %c254_i32_349 dim 1 : vector<2x256xf32>, i32 -> vector<2x256xf32>
    %769 = vector.broadcast %767 : f32 to vector<2x256xf32>
    %770 = arith.mulf %769, %768 : vector<2x256xf32>
    %771 = arith.addf %766, %770 : vector<2x256xf32>
    %c0_350 = arith.constant 0 : index
    %c12 = arith.constant 12 : index
    %772 = memref.load %arg3[%c0_350, %c12] : memref<2x50xf32, #tpu.memory_space<smem>>
    %c254_i32_351 = arith.constant 254 : i32
    %773 = tpu.dynamic_rotate %353 by %c254_i32_351 dim 1 : vector<2x256xf32>, i32 -> vector<2x256xf32>
    %774 = vector.broadcast %772 : f32 to vector<2x256xf32>
    %775 = arith.mulf %774, %773 : vector<2x256xf32>
    %776 = arith.addf %771, %775 : vector<2x256xf32>
    %c1_352 = arith.constant 1 : index
    %c12_353 = arith.constant 12 : index
    %777 = memref.load %arg3[%c1_352, %c12_353] : memref<2x50xf32, #tpu.memory_space<smem>>
    %c254_i32_354 = arith.constant 254 : i32
    %778 = tpu.dynamic_rotate %374 by %c254_i32_354 dim 1 : vector<2x256xf32>, i32 -> vector<2x256xf32>
    %779 = vector.broadcast %777 : f32 to vector<2x256xf32>
    %780 = arith.mulf %779, %778 : vector<2x256xf32>
    %781 = arith.addf %776, %780 : vector<2x256xf32>
    %c0_355 = arith.constant 0 : index
    %c19 = arith.constant 19 : index
    %782 = memref.load %arg3[%c0_355, %c19] : memref<2x50xf32, #tpu.memory_space<smem>>
    %c254_i32_356 = arith.constant 254 : i32
    %783 = tpu.dynamic_rotate %356 by %c254_i32_356 dim 1 : vector<2x256xf32>, i32 -> vector<2x256xf32>
    %784 = vector.broadcast %782 : f32 to vector<2x256xf32>
    %785 = arith.mulf %784, %783 : vector<2x256xf32>
    %786 = arith.addf %781, %785 : vector<2x256xf32>
    %c1_357 = arith.constant 1 : index
    %c19_358 = arith.constant 19 : index
    %787 = memref.load %arg3[%c1_357, %c19_358] : memref<2x50xf32, #tpu.memory_space<smem>>
    %c254_i32_359 = arith.constant 254 : i32
    %788 = tpu.dynamic_rotate %377 by %c254_i32_359 dim 1 : vector<2x256xf32>, i32 -> vector<2x256xf32>
    %789 = vector.broadcast %787 : f32 to vector<2x256xf32>
    %790 = arith.mulf %789, %788 : vector<2x256xf32>
    %791 = arith.addf %786, %790 : vector<2x256xf32>
    %c0_360 = arith.constant 0 : index
    %c26 = arith.constant 26 : index
    %792 = memref.load %arg3[%c0_360, %c26] : memref<2x50xf32, #tpu.memory_space<smem>>
    %c254_i32_361 = arith.constant 254 : i32
    %793 = tpu.dynamic_rotate %359 by %c254_i32_361 dim 1 : vector<2x256xf32>, i32 -> vector<2x256xf32>
    %794 = vector.broadcast %792 : f32 to vector<2x256xf32>
    %795 = arith.mulf %794, %793 : vector<2x256xf32>
    %796 = arith.addf %791, %795 : vector<2x256xf32>
    %c1_362 = arith.constant 1 : index
    %c26_363 = arith.constant 26 : index
    %797 = memref.load %arg3[%c1_362, %c26_363] : memref<2x50xf32, #tpu.memory_space<smem>>
    %c254_i32_364 = arith.constant 254 : i32
    %798 = tpu.dynamic_rotate %380 by %c254_i32_364 dim 1 : vector<2x256xf32>, i32 -> vector<2x256xf32>
    %799 = vector.broadcast %797 : f32 to vector<2x256xf32>
    %800 = arith.mulf %799, %798 : vector<2x256xf32>
    %801 = arith.addf %796, %800 : vector<2x256xf32>
    %c0_365 = arith.constant 0 : index
    %c33 = arith.constant 33 : index
    %802 = memref.load %arg3[%c0_365, %c33] : memref<2x50xf32, #tpu.memory_space<smem>>
    %c254_i32_366 = arith.constant 254 : i32
    %803 = tpu.dynamic_rotate %362 by %c254_i32_366 dim 1 : vector<2x256xf32>, i32 -> vector<2x256xf32>
    %804 = vector.broadcast %802 : f32 to vector<2x256xf32>
    %805 = arith.mulf %804, %803 : vector<2x256xf32>
    %806 = arith.addf %801, %805 : vector<2x256xf32>
    %c1_367 = arith.constant 1 : index
    %c33_368 = arith.constant 33 : index
    %807 = memref.load %arg3[%c1_367, %c33_368] : memref<2x50xf32, #tpu.memory_space<smem>>
    %c254_i32_369 = arith.constant 254 : i32
    %808 = tpu.dynamic_rotate %383 by %c254_i32_369 dim 1 : vector<2x256xf32>, i32 -> vector<2x256xf32>
    %809 = vector.broadcast %807 : f32 to vector<2x256xf32>
    %810 = arith.mulf %809, %808 : vector<2x256xf32>
    %811 = arith.addf %806, %810 : vector<2x256xf32>
    %c0_370 = arith.constant 0 : index
    %c40 = arith.constant 40 : index
    %812 = memref.load %arg3[%c0_370, %c40] : memref<2x50xf32, #tpu.memory_space<smem>>
    %c254_i32_371 = arith.constant 254 : i32
    %813 = tpu.dynamic_rotate %365 by %c254_i32_371 dim 1 : vector<2x256xf32>, i32 -> vector<2x256xf32>
    %814 = vector.broadcast %812 : f32 to vector<2x256xf32>
    %815 = arith.mulf %814, %813 : vector<2x256xf32>
    %816 = arith.addf %811, %815 : vector<2x256xf32>
    %c1_372 = arith.constant 1 : index
    %c40_373 = arith.constant 40 : index
    %817 = memref.load %arg3[%c1_372, %c40_373] : memref<2x50xf32, #tpu.memory_space<smem>>
    %c254_i32_374 = arith.constant 254 : i32
    %818 = tpu.dynamic_rotate %386 by %c254_i32_374 dim 1 : vector<2x256xf32>, i32 -> vector<2x256xf32>
    %819 = vector.broadcast %817 : f32 to vector<2x256xf32>
    %820 = arith.mulf %819, %818 : vector<2x256xf32>
    %821 = arith.addf %816, %820 : vector<2x256xf32>
    %c0_375 = arith.constant 0 : index
    %c47 = arith.constant 47 : index
    %822 = memref.load %arg3[%c0_375, %c47] : memref<2x50xf32, #tpu.memory_space<smem>>
    %c254_i32_376 = arith.constant 254 : i32
    %823 = tpu.dynamic_rotate %368 by %c254_i32_376 dim 1 : vector<2x256xf32>, i32 -> vector<2x256xf32>
    %824 = vector.broadcast %822 : f32 to vector<2x256xf32>
    %825 = arith.mulf %824, %823 : vector<2x256xf32>
    %826 = arith.addf %821, %825 : vector<2x256xf32>
    %c1_377 = arith.constant 1 : index
    %c47_378 = arith.constant 47 : index
    %827 = memref.load %arg3[%c1_377, %c47_378] : memref<2x50xf32, #tpu.memory_space<smem>>
    %c254_i32_379 = arith.constant 254 : i32
    %828 = tpu.dynamic_rotate %389 by %c254_i32_379 dim 1 : vector<2x256xf32>, i32 -> vector<2x256xf32>
    %829 = vector.broadcast %827 : f32 to vector<2x256xf32>
    %830 = arith.mulf %829, %828 : vector<2x256xf32>
    %831 = arith.addf %826, %830 : vector<2x256xf32>
    %832 = vector.broadcast %165 : vector<1x256xf32> to vector<2x256xf32>
    %833 = arith.mulf %832, %831 : vector<2x256xf32>
    %834 = arith.addf %760, %833 : vector<2x256xf32>
    %cst_380 = arith.constant 0.000000e+00 : f32
    %835 = vector.broadcast %cst_380 : f32 to vector<2x256xf32>
    %c0_381 = arith.constant 0 : index
    %c6_382 = arith.constant 6 : index
    %836 = memref.load %arg3[%c0_381, %c6_382] : memref<2x50xf32, #tpu.memory_space<smem>>
    %c253_i32 = arith.constant 253 : i32
    %837 = tpu.dynamic_rotate %350 by %c253_i32 dim 1 : vector<2x256xf32>, i32 -> vector<2x256xf32>
    %838 = vector.broadcast %836 : f32 to vector<2x256xf32>
    %839 = arith.mulf %838, %837 : vector<2x256xf32>
    %840 = arith.addf %835, %839 : vector<2x256xf32>
    %c1_383 = arith.constant 1 : index
    %c6_384 = arith.constant 6 : index
    %841 = memref.load %arg3[%c1_383, %c6_384] : memref<2x50xf32, #tpu.memory_space<smem>>
    %c253_i32_385 = arith.constant 253 : i32
    %842 = tpu.dynamic_rotate %371 by %c253_i32_385 dim 1 : vector<2x256xf32>, i32 -> vector<2x256xf32>
    %843 = vector.broadcast %841 : f32 to vector<2x256xf32>
    %844 = arith.mulf %843, %842 : vector<2x256xf32>
    %845 = arith.addf %840, %844 : vector<2x256xf32>
    %c0_386 = arith.constant 0 : index
    %c13 = arith.constant 13 : index
    %846 = memref.load %arg3[%c0_386, %c13] : memref<2x50xf32, #tpu.memory_space<smem>>
    %c253_i32_387 = arith.constant 253 : i32
    %847 = tpu.dynamic_rotate %353 by %c253_i32_387 dim 1 : vector<2x256xf32>, i32 -> vector<2x256xf32>
    %848 = vector.broadcast %846 : f32 to vector<2x256xf32>
    %849 = arith.mulf %848, %847 : vector<2x256xf32>
    %850 = arith.addf %845, %849 : vector<2x256xf32>
    %c1_388 = arith.constant 1 : index
    %c13_389 = arith.constant 13 : index
    %851 = memref.load %arg3[%c1_388, %c13_389] : memref<2x50xf32, #tpu.memory_space<smem>>
    %c253_i32_390 = arith.constant 253 : i32
    %852 = tpu.dynamic_rotate %374 by %c253_i32_390 dim 1 : vector<2x256xf32>, i32 -> vector<2x256xf32>
    %853 = vector.broadcast %851 : f32 to vector<2x256xf32>
    %854 = arith.mulf %853, %852 : vector<2x256xf32>
    %855 = arith.addf %850, %854 : vector<2x256xf32>
    %c0_391 = arith.constant 0 : index
    %c20 = arith.constant 20 : index
    %856 = memref.load %arg3[%c0_391, %c20] : memref<2x50xf32, #tpu.memory_space<smem>>
    %c253_i32_392 = arith.constant 253 : i32
    %857 = tpu.dynamic_rotate %356 by %c253_i32_392 dim 1 : vector<2x256xf32>, i32 -> vector<2x256xf32>
    %858 = vector.broadcast %856 : f32 to vector<2x256xf32>
    %859 = arith.mulf %858, %857 : vector<2x256xf32>
    %860 = arith.addf %855, %859 : vector<2x256xf32>
    %c1_393 = arith.constant 1 : index
    %c20_394 = arith.constant 20 : index
    %861 = memref.load %arg3[%c1_393, %c20_394] : memref<2x50xf32, #tpu.memory_space<smem>>
    %c253_i32_395 = arith.constant 253 : i32
    %862 = tpu.dynamic_rotate %377 by %c253_i32_395 dim 1 : vector<2x256xf32>, i32 -> vector<2x256xf32>
    %863 = vector.broadcast %861 : f32 to vector<2x256xf32>
    %864 = arith.mulf %863, %862 : vector<2x256xf32>
    %865 = arith.addf %860, %864 : vector<2x256xf32>
    %c0_396 = arith.constant 0 : index
    %c27 = arith.constant 27 : index
    %866 = memref.load %arg3[%c0_396, %c27] : memref<2x50xf32, #tpu.memory_space<smem>>
    %c253_i32_397 = arith.constant 253 : i32
    %867 = tpu.dynamic_rotate %359 by %c253_i32_397 dim 1 : vector<2x256xf32>, i32 -> vector<2x256xf32>
    %868 = vector.broadcast %866 : f32 to vector<2x256xf32>
    %869 = arith.mulf %868, %867 : vector<2x256xf32>
    %870 = arith.addf %865, %869 : vector<2x256xf32>
    %c1_398 = arith.constant 1 : index
    %c27_399 = arith.constant 27 : index
    %871 = memref.load %arg3[%c1_398, %c27_399] : memref<2x50xf32, #tpu.memory_space<smem>>
    %c253_i32_400 = arith.constant 253 : i32
    %872 = tpu.dynamic_rotate %380 by %c253_i32_400 dim 1 : vector<2x256xf32>, i32 -> vector<2x256xf32>
    %873 = vector.broadcast %871 : f32 to vector<2x256xf32>
    %874 = arith.mulf %873, %872 : vector<2x256xf32>
    %875 = arith.addf %870, %874 : vector<2x256xf32>
    %c0_401 = arith.constant 0 : index
    %c34 = arith.constant 34 : index
    %876 = memref.load %arg3[%c0_401, %c34] : memref<2x50xf32, #tpu.memory_space<smem>>
    %c253_i32_402 = arith.constant 253 : i32
    %877 = tpu.dynamic_rotate %362 by %c253_i32_402 dim 1 : vector<2x256xf32>, i32 -> vector<2x256xf32>
    %878 = vector.broadcast %876 : f32 to vector<2x256xf32>
    %879 = arith.mulf %878, %877 : vector<2x256xf32>
    %880 = arith.addf %875, %879 : vector<2x256xf32>
    %c1_403 = arith.constant 1 : index
    %c34_404 = arith.constant 34 : index
    %881 = memref.load %arg3[%c1_403, %c34_404] : memref<2x50xf32, #tpu.memory_space<smem>>
    %c253_i32_405 = arith.constant 253 : i32
    %882 = tpu.dynamic_rotate %383 by %c253_i32_405 dim 1 : vector<2x256xf32>, i32 -> vector<2x256xf32>
    %883 = vector.broadcast %881 : f32 to vector<2x256xf32>
    %884 = arith.mulf %883, %882 : vector<2x256xf32>
    %885 = arith.addf %880, %884 : vector<2x256xf32>
    %c0_406 = arith.constant 0 : index
    %c41 = arith.constant 41 : index
    %886 = memref.load %arg3[%c0_406, %c41] : memref<2x50xf32, #tpu.memory_space<smem>>
    %c253_i32_407 = arith.constant 253 : i32
    %887 = tpu.dynamic_rotate %365 by %c253_i32_407 dim 1 : vector<2x256xf32>, i32 -> vector<2x256xf32>
    %888 = vector.broadcast %886 : f32 to vector<2x256xf32>
    %889 = arith.mulf %888, %887 : vector<2x256xf32>
    %890 = arith.addf %885, %889 : vector<2x256xf32>
    %c1_408 = arith.constant 1 : index
    %c41_409 = arith.constant 41 : index
    %891 = memref.load %arg3[%c1_408, %c41_409] : memref<2x50xf32, #tpu.memory_space<smem>>
    %c253_i32_410 = arith.constant 253 : i32
    %892 = tpu.dynamic_rotate %386 by %c253_i32_410 dim 1 : vector<2x256xf32>, i32 -> vector<2x256xf32>
    %893 = vector.broadcast %891 : f32 to vector<2x256xf32>
    %894 = arith.mulf %893, %892 : vector<2x256xf32>
    %895 = arith.addf %890, %894 : vector<2x256xf32>
    %c0_411 = arith.constant 0 : index
    %c48 = arith.constant 48 : index
    %896 = memref.load %arg3[%c0_411, %c48] : memref<2x50xf32, #tpu.memory_space<smem>>
    %c253_i32_412 = arith.constant 253 : i32
    %897 = tpu.dynamic_rotate %368 by %c253_i32_412 dim 1 : vector<2x256xf32>, i32 -> vector<2x256xf32>
    %898 = vector.broadcast %896 : f32 to vector<2x256xf32>
    %899 = arith.mulf %898, %897 : vector<2x256xf32>
    %900 = arith.addf %895, %899 : vector<2x256xf32>
    %c1_413 = arith.constant 1 : index
    %c48_414 = arith.constant 48 : index
    %901 = memref.load %arg3[%c1_413, %c48_414] : memref<2x50xf32, #tpu.memory_space<smem>>
    %c253_i32_415 = arith.constant 253 : i32
    %902 = tpu.dynamic_rotate %389 by %c253_i32_415 dim 1 : vector<2x256xf32>, i32 -> vector<2x256xf32>
    %903 = vector.broadcast %901 : f32 to vector<2x256xf32>
    %904 = arith.mulf %903, %902 : vector<2x256xf32>
    %905 = arith.addf %900, %904 : vector<2x256xf32>
    %906 = vector.broadcast %177 : vector<1x256xf32> to vector<2x256xf32>
    %907 = arith.mulf %906, %905 : vector<2x256xf32>
    %908 = arith.addf %834, %907 : vector<2x256xf32>
    %c0_416 = arith.constant 0 : index
    %c49 = arith.constant 49 : index
    %909 = memref.load %arg3[%c0_416, %c49] : memref<2x50xf32, #tpu.memory_space<smem>>
    %910 = vector.broadcast %909 : f32 to vector<2x256xf32>
    %911 = arith.addf %908, %910 : vector<2x256xf32>
    %912 = arith.negf %911 : vector<2x256xf32>
    %913 = math.exp %912 : vector<2x256xf32>
    %cst_417 = arith.constant 1.000000e+00 : f32
    %914 = vector.broadcast %cst_417 : f32 to vector<2x256xf32>
    %915 = arith.addf %914, %913 : vector<2x256xf32>
    %916 = arith.divf %914, %915 : vector<2x256xf32>
    %c0_418 = arith.constant 0 : index
    %c0_419 = arith.constant 0 : index
    %917 = vector.load %arg2[%c0_418, %c0_419] : memref<72x128xf32, #tpu.memory_space<vmem>>, vector<8x128xf32>
    %c8_420 = arith.constant 8 : index
    %c0_421 = arith.constant 0 : index
    %918 = vector.load %arg2[%c8_420, %c0_421] : memref<72x128xf32, #tpu.memory_space<vmem>>, vector<1x128xf32>
    %c16_422 = arith.constant 16 : index
    %c0_423 = arith.constant 0 : index
    %919 = vector.load %arg2[%c16_422, %c0_423] : memref<72x128xf32, #tpu.memory_space<vmem>>, vector<32x49xf32>
    %c48_424 = arith.constant 48 : index
    %c0_425 = arith.constant 0 : index
    %920 = vector.load %arg2[%c48_424, %c0_425] : memref<72x128xf32, #tpu.memory_space<vmem>>, vector<1x49xf32>
    %921 = vector.extract_strided_slice %329 {offsets = [0, 0], sizes = [8, 256], strides = [1, 1]} : vector<16x256xf32> to vector<8x256xf32>
    %922 = vector.extract_strided_slice %916 {offsets = [0, 0], sizes = [1, 256], strides = [1, 1]} : vector<2x256xf32> to vector<1x256xf32>
    %923 = vector.broadcast %922 : vector<1x256xf32> to vector<8x256xf32>
    %924 = arith.mulf %921, %923 : vector<8x256xf32>
    %cst_426 = arith.constant dense<0.000000e+00> : vector<8xf32>
    %925 = vector.multi_reduction <add>, %924, %cst_426 [1] : vector<8x256xf32> to vector<8xf32>
    %926 = vector.shape_cast %925 : vector<8xf32> to vector<8x1xf32>
    %cst_427 = arith.constant 2.560000e+02 : f32
    %927 = vector.broadcast %cst_427 : f32 to vector<8x1xf32>
    %928 = arith.divf %926, %927 : vector<8x1xf32>
    %929 = vector.broadcast %928 : vector<8x1xf32> to vector<8x128xf32>
    %930 = arith.mulf %929, %917 : vector<8x128xf32>
    %cst_428 = arith.constant dense<0.000000e+00> : vector<128xf32>
    %931 = vector.multi_reduction <add>, %930, %cst_428 [0] : vector<8x128xf32> to vector<128xf32>
    %932 = vector.shape_cast %931 : vector<128xf32> to vector<1x128xf32>
    %933 = arith.addf %932, %918 : vector<1x128xf32>
    %934 = vector.extract_strided_slice %933 {offsets = [0, 0], sizes = [1, 32], strides = [1, 1]} : vector<1x128xf32> to vector<1x32xf32>
    %935 = arith.negf %934 : vector<1x32xf32>
    %936 = math.exp %935 : vector<1x32xf32>
    %cst_429 = arith.constant 1.000000e+00 : f32
    %937 = vector.broadcast %cst_429 : f32 to vector<1x32xf32>
    %938 = arith.addf %937, %936 : vector<1x32xf32>
    %939 = arith.divf %937, %938 : vector<1x32xf32>
    %940 = vector.extract_strided_slice %933 {offsets = [0, 64], sizes = [1, 32], strides = [1, 1]} : vector<1x128xf32> to vector<1x32xf32>
    %941 = math.tanh %940 : vector<1x32xf32>
    %942 = vector.extract_strided_slice %933 {offsets = [0, 96], sizes = [1, 32], strides = [1, 1]} : vector<1x128xf32> to vector<1x32xf32>
    %943 = arith.negf %942 : vector<1x32xf32>
    %944 = math.exp %943 : vector<1x32xf32>
    %cst_430 = arith.constant 1.000000e+00 : f32
    %945 = vector.broadcast %cst_430 : f32 to vector<1x32xf32>
    %946 = arith.addf %945, %944 : vector<1x32xf32>
    %947 = arith.divf %945, %946 : vector<1x32xf32>
    %948 = arith.mulf %939, %941 : vector<1x32xf32>
    %949 = math.tanh %948 : vector<1x32xf32>
    %950 = arith.mulf %947, %949 : vector<1x32xf32>
    %cst_431 = arith.constant dense<0.000000e+00> : vector<1x49xf32>
    %951 = tpu.matmul %950, %919, %cst_431 {dimension_numbers = #tpu.dot_dimension_numbers<[1], [0], [0], [1], [0, 0, 1, 1], [], []>} : vector<1x32xf32>, vector<32x49xf32>, vector<1x49xf32> -> vector<1x49xf32>
    %952 = arith.addf %951, %920 : vector<1x49xf32>
    %953 = vector.extract_strided_slice %329 {offsets = [8, 0], sizes = [8, 256], strides = [1, 1]} : vector<16x256xf32> to vector<8x256xf32>
    %954 = vector.extract_strided_slice %916 {offsets = [1, 0], sizes = [1, 256], strides = [1, 1]} : vector<2x256xf32> to vector<1x256xf32>
    %955 = vector.broadcast %954 : vector<1x256xf32> to vector<8x256xf32>
    %956 = arith.mulf %953, %955 : vector<8x256xf32>
    %cst_432 = arith.constant dense<0.000000e+00> : vector<8xf32>
    %957 = vector.multi_reduction <add>, %956, %cst_432 [1] : vector<8x256xf32> to vector<8xf32>
    %958 = vector.shape_cast %957 : vector<8xf32> to vector<8x1xf32>
    %cst_433 = arith.constant 2.560000e+02 : f32
    %959 = vector.broadcast %cst_433 : f32 to vector<8x1xf32>
    %960 = arith.divf %958, %959 : vector<8x1xf32>
    %961 = vector.broadcast %960 : vector<8x1xf32> to vector<8x128xf32>
    %962 = arith.mulf %961, %917 : vector<8x128xf32>
    %cst_434 = arith.constant dense<0.000000e+00> : vector<128xf32>
    %963 = vector.multi_reduction <add>, %962, %cst_434 [0] : vector<8x128xf32> to vector<128xf32>
    %964 = vector.shape_cast %963 : vector<128xf32> to vector<1x128xf32>
    %965 = arith.addf %964, %918 : vector<1x128xf32>
    %966 = vector.extract_strided_slice %965 {offsets = [0, 0], sizes = [1, 32], strides = [1, 1]} : vector<1x128xf32> to vector<1x32xf32>
    %967 = arith.negf %966 : vector<1x32xf32>
    %968 = math.exp %967 : vector<1x32xf32>
    %cst_435 = arith.constant 1.000000e+00 : f32
    %969 = vector.broadcast %cst_435 : f32 to vector<1x32xf32>
    %970 = arith.addf %969, %968 : vector<1x32xf32>
    %971 = arith.divf %969, %970 : vector<1x32xf32>
    %972 = vector.extract_strided_slice %965 {offsets = [0, 64], sizes = [1, 32], strides = [1, 1]} : vector<1x128xf32> to vector<1x32xf32>
    %973 = math.tanh %972 : vector<1x32xf32>
    %974 = vector.extract_strided_slice %965 {offsets = [0, 96], sizes = [1, 32], strides = [1, 1]} : vector<1x128xf32> to vector<1x32xf32>
    %975 = arith.negf %974 : vector<1x32xf32>
    %976 = math.exp %975 : vector<1x32xf32>
    %cst_436 = arith.constant 1.000000e+00 : f32
    %977 = vector.broadcast %cst_436 : f32 to vector<1x32xf32>
    %978 = arith.addf %977, %976 : vector<1x32xf32>
    %979 = arith.divf %977, %978 : vector<1x32xf32>
    %980 = arith.mulf %971, %973 : vector<1x32xf32>
    %981 = math.tanh %980 : vector<1x32xf32>
    %982 = arith.mulf %979, %981 : vector<1x32xf32>
    %cst_437 = arith.constant dense<0.000000e+00> : vector<1x49xf32>
    %983 = tpu.matmul %982, %919, %cst_437 {dimension_numbers = #tpu.dot_dimension_numbers<[1], [0], [0], [1], [0, 0, 1, 1], [], []>} : vector<1x32xf32>, vector<32x49xf32>, vector<1x49xf32> -> vector<1x49xf32>
    %984 = arith.addf %983, %920 : vector<1x49xf32>
    %985 = tpu.concatenate %952, %984 in 0 : vector<1x49xf32>, vector<1x49xf32> -> vector<2x49xf32>
    %c0_438 = arith.constant 0 : index
    %c0_439 = arith.constant 0 : index
    %986 = vector.load %arg4[%c0_438, %c0_439] : memref<2x49xf32, #tpu.memory_space<vmem>>, vector<2x49xf32>
    tpu.vector_store %arg4[%c0_438, %c0_439], %985 {strides = array<i32>} : memref<2x49xf32, #tpu.memory_space<vmem>>, vector<2x49xf32>,
    return
  }
}

</mosaic_0001>

<bundles_post_ra>
// kernel: tile.6
= control target key start
LH: loop header
LB: loop body
LE: loop exit
PB: predicated region body
PF: predicated region fallthrough
CT: control target
= control target key end

     0   :  { %s22_s0 = inlined_call_operand.vmem [shape: f32[8], index: 0, kind: input, shape index: {}]   ;;  %s23_s1 = inlined_call_operand.vmem [shape: f32[2,8], index: 1, kind: output, shape index: {}]  }
   0x1   :  { %v4_v0 = vld [vmem:[%s22_s0] ss:$0 sm:$0xff] }
   0x2   :  { %5 = vst [vmem:[%s23_s1] sm:$0x3] %v4_v0 }

// kernel: agent_forward.1
= control target key start
LH: loop header
LB: loop body
LE: loop exit
PB: predicated region body
PF: predicated region fallthrough
CT: control target
= control target key end

     0   :  { %9 = vsyncpa [#allocation3], 0  ;;  %s2779_s18 = smov [#allocation2]   ;;  %s5272_s0 = inlined_call_operand.vmem [shape: f32[6,256], index: 0, kind: input, shape index: {}]   ;;  %s5273_s1 = inlined_call_operand.vmem [shape: f32[9,16,6], index: 1, kind: input, shape index: {}]   ;;  %s5274_s2 = inlined_call_operand.vmem [shape: f32[72,128], index: 2, kind: input, shape index: {}]   ;;  %s5275_s3 = inlined_call_operand.vmem [shape: f32[2,50], index: 3, kind: input, shape index: {}]   ;;  %s5276_s4 = inlined_call_operand.vmem [shape: f32[2,49], index: 4, kind: output, shape index: {}]  }
   0x1   :  { %s21_s17 = sshll.u32 %s5275_s3, 4  ;;  %s22_s17 = int_to_ptr.vmem [resolvable:$true] %s21_s17 }
   0x2   :  { %24 = dma.vmem_to_smem %s22_s17, 32, %s2779_s18, [#allocation3]  }
   0x3   :  { %2777 = dma.done.wait [#allocation3], 32  }
   0x4   :  { %2778 = vsyncadd [#allocation3], 4294967264 }
   0x5   :  { %29 = sfence }
   0x6   :  { %v2834_v0 = vld [vmem:[%s5272_s0] sm:$0x3f]  ;;  %s2780_s21 = smov 17   ;;  %s2781_s22 = smov 16   ;;  %v2843_v1 = vld [vmem:[%s5272_s0 + $0x8] sm:$0x3f]  ;;  %v30_v2 = vlaneseq }
   0x7   :  { %189 = vrot.lane.b32.xlu1 %v2834_v0, %s2780_s21  ;;  %202 = vrot.lane.b32.xlu0 %v2834_v0, %s2781_s22  ;;  %s2782_s23 = smov 15   ;;  %s2783_s25 = smov 1   ;;  %v5364_v22 = vmov 0  ;;  %v5366_v24 = vmov 0  ;;  %v5370_v27 = vmov 0  ;;  %v5374_v29 = vmov 0 }
   0x8   :  { %334 = vrot.lane.b32.xlu2 %v2834_v0, %s2782_s23  ;;  %s2784_s26 = smov 127   ;;  %s2785_s0 = smov 113   ;;  %v2865_v3 = vand.u32 127, %v30_v2  ;;  %v5277_v32 = vmov 0.0  }
   0x9   :  { %s2786_s27 = smov 112   ;;  %s2787_s28 = smov 111  }
   0xa   :  { %v32_v4 = vadd.s32 128, %v2865_v3  ;;  %v33_v5 = vcvt.s32.f32 %v2865_v3  ;;  %s2792_s19 = smov 123   ;;  %s2793_s20 = smov 48  }
   0xb   :  { %s2797_s3 = smov 80   ;;  %s2798_s24 = smov 3  }
   0xc   :  { %v34_v6 = vcvt.s32.f32 %v32_v4  ;;  %v35_v7 = vadd.f32 0.5, %v33_v5  ;;  %v2526_v4 = vld [vmem:[%s5273_s1 + $0x10] sm:$0xff]  ;;  %s2801_s29 = smov 125   ;;  %s4058_s30 = sld [smem:[#allocation2 + $0x3]] }
   0xd   :  { %s4060_s5 = sld [smem:[#allocation2 + $0x83]] }
   0xe   :  { %v36_v8 = vadd.f32 0.5, %v34_v6  ;;  %v37_v9 = vmul.f32 0.0625, %v35_v7  ;;  %s4064_s6 = sld [smem:[#allocation2 + $0x8a]] }
   0xf   :  { %191 = vrot.lane.b32.xlu1 %v2843_v1, %s2780_s21  ;;  %204 = vrot.lane.b32.xlu0 %v2843_v1, %s2781_s22  ;;  %s2794_s21 = smov 32   ;;  %s4068_s7 = sld [smem:[#allocation2 + $0x80]] }
  0x10   :  { %336 = vrot.lane.b32.xlu2 %v2843_v1, %s2782_s23  ;;  %v38_v10 = vmul.f32 0.0625, %v36_v8  ;;  %v2869_v11 = vfloor.f32 %v37_v9  ;;  %s2796_s23 = smov 96   ;;  %s4074_s8 = sld [smem:[#allocation2]] }
  0x11   :  { %s4076_s9 = sld [smem:[#allocation2 + $0xa]] }
  0x12   :  { %v2871_v12 = vfloor.f32 %v38_v10  ;;  %v41_v13 = vmul.f32 16.0, %v2869_v11  ;;  %v65_v15 = vadd.f32 -1.0, %v2869_v11  ;;  %vm77_vm7 = vcmp.ge.f32.partialorder %v2869_v11, 0.0  ;;  %s4080_s10 = sld [smem:[#allocation2 + $0x95]] }
  0x13   :  { %vm79_vm8 = vcmp.le.f32.partialorder %v2869_v11, 15.0  ;;  %v85_v56 = vadd.f32 1.0, %v2869_v11  ;;  %s4082_s11 = sld [smem:[#allocation2 + $0x11]] }
  0x14   :  { %v42_v14 = vmul.f32 16.0, %v2871_v12  ;;  %v2876_v16 = vsub.f32 %v33_v5, %v41_v13  ;;  %v66_v18 = vadd.f32 -1.0, %v2871_v12  ;;  %vm67_vm0 = vcmp.ge.f32.partialorder %v65_v15, 0.0  ;;  %vm2903_vm15 = vmand %vm77_vm7, %vm79_vm8  ;;  %s4085_s12 = sld [smem:[#allocation2 + $0x87]] }
  0x15   :  { %vm69_vm1 = vcmp.le.f32.partialorder %v65_v15, 15.0  ;;  %v5371_v27 = vsel %vm2903_vm15, 4294967295, %v5370_v27  ;;  %vm78_vm7 = vcmp.ge.f32.partialorder %v2871_v12, 0.0  ;;  %vm80_vm8 = vcmp.le.f32.partialorder %v2871_v12, 15.0  ;;  %s4087_s13 = sld [smem:[#allocation2 + $0x85]] }
  0x16   :  { %5362 = vst [vmem:[#allocation5_spill] sm:$0xff] %v2876_v16  ;;  %v2878_v17 = vsub.f32 %v34_v6, %v42_v14  ;;  %vm147_vm2 = vcmp.ge.f32.partialorder %v2876_v16, 0.0  ;;  %vm149_vm3 = vcmp.le.f32.partialorder %v2876_v16, 15.0  ;;  %v135_v19 = vadd.f32 -1.0, %v2876_v16  ;;  %vm2885_vm6 = vmand %vm67_vm0, %vm69_vm1  ;;  %v198_v6 = vld [vmem:[%s5273_s1] sm:$0xff]  ;;  %s4094_s14 = sld [smem:[#allocation2 + $0x5]] }
  0x17   :  { %412 = vrot.lane.b32.xlu1 %v2843_v1, %s2783_s25  ;;  %410 = vrot.lane.b32.xlu0 %v2834_v0, %s2783_s25  ;;  %vm68_vm4 = vcmp.ge.f32.partialorder %v66_v18, 0.0  ;;  %vm70_vm5 = vcmp.le.f32.partialorder %v66_v18, 15.0  ;;  %v5365_v22 = vsel %vm2885_vm6, 4294967295, %v5364_v22  ;;  %v155_v23 = vadd.f32 1.0, %v2876_v16  ;;  %vm2892_vm9 = vmand %vm147_vm2, %vm149_vm3  ;;  %s4098_s15 = sld [smem:[#allocation2 + $0x8e]] }
  0x18   :  { %555 = vrot.lane.b32.xlu2 %v2834_v0, %s2784_s26  ;;  %5363 = vst [vmem:[#allocation6_spill] sm:$0xff] %v2878_v17  ;;  %v136_v20 = vadd.f32 -1.0, %v2878_v17  ;;  %v5367_v24 = vsel %vm2892_vm9, 4294967295, %v5366_v24  ;;  %vm148_vm10 = vcmp.ge.f32.partialorder %v2878_v17, 0.0  ;;  %vm150_vm11 = vcmp.le.f32.partialorder %v2878_v17, 15.0  ;;  %vm2899_vm12 = vmand %vm68_vm4, %vm70_vm5  ;;  %s4114_s16 = sld [smem:[#allocation2 + $0x7]] }
  0x19   :  { %v156_v25 = vadd.f32 1.0, %v2878_v17  ;;  %vm137_vm13 = vcmp.ge.f32.partialorder %v135_v19, 0.0  ;;  %vm139_vm14 = vcmp.le.f32.partialorder %v135_v19, 15.0  ;;  %vm2907_vm2 = vmand %vm148_vm10, %vm150_vm11  ;;  %vm157_vm3 = vcmp.ge.f32.partialorder %v155_v23, 0.0  ;;  %s4131_s17 = sld [smem:[#allocation2 + $0x15]] }
  0x1a   :  { %vm138_vm0 = vcmp.ge.f32.partialorder %v136_v20, 0.0  ;;  %vm140_vm1 = vcmp.le.f32.partialorder %v136_v20, 15.0  ;;  %vm159_vm9 = vcmp.le.f32.partialorder %v155_v23, 15.0  ;;  %vm2911_vm6 = vmand %vm137_vm13, %vm139_vm14  ;;  %vm5376_vm10 = vnez %v5365_v22  ;;  %v2527_v22 = vld [vmem:[%s5273_s1 + $0x18] sm:$0xff]  ;;  %v199_v23 = vld [vmem:[%s5273_s1 + $0x8] sm:$0xff]  ;;  %s4145_s18 = sld [smem:[#allocation2 + $0xe]] }
  0x1b   :  { %v5375_v29 = vsel %vm2911_vm6, 4294967295, %v5374_v29  ;;  %vm158_vm4 = vcmp.ge.f32.partialorder %v156_v25, 0.0  ;;  %vm160_vm5 = vcmp.le.f32.partialorder %v156_v25, 15.0  ;;  %vm142_vm15 = vmand %vm138_vm0, %vm140_vm1  ;;  %v2920_v33 = vsel %vm5376_vm10, 1.0, %v5277_v32 }
  0x1c   :  { %vm5377_vm11 = vnez %v5367_v24  ;;  %vm161_vm13 = vmand %vm157_vm3, %vm159_vm9  ;;  %v2930_v35 = vsel %vm2899_vm12, 1.0, %v5277_v32  ;;  %v2935_v36 = vsel %vm2907_vm2, 1.0, %v5277_v32  ;;  %vm5380_vm0 = vnez %v5375_v29 }
  0x1d   :  { %v2925_v34 = vsel %vm5377_vm11, 1.0, %v5277_v32  ;;  %vm162_vm14 = vmand %vm158_vm4, %vm160_vm5  ;;  %5379 = vst [vmem:[#allocation8_spill] sm:$0xff] %v2935_v36  ;;  %v2940_v37 = vsel %vm5380_vm0, 1.0, %v5277_v32  ;;  %v2943_v38 = vsel %vm142_vm15, 1.0, %v5277_v32  ;;  %vm338_vm9 = vcmp.lt.s32.totalorder %v2865_v3, 15 }
  0x1e   :  { %5378 = vst [vmem:[#allocation7_spill] sm:$0xff] %v2925_v34  ;;  %vm82_vm6 = vmand %vm78_vm7, %vm80_vm8  ;;  %v200_v40 = vmul.f32 %v2925_v34, %v2920_v33  ;;  %vm206_vm12 = vcmp.lt.s32.totalorder %v2865_v3, 16  ;;  %vm5383_vm1 = vnez %v5371_v27  ;;  %vm193_vm2 = vcmp.lt.s32.totalorder %v2865_v3, 17 }
  0x1f   :  { %557 = vrot.lane.b32.xlu0 %v2843_v1, %s2784_s26  ;;  %631 = vrot.lane.b32.xlu1 %v2834_v0, %s2785_s0  ;;  %5381 = vst [vmem:[#allocation9_spill] sm:$0xff] %v2940_v37  ;;  %v2952_v41 = vsel %vm5383_vm1, 1.0, %v5277_v32  ;;  %v2956_v42 = vsel %vm161_vm13, 1.0, %v5277_v32  ;;  %v2959_v43 = vsel %vm162_vm14, 1.0, %v5277_v32  ;;  %v2962_v44 = vsel %vm82_vm6, 1.0, %v5277_v32 }
  0x20   :  { %633 = vrot.lane.b32.xlu2 %v2843_v1, %s2785_s0  ;;  %5382 = vst [vmem:[#allocation10_spill] sm:$0xff] %v2943_v38  ;;  %v201_v45 = vmul.f32 %v2935_v36, %v2930_v35  ;;  %v187_v46 = vmul.f32 %v2940_v37, %v2920_v33  ;;  %v188_v47 = vmul.f32 %v2943_v38, %v2930_v35  ;;  %vm221_vm15 = vcmask 1045504   ;;  %s2799_s0 = smov 2  }
  0x21   :  { %5384 = vst [vmem:[#allocation11_spill] sm:$0xff] %v2956_v42  ;;  %v484_v49 = vmul.f32 %v2925_v34, %v2952_v41  ;;  %v485_v50 = vmul.f32 %v2935_v36, %v2962_v44  ;;  %v332_v54 = vmul.f32 %v2956_v42, %v2920_v33  ;;  %v333_v55 = vmul.f32 %v2959_v43, %v2930_v35 }
  0x22   :  { %5385 = vst [vmem:[#allocation12_spill] sm:$0xff] %v2959_v43  ;;  %vm214_vm6 = vcmask 48128   ;;  %v86_v5 = vadd.f32 1.0, %v2871_v12  ;;  %vm414_vm3 = vcmp.lt.s32.totalorder %v2865_v3, 1  ;;  %v408_v13 = vmul.f32 %v2940_v37, %v2952_v41 }
  0x23   :  { %v486_v9 = vmul.f32 %v484_v49, %v2834_v0  ;;  %v487_v10 = vmul.f32 %v485_v50, %v2843_v1  ;;  %v409_v14 = vmul.f32 %v2943_v38, %v2962_v44  ;;  %vm87_vm4 = vcmp.ge.f32.partialorder %v85_v56, 0.0  ;;  %v2540_v50 = vld [vmem:[%s5273_s1 + $0x20] sm:$0xff] }
  0x24   :  { %vm89_vm5 = vcmp.le.f32.partialorder %v85_v56, 15.0  ;;  %vm88_vm7 = vcmp.ge.f32.partialorder %v86_v5, 0.0  ;;  %vm90_vm8 = vcmp.le.f32.partialorder %v86_v5, 15.0  ;;  %v553_v26 = vmul.f32 %v2956_v42, %v2952_v41 }
  0x25   :  { %vm91_vm10 = vmand %vm87_vm4, %vm89_vm5  ;;  %v554_v27 = vmul.f32 %v2959_v43, %v2962_v44  ;;  %vm559_vm13 = vcmp.lt.s32.totalorder %v2865_v3, 127  ;;  %vm635_vm14 = vcmp.lt.s32.totalorder %v2865_v3, 113  ;;  %vm711_vm0 = vcmp.lt.s32.totalorder %v2865_v3, 112 }
  0x26   :  { %vm92_vm11 = vmand %vm88_vm7, %vm90_vm8  ;;  %v3026_v24 = vsel %vm91_vm10, 1.0, %v5277_v32 }
  0x27   :  { %709 = vrot.lane.b32.xlu1 %v2843_v1, %s2786_s27  ;;  %707 = vrot.lane.b32.xlu0 %v2834_v0, %s2786_s27  ;;  %v3029_v25 = vsel %vm92_vm11, 1.0, %v5277_v32  ;;  %v781_v5 = vmul.f32 %v2956_v42, %v3026_v24 }
  0x28   :  { %783 = vrot.lane.b32.xlu2 %v2834_v0, %s2787_s28 }
  0x2f   :  { %785 = vrot.lane.b32.xlu0 %v2843_v1, %s2787_s28  ;;  %s2800_s28 = smov 126  }
  0x62   :  { %v335_v21 = vpop.permute.xlu2 %334 }
  0x6a   :  { %v337_v39 = vpop.permute.xlu2 %336 }
  0x6b   :  { %v339_v48 = vsel %vm338_vm9, %v335_v21, %v337_v39  ;;  %v340_v51 = vsel %vm338_vm9, %v337_v39, %v335_v21  ;;  %v630_v39 = vmul.f32 %v2943_v38, %v3029_v25  ;;  %vm787_vm9 = vcmp.lt.s32.totalorder %v2865_v3, 111 }
  0x6c   :  { %v341_v7 = vmul.f32 %v340_v51, %v332_v54  ;;  %v342_v8 = vmul.f32 %v339_v48, %v333_v55  ;;  %v2548_v51 = vld [vmem:[%s5273_s1 + $0x30] sm:$0xff]  ;;  %v705_v54 = vmul.f32 %v2925_v34, %v3026_v24  ;;  %v706_v55 = vmul.f32 %v2935_v36, %v3029_v25 }
  0x72   :  { %v556_v15 = vpop.permute.xlu2 %555 }
  0x79   :  { %v190_v30 = vpop.permute.xlu1 %189  ;;  %v203_v31 = vpop.permute.xlu0 %202 }
  0x7a   :  { %v634_v28 = vpop.permute.xlu2 %633 }
  0x81   :  { %v192_v52 = vpop.permute.xlu1 %191  ;;  %v205_v53 = vpop.permute.xlu0 %204 }
  0x82   :  { %v208_v57 = vsel %vm206_vm12, %v205_v53, %v203_v31  ;;  %v207_v58 = vsel %vm206_vm12, %v203_v31, %v205_v53  ;;  %v195_v59 = vsel %vm193_vm2, %v192_v52, %v190_v30  ;;  %v194_v60 = vsel %vm193_vm2, %v190_v30, %v192_v52 }
  0x83   :  { %v209_v61 = vmul.f32 %v208_v57, %v200_v40  ;;  %v210_v62 = vmul.f32 %v207_v58, %v201_v45  ;;  %v196_v63 = vmul.f32 %v195_v59, %v187_v46  ;;  %v197_v2 = vmul.f32 %v194_v60, %v188_v47 }
  0x84   :  { %v629_v31 = vmul.f32 %v2940_v37, %v3026_v24  ;;  %vm890_vm2 = vcmask 39944  }
  0x85   :  { %2528 = vmatpush.msk.msra.mxu0 %vm221_vm15, %v209_v61  ;;  %2531 = vmatpush.msk.msra.mxu1 %vm221_vm15, %v210_v62  ;;  %v2541_v62 = vld [vmem:[%s5273_s1 + $0x28] sm:$0xff] }
  0x86   :  { %2534 = vmatpush.msk.msra.mxu2 %vm221_vm15, %v196_v63  ;;  %2537 = vmatpush.msk.msra.mxu3 %vm221_vm15, %v197_v2  ;;  %v2549_v63 = vld [vmem:[%s5273_s1 + $0x38] sm:$0xff]  ;;  %v784_v2 = vpop.permute.xlu2 %783 }
  0x87   :  { %2529 = vmatmul.msk.f32.vlgmr.msra.gmra.mxu0 %vm214_vm6, %v2526_v4  ;;  %2532 = vmatmul.msk.f32.vlgmr.msra.gmra.mxu1 %vm214_vm6, %v2526_v4 }
  0x88   :  { %2535 = vmatmul.msk.f32.vlgmr.msra.gmra.mxu2 %vm214_vm6, %v198_v6  ;;  %2538 = vmatmul.msk.f32.vlgmr.msra.gmra.mxu3 %vm214_vm6, %v198_v6  ;;  %v782_v6 = vmul.f32 %v2959_v43, %v3029_v25 }
  0x89   :  { %2542 = vmatpush.msk.msrb.mxu0 %vm221_vm15, %v341_v7  ;;  %2545 = vmatpush.msk.msrb.mxu1 %vm221_vm15, %v342_v8  ;;  %v413_v0 = vpop.permute.xlu1 %412  ;;  %v411_v1 = vpop.permute.xlu0 %410 }
  0x8a   :  { %v415_v18 = vsel %vm414_vm3, %v411_v1, %v413_v0  ;;  %v416_v19 = vsel %vm414_vm3, %v413_v0, %v411_v1  ;;  %v2565_v0 = vld [vmem:[%s5273_s1 + $0x58] sm:$0xff] }
  0x8b   :  { %2558 = vmatpush.msk.msra.mxu0 %vm221_vm15, %v486_v9  ;;  %2561 = vmatpush.msk.msra.mxu1 %vm221_vm15, %v487_v10  ;;  %v417_v20 = vmul.f32 %v416_v19, %v408_v13  ;;  %v418_v21 = vmul.f32 %v415_v18, %v409_v14  ;;  %v2556_v9 = vld [vmem:[%s5273_s1 + $0x40] sm:$0xff]  ;;  %v2564_v10 = vld [vmem:[%s5273_s1 + $0x50] sm:$0xff]  ;;  %v3112_v1 = vld [vmem:[%s5274_s2 + $0x38] sm:$0xff]  ;;  %v2789_v19 = vmov 0  }
  0x8c   :  { %v858_v18 = vld [vmem:[%s5274_s2 + $0x40] sm:$0xff]  ;;  %2726 = vset.pattern.permute.xlu1 %v2789_v19  ;;  %2727 = vset.pattern.permute.xlu2 %v2789_v19 }
  0x8d   :  { %2550 = vmatpush.msk.msrb.mxu2 %vm221_vm15, %v417_v20  ;;  %2553 = vmatpush.msk.msrb.mxu3 %vm221_vm15, %v418_v21  ;;  %v2572_v20 = vld [vmem:[%s5273_s1 + $0x60] sm:$0xff]  ;;  %v2580_v21 = vld [vmem:[%s5273_s1 + $0x70] sm:$0xff] }
  0x8e   :  { %861 = vperm.xlu1 %2726, %v3112_v1   ;;  %866 = vperm.xlu2 %2727, %v858_v18  }
  0x8f   :  { %2530 = vmatmul.msk.f32.gmra.mxu0 %vm214_vm6, %v2527_v22  ;;  %2533 = vmatmul.msk.f32.gmra.mxu1 %vm214_vm6, %v2527_v22  ;;  %v2573_v22 = vld [vmem:[%s5273_s1 + $0x68] sm:$0xff] }
  0x90   :  { %2536 = vmatmul.msk.f32.gmra.mxu2 %vm214_vm6, %v199_v23  ;;  %2539 = vmatmul.msk.f32.gmra.mxu3 %vm214_vm6, %v199_v23  ;;  %v2581_v23 = vld [vmem:[%s5273_s1 + $0x78] sm:$0xff] }
  0x91   :  { %v558_v29 = vpop.permute.xlu0 %557  ;;  %v632_v30 = vpop.permute.xlu1 %631  ;;  %2728 = vset.pattern.permute.xlu0 %v2789_v19 }
  0x92   :  { %v560_v40 = vsel %vm559_vm13, %v556_v15, %v558_v29  ;;  %v561_v45 = vsel %vm559_vm13, %v558_v29, %v556_v15  ;;  %v636_v46 = vsel %vm635_vm14, %v632_v30, %v634_v28  ;;  %v637_v47 = vsel %vm635_vm14, %v634_v28, %v632_v30  ;;  %v2557_v15 = vld [vmem:[%s5273_s1 + $0x48] sm:$0xff] }
  0x93   :  { %v562_v48 = vmul.f32 %v560_v40, %v553_v26  ;;  %v563_v49 = vmul.f32 %v561_v45, %v554_v27  ;;  %v638_v52 = vmul.f32 %v636_v46, %v629_v31  ;;  %v639_v53 = vmul.f32 %v637_v47, %v630_v39  ;;  %v2588_v26 = vld [vmem:[%s5273_s1 + $0x80] sm:$0xff]  ;;  %v2589_v27 = vld [vmem:[%s5273_s1 + $0x88] sm:$0xff]  ;;  %s2791_s1 = smov 4  }
  0x95   :  { %2566 = vmatpush.msk.msra.mxu2 %vm221_vm15, %v562_v48  ;;  %2569 = vmatpush.msk.msra.mxu3 %vm221_vm15, %v563_v49 }
  0x97   :  { %2543 = vmatmul.msk.f32.vlgmr.msrb.gmra.mxu0 %vm214_vm6, %v2540_v50  ;;  %2546 = vmatmul.msk.f32.vlgmr.msrb.gmra.mxu1 %vm214_vm6, %v2540_v50 }
  0x98   :  { %2551 = vmatmul.msk.f32.vlgmr.msrb.gmra.mxu2 %vm214_vm6, %v2548_v51  ;;  %2554 = vmatmul.msk.f32.vlgmr.msrb.gmra.mxu3 %vm214_vm6, %v2548_v51 }
  0x99   :  { %2574 = vmatpush.msk.msrb.mxu0 %vm221_vm15, %v638_v52  ;;  %2577 = vmatpush.msk.msrb.mxu1 %vm221_vm15, %v639_v53  ;;  %v710_v56 = vpop.permute.xlu1 %709  ;;  %v708_v57 = vpop.permute.xlu0 %707 }
  0x9a   :  { %v712_v58 = vsel %vm711_vm0, %v708_v57, %v710_v56  ;;  %v713_v59 = vsel %vm711_vm0, %v710_v56, %v708_v57 }
  0x9b   :  { %v714_v60 = vmul.f32 %v712_v58, %v705_v54  ;;  %v715_v61 = vmul.f32 %v713_v59, %v706_v55 }
  0x9d   :  { %2582 = vmatpush.msk.msrb.mxu2 %vm221_vm15, %v714_v60  ;;  %2585 = vmatpush.msk.msrb.mxu3 %vm221_vm15, %v715_v61 }
  0x9f   :  { %2544 = vmatmul.msk.f32.gmra.mxu0 %vm214_vm6, %v2541_v62  ;;  %2547 = vmatmul.msk.f32.gmra.mxu1 %vm214_vm6, %v2541_v62 }
  0xa0   :  { %2552 = vmatmul.msk.f32.gmra.mxu2 %vm214_vm6, %v2549_v63  ;;  %2555 = vmatmul.msk.f32.gmra.mxu3 %vm214_vm6, %v2549_v63 }
  0xa1   :  { %v786_v4 = vpop.permute.xlu0 %785 }
  0xa2   :  { %v788_v7 = vsel %vm787_vm9, %v784_v2, %v786_v4  ;;  %v789_v8 = vsel %vm787_vm9, %v786_v4, %v784_v2  ;;  %vm1064_vm9 = vcmask 1040384  }
  0xa3   :  { %v790_v13 = vmul.f32 %v788_v7, %v781_v5  ;;  %v791_v14 = vmul.f32 %v789_v8, %v782_v6 }
  0xa7   :  { %2559 = vmatmul.msk.f32.vlgmr.msra.gmra.mxu0 %vm214_vm6, %v2556_v9  ;;  %2562 = vmatmul.msk.f32.vlgmr.msra.gmra.mxu1 %vm214_vm6, %v2556_v9 }
  0xa8   :  { %2567 = vmatmul.msk.f32.vlgmr.msra.gmra.mxu2 %vm214_vm6, %v2564_v10  ;;  %2570 = vmatmul.msk.f32.vlgmr.msra.gmra.mxu3 %vm214_vm6, %v2564_v10 }
  0xa9   :  { %2590 = vmatpush.msk.msra.mxu0 %vm221_vm15, %v790_v13  ;;  %2593 = vmatpush.msk.msra.mxu1 %vm221_vm15, %v791_v14  ;;  %vm908_vm15 = vcmask 31744  }
  0xaf   :  { %2560 = vmatmul.msk.f32.gmra.mxu0 %vm214_vm6, %v2557_v15  ;;  %2563 = vmatmul.msk.f32.gmra.mxu1 %vm214_vm6, %v2557_v15 }
  0xb0   :  { %2568 = vmatmul.msk.f32.gmra.mxu2 %vm214_vm6, %v2565_v0  ;;  %2571 = vmatmul.msk.f32.gmra.mxu3 %vm214_vm6, %v2565_v0 }
  0xb7   :  { %2575 = vmatmul.msk.f32.vlgmr.msrb.gmra.mxu0 %vm214_vm6, %v2572_v20  ;;  %2578 = vmatmul.msk.f32.vlgmr.msrb.gmra.mxu1 %vm214_vm6, %v2572_v20 }
  0xb8   :  { %2583 = vmatmul.msk.f32.vlgmr.msrb.gmra.mxu2 %vm214_vm6, %v2580_v21  ;;  %2586 = vmatmul.msk.f32.vlgmr.msrb.gmra.mxu3 %vm214_vm6, %v2580_v21 }
  0xbf   :  { %2576 = vmatmul.msk.f32.gmra.mxu0 %vm214_vm6, %v2573_v22  ;;  %2579 = vmatmul.msk.f32.gmra.mxu1 %vm214_vm6, %v2573_v22 }
  0xc0   :  { %2584 = vmatmul.msk.f32.gmra.mxu2 %vm214_vm6, %v2581_v23  ;;  %2587 = vmatmul.msk.f32.gmra.mxu3 %vm214_vm6, %v2581_v23 }
  0xc7   :  { %2591 = vmatmul.msk.f32.vlgmr.msra.gmra.mxu0 %vm214_vm6, %v2588_v26  ;;  %2594 = vmatmul.msk.f32.vlgmr.msra.gmra.mxu1 %vm214_vm6, %v2588_v26 }
  0xcf   :  { %2592 = vmatmul.msk.f32.gmra.mxu0 %vm214_vm6, %v2589_v27  ;;  %2595 = vmatmul.msk.f32.gmra.mxu1 %vm214_vm6, %v2589_v27 }
 0x104   :  { %v245_v28 = vpop.f32.mrf.mxu0  ;;  %v268_v29 = vpop.f32.mrf.mxu1 }
 0x10b   :  { %v303_v30 = vpop.f32.mrf.mxu2  ;;  %v326_v31 = vpop.f32.mrf.mxu3 }
 0x10c   :  { %v248_v39 = vpop.f32.mrf.mxu0  ;;  %v271_v40 = vpop.f32.mrf.mxu1  ;;  %v304_v4 = vadd.f32 %v303_v30, %v245_v28  ;;  %v327_v5 = vadd.f32 %v326_v31, %v268_v29 }
 0x113   :  { %v306_v45 = vpop.f32.mrf.mxu2  ;;  %v329_v46 = vpop.f32.mrf.mxu3 }
 0x114   :  { %v375_v47 = vpop.f32.mrf.mxu0  ;;  %v398_v48 = vpop.f32.mrf.mxu1  ;;  %v307_v19 = vadd.f32 %v306_v45, %v248_v39  ;;  %v330_v20 = vadd.f32 %v329_v46, %v271_v40 }
 0x115   :  { %v404_v6 = vadd.f32 %v375_v47, %v304_v4  ;;  %v405_v7 = vadd.f32 %v398_v48, %v327_v5  ;;  %v862_v47 = vpop.permute.xlu1 %861 }
 0x11b   :  { %v451_v49 = vpop.f32.mrf.mxu2  ;;  %v474_v50 = vpop.f32.mrf.mxu3 }
 0x11c   :  { %v378_v51 = vpop.f32.mrf.mxu0  ;;  %v401_v52 = vpop.f32.mrf.mxu1  ;;  %v480_v8 = vadd.f32 %v451_v49, %v404_v6  ;;  %v481_v9 = vadd.f32 %v474_v50, %v405_v7 }
 0x11d   :  { %v406_v23 = vadd.f32 %v378_v51, %v307_v19  ;;  %v407_v26 = vadd.f32 %v401_v52, %v330_v20 }
 0x123   :  { %v454_v53 = vpop.f32.mrf.mxu2  ;;  %v477_v54 = vpop.f32.mrf.mxu3 }
 0x124   :  { %v520_v55 = vpop.f32.mrf.mxu0  ;;  %v543_v56 = vpop.f32.mrf.mxu1  ;;  %v482_v28 = vadd.f32 %v454_v53, %v406_v23  ;;  %v483_v29 = vadd.f32 %v477_v54, %v407_v26 }
 0x125   :  { %v549_v14 = vadd.f32 %v520_v55, %v480_v8  ;;  %v550_v15 = vadd.f32 %v543_v56, %v481_v9 }
 0x12b   :  { %v596_v57 = vpop.f32.mrf.mxu2  ;;  %v619_v58 = vpop.f32.mrf.mxu3 }
 0x12c   :  { %v523_v59 = vpop.f32.mrf.mxu0  ;;  %v546_v60 = vpop.f32.mrf.mxu1  ;;  %v625_v21 = vadd.f32 %v596_v57, %v549_v14  ;;  %v626_v22 = vadd.f32 %v619_v58, %v550_v15  ;;  %v2790_v15 = vmov 256.0  }
 0x12d   :  { %v551_v50 = vadd.f32 %v523_v59, %v482_v28  ;;  %v552_v55 = vadd.f32 %v546_v60, %v483_v29  ;;  %v867_v60 = vpop.permute.xlu2 %866  ;;  %2729 = vrcp.f32 %v2790_v15 }
 0x133   :  { %v599_v61 = vpop.f32.mrf.mxu2  ;;  %v622_v62 = vpop.f32.mrf.mxu3 }
 0x134   :  { %v672_v63 = vpop.f32.mrf.mxu0  ;;  %v695_v2 = vpop.f32.mrf.mxu1  ;;  %v627_v5 = vadd.f32 %v599_v61, %v551_v50  ;;  %v628_v39 = vadd.f32 %v622_v62, %v552_v55 }
 0x135   :  { %v701_v27 = vadd.f32 %v672_v63, %v625_v21  ;;  %v702_v32 = vadd.f32 %v695_v2, %v626_v22 }
 0x13b   :  { %v748_v0 = vpop.f32.mrf.mxu2  ;;  %v771_v18 = vpop.f32.mrf.mxu3 }
 0x13c   :  { %v675_v10 = vpop.f32.mrf.mxu0  ;;  %v698_v13 = vpop.f32.mrf.mxu1  ;;  %v777_v30 = vadd.f32 %v748_v0, %v701_v27  ;;  %v778_v31 = vadd.f32 %v771_v18, %v702_v32 }
 0x13d   :  { %v703_v52 = vadd.f32 %v675_v10, %v627_v5  ;;  %v704_v57 = vadd.f32 %v698_v13, %v628_v39  ;;  %v2730_v0 = vpop.eup %2729 }
 0x13e   :  { %v882_v18 = vmul.f32 256.0, %v2730_v0  ;;  %vm886_vm1 = vweird.f32 %v2730_v0 }
 0x140   :  { %v883_v19 = vsub.f32 1.0, %v882_v18 }
 0x142   :  { %v884_v20 = vmul.f32 %v2730_v0, %v883_v19 }
 0x143   :  { %v751_v46 = vpop.f32.mrf.mxu2  ;;  %v774_v51 = vpop.f32.mrf.mxu3 }
 0x144   :  { %v824_v48 = vpop.f32.mrf.mxu0  ;;  %v847_v49 = vpop.f32.mrf.mxu1  ;;  %v779_v32 = vadd.f32 %v751_v46, %v703_v52  ;;  %v780_v54 = vadd.f32 %v774_v51, %v704_v57  ;;  %v885_v21 = vadd.f32 %v2730_v0, %v884_v20 }
 0x145   :  { %v853_v56 = vadd.f32 %v824_v48, %v777_v30  ;;  %v854_v4 = vadd.f32 %v847_v49, %v778_v31 }
 0x146   :  { %v3166_v22 = vsel %vm886_vm1, %v2730_v0, %v885_v21 }
 0x147   :  { %v869_v40 = vadd.f32 %v862_v47, %v853_v56  ;;  %v870_v45 = vadd.f32 %v862_v47, %v854_v4  ;;  %5386 = vst [vmem:[#allocation13_spill] sm:$0xff] %v3166_v22 }
 0x149   :  { %v3150_v58 = vmax.f32 %v869_v40, 0.0  ;;  %v3152_v53 = vmax.f32 %v870_v45, 0.0 }
 0x14b   :  { %v878_v59 = vadd.f32 %v3152_v53, %v3150_v58  ;;  %v912_v13 = vmax.f32 %v3150_v58, %v3152_v53 }
 0x14c   :  { %v827_v63 = vpop.f32.mrf.mxu0  ;;  %v850_v2 = vpop.f32.mrf.mxu1 }
 0x14d   :  { %v855_v61 = vadd.f32 %v827_v63, %v779_v32  ;;  %v856_v62 = vadd.f32 %v850_v2, %v780_v54  ;;  %879 = vadd.xlane.f32.xlu0 %v878_v59 }
 0x14f   :  { %v871_v6 = vadd.f32 %v867_v60, %v855_v61  ;;  %v872_v7 = vadd.f32 %v867_v60, %v856_v62 }
 0x151   :  { %v3156_v8 = vmax.f32 %v871_v6, 0.0  ;;  %v3158_v9 = vmax.f32 %v872_v7, 0.0 }
 0x153   :  { %v958_v10 = vadd.f32 %v3158_v9, %v3156_v8  ;;  %v983_v14 = vmax.f32 %v3156_v8, %v3158_v9 }
 0x155   :  { %959 = vadd.xlane.f32.xlu2 %v958_v10  ;;  %913 = vmax.xlane.f32.xlu0 %v912_v13 }
 0x15d   :  { %984 = vmax.xlane.f32.xlu2 %v983_v14 }
 0x1c0   :  { %v880_v23 = vpop.xlane.xlu0 %879 }
 0x1c1   :  { %v888_v26 = vmul.f32 %v3166_v22, %v880_v23 }
 0x1c3   :  { %v889_v27 = vmul.f32 %v888_v26, %v3112_v1 }
 0x1c5   :  { %v891_v28 = vsel %vm890_vm2, %v889_v27, 0.0 }
 0x1c6   :  { %v892_v29 = vrot.slane %v891_v28, 4 }
 0x1c8   :  { %v893_v30 = vadd.f32 %v892_v29, %v891_v28  ;;  %v960_v31 = vpop.xlane.xlu2 %959  ;;  %v914_v47 = vpop.xlane.xlu0 %913 }
 0x1c9   :  { %v961_v48 = vmul.f32 %v960_v31, %v3166_v22  ;;  %v915_v49 = vmul.f32 %v914_v47, %v3112_v1 }
 0x1ca   :  { %v894_v50 = vrot.slane %v893_v30, 2 }
 0x1cb   :  { %v962_v55 = vmul.f32 %v961_v48, %v3112_v1  ;;  %v916_v56 = vsel %vm890_vm2, %v915_v49, 0.0 }
 0x1cc   :  { %v917_v4 = vrot.slane %v916_v56, 4  ;;  %v895_v5 = vadd.f32 %v894_v50, %v893_v30 }
 0x1cd   :  { %v963_v39 = vsel %vm890_vm2, %v962_v55, 0.0 }
 0x1ce   :  { %v964_v40 = vrot.slane %v963_v39, 4  ;;  %v918_v45 = vadd.f32 %v917_v4, %v916_v56  ;;  %v896_v46 = vrot.slane %v895_v5, 1 }
 0x1d0   :  { %v965_v51 = vadd.f32 %v964_v40, %v963_v39  ;;  %v919_v52 = vrot.slane %v918_v45, 2  ;;  %v985_v57 = vpop.xlane.xlu2 %984  ;;  %v897_v32 = vadd.f32 %v896_v46, %v895_v5 }
 0x1d1   :  { %v986_v54 = vmul.f32 %v985_v57, %v3112_v1 }
 0x1d2   :  { %v898_v59 = vmax.f32 %v897_v32, 0.0  ;;  %v920_v60 = vadd.f32 %v919_v52, %v918_v45  ;;  %v966_v63 = vrot.slane %v965_v51, 2 }
 0x1d3   :  { %v987_v2 = vsel %vm890_vm2, %v986_v54, 0.0 }
 0x1d4   :  { %v988_v61 = vrot.slane %v987_v2, 4  ;;  %900 = vrot.lane.b32.xlu1 %v898_v59, %s2791_s1  ;;  %v921_v62 = vrot.slane %v920_v60, 1  ;;  %v967_v6 = vadd.f32 %v966_v63, %v965_v51 }
 0x1d6   :  { %v989_v7 = vadd.f32 %v988_v61, %v987_v2  ;;  %v922_v10 = vadd.f32 %v921_v62, %v920_v60  ;;  %v968_v13 = vrot.slane %v967_v6, 1 }
 0x1d8   :  { %v990_v14 = vrot.slane %v989_v7, 2  ;;  %v923_v15 = vmax.f32 %v922_v10, 0.0  ;;  %v969_v0 = vadd.f32 %v968_v13, %v967_v6 }
 0x1da   :  { %925 = vrot.lane.b32.xlu0 %v923_v15, %s2791_s1  ;;  %v970_v18 = vmax.f32 %v969_v0, 0.0  ;;  %v991_v19 = vadd.f32 %v990_v14, %v989_v7 }
 0x1dc   :  { %972 = vrot.lane.b32.xlu2 %v970_v18, %s2791_s1  ;;  %v992_v20 = vrot.slane %v991_v19, 1 }
 0x1de   :  { %v993_v21 = vadd.f32 %v992_v20, %v991_v19 }
 0x1e0   :  { %v994_v23 = vmax.f32 %v993_v21, 0.0 }
 0x1e2   :  { %996 = vrot.lane.b32.xlu0 %v994_v23, %s2791_s1  ;;  %s4152_s1 = sld [smem:[#allocation2 + $0x86]] }
 0x236   :  { %v973_v47 = vpop.permute.xlu2 %972 }
 0x237   :  { %v975_v48 = vmul.f32 %v973_v47, %v3112_v1 }
 0x246   :  { %v901_v26 = vpop.permute.xlu1 %900 }
 0x247   :  { %v903_v27 = vmul.f32 %v901_v26, %v3112_v1 }
 0x249   :  { %905 = vrot.lane.b32.xlu2 %v903_v27, %s2792_s19 }
 0x24c   :  { %v926_v28 = vpop.permute.xlu0 %925 }
 0x24d   :  { %v928_v29 = vmul.f32 %v926_v28, %v3112_v1 }
 0x24f   :  { %930 = vrot.lane.b32.xlu1 %v928_v29, %s2792_s19 }
 0x254   :  { %v997_v30 = vpop.permute.xlu0 %996 }
 0x255   :  { %v999_v31 = vmul.f32 %v997_v30, %v3112_v1 }
 0x257   :  { %1001 = vrot.lane.b32.xlu0 %v999_v31, %s2792_s19 }
 0x25f   :  { %977 = vrot.lane.b32.xlu0 %v975_v48, %s2792_s19  ;;  %s4167_s19 = sld [smem:[#allocation2 + $0x6]] }
 0x2a3   :  { %v906_v49 = vpop.permute.xlu2 %905 }
 0x2a4   :  { %v909_v50 = vsel %vm908_vm15, %v906_v49, 0.0 }
 0x2a5   :  { %910 = vadd.xlane.f32.xlu1 %v909_v50 }
 0x2c1   :  { %v931_v55 = vpop.permute.xlu1 %930 }
 0x2c2   :  { %v933_v56 = vsel %vm908_vm15, %v931_v55, 0.0 }
 0x2c3   :  { %934 = vadd.xlane.f32.xlu2 %v933_v56 }
 0x2c9   :  { %v1002_v4 = vpop.permute.xlu0 %1001 }
 0x2ca   :  { %v1004_v5 = vsel %vm908_vm15, %v1002_v4, 0.0 }
 0x2cb   :  { %1005 = vadd.xlane.f32.xlu2 %v1004_v5 }
 0x2d1   :  { %v978_v39 = vpop.permute.xlu0 %977 }
 0x2d2   :  { %v980_v40 = vsel %vm908_vm15, %v978_v39, 0.0 }
 0x2d3   :  { %981 = vadd.xlane.f32.xlu1 %v980_v40 }
 0x318   :  { %v911_v45 = vpop.xlane.xlu1 %910 }
 0x336   :  { %v935_v46 = vpop.xlane.xlu2 %934 }
 0x337   :  { %v936_v51 = vadd.f32 %v935_v46, %v911_v45 }
 0x339   :  { %v2596_v52 = vmul.f32 -1.442695, %v936_v51 }
 0x33b   :  { %2731 = vpow2.f32 %v2596_v52 }
 0x33e   :  { %v1006_v32 = vpop.xlane.xlu2 %1005 }
 0x341   :  { %v2732_v1 = vpop.eup %2731 }
 0x342   :  { %v940_v57 = vadd.f32 1.0, %v2732_v1 }
 0x344   :  { %2733 = vrcp.f32 %v940_v57  ;;  %v952_v6 = vand.u32 2147483648, %v940_v57  ;;  %vm946_vm4 = vweird.f32 %v940_v57  ;;  %v950_v13 = vand.u32 2147483647, %v940_v57 }
 0x346   :  { %v982_v54 = vpop.xlane.xlu1 %981  ;;  %v953_v0 = vor.u32 1.1754944e-38, %v952_v6  ;;  %vm951_vm7 = vcmp.eq.f32.partialorder %v950_v13, 8.507059e+37 }
 0x347   :  { %v1007_v59 = vadd.f32 %v1006_v32, %v982_v54 }
 0x349   :  { %v2597_v60 = vmul.f32 -1.442695, %v1007_v59 }
 0x34a   :  { %v2734_v63 = vpop.eup %2733 }
 0x34b   :  { %v942_v2 = vmul.f32 %v2734_v63, %v940_v57  ;;  %2735 = vpow2.f32 %v2597_v60  ;;  %vm947_vm6 = vweird.f32 %v2734_v63 }
 0x34c   :  { %vm948_vm5 = vmor %vm946_vm4, %vm947_vm6 }
 0x34d   :  { %v943_v61 = vsub.f32 1.0, %v942_v2 }
 0x34f   :  { %v944_v62 = vmul.f32 %v2734_v63, %v943_v61 }
 0x351   :  { %v2736_v7 = vpop.eup %2735  ;;  %v945_v10 = vadd.f32 %v2734_v63, %v944_v62 }
 0x352   :  { %v1011_v14 = vadd.f32 1.0, %v2736_v7 }
 0x353   :  { %v949_v15 = vsel %vm948_vm5, %v2734_v63, %v945_v10  ;;  %v2795_v10 = vmov 8.0  }
 0x354   :  { %2737 = vrcp.f32 %v1011_v14  ;;  %v954_v18 = vsel %vm951_vm7, %v953_v0, %v949_v15  ;;  %v1023_v29 = vand.u32 2147483648, %v1011_v14  ;;  %v1021_v31 = vand.u32 2147483647, %v1011_v14 }
 0x355   :  { %v3183_v19 = vmul.f32 %v954_v18, %v3150_v58  ;;  %v3186_v20 = vmul.f32 %v954_v18, %v3152_v53  ;;  %vm1017_vm10 = vweird.f32 %v1011_v14  ;;  %2739 = vrcp.f32 %v2795_v10 }
 0x356   :  { %v1024_v53 = vor.u32 1.1754944e-38, %v1023_v29  ;;  %vm1022_vm14 = vcmp.eq.f32.partialorder %v1021_v31, 8.507059e+37 }
 0x357   :  { %5387 = vst [vmem:[#allocation14_spill] sm:$0xff] %v3183_v19  ;;  %v1035_v27 = vrot.slane %v3186_v20, 4  ;;  %v1029_v28 = vrot.slane %v3183_v19, 4 }
 0x358   :  { %5388 = vst [vmem:[#allocation15_spill] sm:$0xff] %v3186_v20 }
 0x359   :  { %v1074_v48 = vmax.f32 %v3186_v20, %v1035_v27  ;;  %v1068_v58 = vmax.f32 %v3183_v19, %v1029_v28  ;;  %v1036_v0 = vadd.f32 %v1035_v27, %v3186_v20  ;;  %v1030_v18 = vadd.f32 %v1029_v28, %v3183_v19 }
 0x35a   :  { %v2738_v21 = vpop.eup %2737 }
 0x35b   :  { %v1013_v23 = vmul.f32 %v2738_v21, %v1011_v14  ;;  %vm1018_vm8 = vweird.f32 %v2738_v21  ;;  %v1075_v4 = vrot.slane %v1074_v48, 2  ;;  %v1069_v5 = vrot.slane %v1068_v58, 2  ;;  %v2740_v13 = vpop.eup %2739 }
 0x35c   :  { %vm1019_vm11 = vmor %vm1017_vm10, %vm1018_vm8  ;;  %v1037_v29 = vrot.slane %v1036_v0, 2  ;;  %vm1046_vm1 = vweird.f32 %v2740_v13  ;;  %vm1097_vm8 = vcmp.lt.s32.totalorder %v2865_v3, 48 }
 0x35d   :  { %v1014_v26 = vsub.f32 1.0, %v1013_v23  ;;  %v1076_v45 = vmax.f32 %v1074_v48, %v1075_v4  ;;  %v1070_v51 = vmax.f32 %v1068_v58, %v1069_v5 }
 0x35e   :  { %v1038_v58 = vadd.f32 %v1037_v29, %v1036_v0  ;;  %v96_v29 = vadd.f32 2.0, %v2871_v12 }
 0x35f   :  { %v1015_v30 = vmul.f32 %v2738_v21, %v1014_v26  ;;  %v1077_v32 = vrot.slane %v1076_v45, 1  ;;  %v1071_v54 = vrot.slane %v1070_v51, 1 }
 0x361   :  { %v1016_v47 = vadd.f32 %v2738_v21, %v1015_v30  ;;  %v1078_v63 = vmax.f32 %v1076_v45, %v1077_v32  ;;  %v1072_v61 = vmax.f32 %v1070_v51, %v1071_v54  ;;  %v1031_v30 = vrot.slane %v1030_v18, 2 }
 0x363   :  { %v1020_v49 = vsel %vm1019_vm11, %v2738_v21, %v1016_v47  ;;  %v1042_v21 = vmul.f32 8.0, %v2740_v13 }
 0x364   :  { %v1025_v50 = vsel %vm1022_vm14, %v1024_v53, %v1020_v49  ;;  %v1032_v53 = vadd.f32 %v1031_v30, %v1030_v18 }
 0x365   :  { %v3193_v55 = vmul.f32 %v1025_v50, %v3156_v8  ;;  %v3196_v56 = vmul.f32 %v1025_v50, %v3158_v9  ;;  %v1043_v31 = vsub.f32 1.0, %v1042_v21  ;;  %v1039_v50 = vrot.slane %v1038_v58, 1 }
 0x366   :  { %v1033_v4 = vrot.slane %v1032_v53, 1 }
 0x367   :  { %5389 = vst [vmem:[#allocation16_spill] sm:$0xff] %v3193_v55  ;;  %v1056_v39 = vrot.slane %v3196_v56, 4  ;;  %v1050_v40 = vrot.slane %v3193_v55, 4  ;;  %v1044_v27 = vmul.f32 %v2740_v13, %v1043_v31  ;;  %v1040_v45 = vadd.f32 %v1039_v50, %v1038_v58 }
 0x368   :  { %5390 = vst [vmem:[#allocation17_spill] sm:$0xff] %v3196_v56  ;;  %v106_v50 = vadd.f32 3.0, %v2871_v12 }
 0x369   :  { %v1086_v46 = vmax.f32 %v3196_v56, %v1056_v39  ;;  %v1080_v52 = vmax.f32 %v3193_v55, %v1050_v40  ;;  %v1057_v14 = vadd.f32 %v1056_v39, %v3196_v56  ;;  %v1051_v15 = vadd.f32 %v1050_v40, %v3193_v55 }
 0x36a   :  { %v1045_v5 = vadd.f32 %v2740_v13, %v1044_v27 }
 0x36b   :  { %v1087_v1 = vrot.slane %v1086_v46, 2  ;;  %v1081_v57 = vrot.slane %v1080_v52, 2  ;;  %v1058_v23 = vrot.slane %v1057_v14, 2  ;;  %v1052_v26 = vrot.slane %v1051_v15, 2 }
 0x36c   :  { %v1047_v51 = vsel %vm1046_vm1, %v2740_v13, %v1045_v5  ;;  %vm1106_vm1 = vcmp.lt.s32.totalorder %v2865_v3, 32 }
 0x36d   :  { %v1088_v8 = vmax.f32 %v1086_v46, %v1087_v1  ;;  %v1082_v59 = vmax.f32 %v1080_v52, %v1081_v57  ;;  %v1059_v47 = vadd.f32 %v1058_v23, %v1057_v14  ;;  %v1053_v48 = vadd.f32 %v1052_v26, %v1051_v15 }
 0x36e   :  { %v1034_v46 = vadd.f32 %v1033_v4, %v1032_v53  ;;  %v1049_v57 = vmul.f32 %v1047_v51, %v1040_v45 }
 0x36f   :  { %v1089_v9 = vrot.slane %v1088_v8, 1  ;;  %v1083_v60 = vrot.slane %v1082_v59, 1  ;;  %v1060_v49 = vrot.slane %v1059_v47, 1  ;;  %v1054_v28 = vrot.slane %v1053_v48, 1 }
 0x370   :  { %v1048_v32 = vmul.f32 %v1047_v51, %v1034_v46 }
 0x371   :  { %v1090_v2 = vmax.f32 %v1088_v8, %v1089_v9  ;;  %v1084_v62 = vmax.f32 %v1082_v59, %v1083_v60  ;;  %v1061_v39 = vadd.f32 %v1060_v49, %v1059_v47  ;;  %v1055_v40 = vadd.f32 %v1054_v28, %v1053_v48 }
 0x372   :  { %v105_v28 = vadd.f32 3.0, %v2869_v11 }
 0x373   :  { %v1092_v6 = vsel %vm1064_vm9, %v1078_v63, %v1090_v2  ;;  %v1091_v7 = vsel %vm1064_vm9, %v1072_v61, %v1084_v62  ;;  %v1063_v52 = vmul.f32 %v1061_v39, %v1047_v51  ;;  %v1062_v1 = vmul.f32 %v1055_v40, %v1047_v51 }
 0x374   :  { %1149 = vrot.lane.b32.xlu0 %v1092_v6, %s2793_s20  ;;  %1155 = vrot.lane.b32.xlu1 %v1091_v7, %s2794_s21  ;;  %v3226_v59 = vmul.f32 %v1092_v6, %v2962_v44  ;;  %v3233_v9 = vmul.f32 %v1091_v7, %v2952_v41  ;;  %v45_v2 = vadd.f32 -3.0, %v2869_v11  ;;  %v46_v61 = vadd.f32 -3.0, %v2871_v12 }
 0x375   :  { %1147 = vrot.lane.b32.xlu2 %v1091_v7, %s2793_s20  ;;  %v1066_v8 = vsel %vm1064_vm9, %v1049_v57, %v1063_v52  ;;  %v1065_v54 = vsel %vm1064_vm9, %v1048_v32, %v1062_v1  ;;  %v56_v1 = vadd.f32 -2.0, %v2871_v12 }
 0x376   :  { %5391 = vst [vmem:[#allocation18_spill] sm:$0xff] %v3226_v59  ;;  %v3245_v60 = vmul.f32 %v1065_v54, %v2952_v41  ;;  %v3258_v41 = vmul.f32 %v1066_v8, %v2962_v44  ;;  %vm47_vm2 = vcmp.ge.f32.partialorder %v45_v2, 0.0  ;;  %vm49_vm15 = vcmp.le.f32.partialorder %v45_v2, 15.0 }
 0x377   :  { %5392 = vst [vmem:[#allocation19_spill] sm:$0xff] %v3233_v9  ;;  %vm48_vm6 = vcmp.ge.f32.partialorder %v46_v61, 0.0  ;;  %vm50_vm4 = vcmp.le.f32.partialorder %v46_v61, 15.0  ;;  %vm51_vm5 = vmand %vm47_vm2, %vm49_vm15  ;;  %vm98_vm2 = vcmp.ge.f32.partialorder %v96_v29, 0.0  ;;  %vm100_vm15 = vcmp.le.f32.partialorder %v96_v29, 15.0 }
 0x378   :  { %5393 = vst [vmem:[#allocation20_spill] sm:$0xff] %v3245_v60  ;;  %vm52_vm7 = vmand %vm48_vm6, %vm50_vm4  ;;  %vm1133_vm4 = vcmp.lt.s32.totalorder %v2865_v3, 96 }
 0x379   :  { %5394 = vst [vmem:[#allocation21_spill] sm:$0xff] %v3258_v41  ;;  %vm102_vm6 = vmand %vm98_vm2, %vm100_vm15  ;;  %vm1142_vm15 = vcmp.lt.s32.totalorder %v2865_v3, 80 }
 0x37c   :  { %1163 = vrot.lane.b32.xlu0 %v1091_v7, %s2781_s22  ;;  %1165 = vrot.lane.b32.xlu1 %v1092_v6, %s2781_s22 }
 0x37d   :  { %1157 = vrot.lane.b32.xlu2 %v1092_v6, %s2794_s21 }
 0x384   :  { %1175 = vrot.lane.b32.xlu0 %v1092_v6, %s2786_s27  ;;  %1181 = vrot.lane.b32.xlu1 %v1091_v7, %s2796_s23 }
 0x385   :  { %1173 = vrot.lane.b32.xlu2 %v1091_v7, %s2786_s27 }
 0x38c   :  { %1189 = vrot.lane.b32.xlu0 %v1091_v7, %s2797_s3  ;;  %1191 = vrot.lane.b32.xlu1 %v1092_v6, %s2797_s3  ;;  %v5395_v7 = vmov 0.0  }
 0x38d   :  { %1183 = vrot.lane.b32.xlu2 %v1092_v6, %s2796_s23  ;;  %v55_v6 = vadd.f32 -2.0, %v2869_v11  ;;  %v3289_v10 = vsel %vm51_vm5, 1.0, %v5395_v7  ;;  %v3292_v13 = vsel %vm52_vm7, 1.0, %v5395_v7  ;;  %v3349_v4 = vsel %vm102_vm6, 1.0, %v5395_v7 }
 0x38e   :  { %vm107_vm5 = vcmp.ge.f32.partialorder %v105_v28, 0.0  ;;  %vm109_vm7 = vcmp.le.f32.partialorder %v105_v28, 15.0  ;;  %vm58_vm6 = vcmp.ge.f32.partialorder %v56_v1, 0.0 }
 0x38f   :  { %vm57_vm10 = vcmp.ge.f32.partialorder %v55_v6, 0.0  ;;  %vm59_vm11 = vcmp.le.f32.partialorder %v55_v6, 15.0 }
 0x390   :  { %vm61_vm14 = vmand %vm57_vm10, %vm59_vm11  ;;  %vm108_vm10 = vcmp.ge.f32.partialorder %v106_v50, 0.0  ;;  %vm110_vm11 = vcmp.le.f32.partialorder %v106_v50, 15.0 }
 0x391   :  { %v3317_v30 = vsel %vm61_vm14, 1.0, %v5395_v7  ;;  %vm111_vm14 = vmand %vm107_vm5, %vm109_vm7  ;;  %vm60_vm5 = vcmp.le.f32.partialorder %v56_v1, 15.0 }
 0x392   :  { %vm112_vm2 = vmand %vm108_vm10, %vm110_vm11  ;;  %v3380_v57 = vsel %vm111_vm14, 1.0, %v5395_v7  ;;  %vm2153_vm11 = vcmp.lt.s32.totalorder %v2865_v3, 125 }
 0x393   :  { %v3383_v32 = vsel %vm112_vm2, 1.0, %v5395_v7  ;;  %vm62_vm7 = vmand %vm58_vm6, %vm60_vm5 }
 0x394   :  { %1104 = vrot.lane.b32.xlu1 %v1066_v8, %s2794_s21  ;;  %1093 = vrot.lane.b32.xlu0 %v1065_v54, %s2793_s20 }
 0x395   :  { %1121 = vrot.lane.b32.xlu2 %v1065_v54, %s2786_s27 }
 0x39c   :  { %1131 = vrot.lane.b32.xlu1 %v1066_v8, %s2796_s23  ;;  %1095 = vrot.lane.b32.xlu0 %v1066_v8, %s2793_s20  ;;  %s4204_s20 = sld [smem:[#allocation2 + $0xaa]] }
 0x39d   :  { %1285 = vrot.lane.b32.xlu2 %v3226_v59, %s2798_s24 }
 0x3a4   :  { %1140 = vrot.lane.b32.xlu1 %v1066_v8, %s2797_s3  ;;  %1102 = vrot.lane.b32.xlu0 %v1065_v54, %s2794_s21 }
 0x3a5   :  { %1456 = vrot.lane.b32.xlu2 %v3233_v9, %s2799_s0 }
 0x3ac   :  { %1283 = vrot.lane.b32.xlu1 %v3233_v9, %s2798_s24  ;;  %1111 = vrot.lane.b32.xlu0 %v1065_v54, %s2781_s22 }
 0x3ad   :  { %1628 = vrot.lane.b32.xlu2 %v3233_v9, %s2783_s25 }
 0x3b4   :  { %1890 = vrot.lane.b32.xlu1 %v3226_v59, %s2784_s26  ;;  %1113 = vrot.lane.b32.xlu0 %v1066_v8, %s2781_s22  ;;  %s2626_s22 = sld [smem:[#allocation2 + $0x82]] }
 0x3b5   :  { %1271 = vrot.lane.b32.xlu2 %v3245_v60, %s2798_s24 }
 0x3bc   :  { %2063 = vrot.lane.b32.xlu1 %v3226_v59, %s2800_s28  ;;  %1123 = vrot.lane.b32.xlu0 %v1066_v8, %s2786_s27  ;;  %s2625_s27 = sld [smem:[#allocation2 + $0x2]] }
 0x3bd   :  { %1444 = vrot.lane.b32.xlu2 %v3245_v60, %s2799_s0 }
 0x3c4   :  { %2236 = vrot.lane.b32.xlu1 %v3226_v59, %s2801_s29  ;;  %1129 = vrot.lane.b32.xlu0 %v1065_v54, %s2796_s23 }
 0x3c5   :  { %1618 = vrot.lane.b32.xlu2 %v3258_v41, %s2783_s25 }
 0x3cc   :  { %1138 = vrot.lane.b32.xlu0 %v1065_v54, %s2797_s3  ;;  %1616 = vrot.lane.b32.xlu1 %v3245_v60, %s2783_s25  ;;  %s4216_s3 = sld [smem:[#allocation2 + $0x1c]] }
 0x3cd   :  { %1876 = vrot.lane.b32.xlu2 %v3245_v60, %s2784_s26 }
 0x3cf   :  { %v1148_v63 = vpop.permute.xlu2 %1147 }
 0x3d4   :  { %1458 = vrot.lane.b32.xlu0 %v3226_v59, %s2799_s0 }
 0x3d5   :  { %2049 = vrot.lane.b32.xlu2 %v3245_v60, %s2800_s28 }
 0x3d7   :  { %v3274_v44 = vpop.permute.xlu2 %1157 }
 0x3dc   :  { %1630 = vrot.lane.b32.xlu0 %v3226_v59, %s2783_s25 }
 0x3dd   :  { %2222 = vrot.lane.b32.xlu2 %v3245_v60, %s2801_s29 }
 0x3df   :  { %v3282_v62 = vpop.permute.xlu2 %1173 }
 0x3e4   :  { %1888 = vrot.lane.b32.xlu0 %v3233_v9, %s2784_s26 }
 0x3e6   :  { %v1150_v14 = vpop.permute.xlu0 %1149  ;;  %v3294_v15 = vpop.permute.xlu1 %1155 }
 0x3e7   :  { %v1151_v0 = vsel %vm1097_vm8, %v1148_v63, %v1150_v14  ;;  %v1152_v18 = vsel %vm1097_vm8, %v1150_v14, %v1148_v63  ;;  %v3300_v21 = vpop.permute.xlu2 %1183  ;;  %v1160_v31 = vsel %vm1106_vm1, %v3274_v44, %v3294_v15  ;;  %v64_v14 = vsel %vm62_vm7, 1.0, %v5395_v7 }
 0x3e8   :  { %v3303_v23 = vmul.f32 %v1152_v18, %v3289_v10  ;;  %v3306_v26 = vmul.f32 %v1151_v0, %v3292_v13  ;;  %v3337_v49 = vmul.f32 %v1160_v31, %v3317_v30  ;;  %v1159_v0 = vsel %vm1106_vm1, %v3294_v15, %v3274_v44 }
 0x3e9   :  { %v3410_v31 = vmul.f32 %v1159_v0, %v64_v14 }
 0x3ea   :  { %1211 = vrot.lane.b32.xlu1 %v3303_v23, %s2798_s24  ;;  %1213 = vrot.lane.b32.xlu2 %v3306_v26, %s2798_s24 }
 0x3eb   :  { %5403 = vst [vmem:[#allocation29_spill] sm:$0xff] %v3410_v31 }
 0x3ec   :  { %2061 = vrot.lane.b32.xlu0 %v3233_v9, %s2800_s28 }
 0x3ee   :  { %v3323_v47 = vpop.permute.xlu0 %1163  ;;  %v3325_v48 = vpop.permute.xlu1 %1165 }
 0x3ef   :  { %v1167_v58 = vsel %vm206_vm12, %v3323_v47, %v3325_v48  ;;  %v3331_v53 = vpop.permute.xlu2 %1121  ;;  %v1168_v0 = vsel %vm206_vm12, %v3325_v48, %v3323_v47 }
 0x3f0   :  { %v3334_v27 = vmul.f32 %v1167_v58, %v2930_v35 }
 0x3f2   :  { %5396 = vst [vmem:[#allocation22_spill] sm:$0xff] %v3334_v27  ;;  %1261 = vrot.lane.b32.xlu1 %v3334_v27, %s2798_s24  ;;  %1235 = vrot.lane.b32.xlu2 %v3337_v49, %s2798_s24 }
 0x3f4   :  { %2234 = vrot.lane.b32.xlu0 %v3233_v9, %s2801_s29 }
 0x3f6   :  { %v3351_v5 = vpop.permute.xlu0 %1175  ;;  %v3353_v39 = vpop.permute.xlu1 %1181 }
 0x3f7   :  { %v1177_v40 = vsel %vm711_vm0, %v3282_v62, %v3351_v5  ;;  %v1186_v45 = vsel %vm1133_vm4, %v3300_v21, %v3353_v39  ;;  %v3363_v46 = vpop.permute.xlu2 %1285 }
 0x3f8   :  { %v3366_v51 = vmul.f32 %v1177_v40, %v3026_v24  ;;  %v3369_v52 = vmul.f32 %v1186_v45, %v3349_v4 }
 0x3fa   :  { %5397 = vst [vmem:[#allocation23_spill] sm:$0xff] %v3366_v51  ;;  %1333 = vrot.lane.b32.xlu1 %v3369_v52, %s2798_s24  ;;  %1307 = vrot.lane.b32.xlu2 %v3366_v51, %s2798_s24 }
 0x3fb   :  { %5398 = vst [vmem:[#allocation24_spill] sm:$0xff] %v3369_v52 }
 0x3fc   :  { %1273 = vrot.lane.b32.xlu0 %v3258_v41, %s2798_s24 }
 0x3fe   :  { %v1190_v8 = vpop.permute.xlu0 %1189  ;;  %v1192_v54 = vpop.permute.xlu1 %1191 }
 0x3ff   :  { %v1193_v12 = vsel %vm1142_vm15, %v1190_v8, %v1192_v54  ;;  %v1194_v63 = vsel %vm1142_vm15, %v1192_v54, %v1190_v8  ;;  %v3389_v2 = vpop.permute.xlu2 %1456 }
 0x400   :  { %5399 = vst [vmem:[#allocation25_spill] sm:$0xff] %v3389_v2  ;;  %v3392_v61 = vmul.f32 %v1193_v12, %v3380_v57  ;;  %v3395_v6 = vmul.f32 %v1194_v63, %v3383_v32 }
 0x402   :  { %5400 = vst [vmem:[#allocation26_spill] sm:$0xff] %v3392_v61  ;;  %1355 = vrot.lane.b32.xlu1 %v3392_v61, %s2798_s24  ;;  %1357 = vrot.lane.b32.xlu2 %v3395_v6, %s2798_s24 }
 0x403   :  { %5401 = vst [vmem:[#allocation27_spill] sm:$0xff] %v3395_v6 }
 0x404   :  { %1446 = vrot.lane.b32.xlu0 %v3258_v41, %s2799_s0 }
 0x406   :  { %v1094_v18 = vpop.permute.xlu0 %1093  ;;  %v1105_v58 = vpop.permute.xlu1 %1104 }
 0x407   :  { %v3408_v29 = vpop.permute.xlu2 %1628 }
 0x408   :  { %5402 = vst [vmem:[#allocation28_spill] sm:$0xff] %v3408_v29 }
 0x40a   :  { %1410 = vrot.lane.b32.xlu1 %v3410_v31, %s2799_s0  ;;  %1384 = vrot.lane.b32.xlu2 %v3303_v23, %s2799_s0 }
 0x40c   :  { %1878 = vrot.lane.b32.xlu0 %v3258_v41, %s2784_s26 }
 0x40e   :  { %v1096_v28 = vpop.permute.xlu0 %1095 }
 0x40f   :  { %v1098_v50 = vsel %vm1097_vm8, %v1094_v18, %v1096_v28  ;;  %v1099_v44 = vsel %vm1097_vm8, %v1096_v28, %v1094_v18  ;;  %v3422_v15 = vpop.permute.xlu2 %1271 }
 0x410   :  { %v3425_v40 = vmul.f32 %v1099_v44, %v3289_v10  ;;  %v3428_v45 = vmul.f32 %v1098_v50, %v3292_v13  ;;  %v1132_v13 = vpop.permute.xlu1 %1131  ;;  %v95_v50 = vadd.f32 2.0, %v2869_v11 }
 0x412   :  { %1558 = vrot.lane.b32.xlu1 %v3306_v26, %s2783_s25  ;;  %1582 = vrot.lane.b32.xlu2 %v3410_v31, %s2783_s25  ;;  %vm97_vm8 = vcmp.ge.f32.partialorder %v95_v50, 0.0 }
 0x414   :  { %2051 = vrot.lane.b32.xlu0 %v3258_v41, %s2800_s28 }
 0x416   :  { %v1103_v1 = vpop.permute.xlu0 %1102 }
 0x417   :  { %v1107_v8 = vsel %vm1106_vm1, %v1103_v1, %v1105_v58  ;;  %v1108_v10 = vsel %vm1106_vm1, %v1105_v58, %v1103_v1  ;;  %v3440_v54 = vpop.permute.xlu2 %1444  ;;  %v1178_v1 = vsel %vm711_vm0, %v3351_v5, %v3282_v62  ;;  %vm99_vm1 = vcmp.le.f32.partialorder %v95_v50, 15.0 }
 0x418   :  { %5404 = vst [vmem:[#allocation30_spill] sm:$0xff] %v3440_v54  ;;  %v3443_v12 = vmul.f32 %v1108_v10, %v3317_v30  ;;  %v3445_v63 = vmul.f32 %v1107_v8, %v64_v14  ;;  %v3462_v14 = vmul.f32 %v1168_v0, %v2920_v33  ;;  %v1141_v58 = vpop.permute.xlu1 %1140  ;;  %v3490_v8 = vmul.f32 %v1178_v1, %v3029_v25  ;;  %vm101_vm10 = vmand %vm97_vm8, %vm99_vm1 }
 0x419   :  { %v103_v5 = vsel %vm101_vm10, 1.0, %v5395_v7  ;;  %v1185_v0 = vsel %vm1133_vm4, %v3353_v39, %v3300_v21 }
 0x41a   :  { %1580 = vrot.lane.b32.xlu1 %v3337_v49, %s2783_s25  ;;  %1816 = vrot.lane.b32.xlu2 %v3303_v23, %s2784_s26  ;;  %5406 = vst [vmem:[#allocation32_spill] sm:$0xff] %v3462_v14  ;;  %v3516_v56 = vmul.f32 %v1185_v0, %v103_v5 }
 0x41b   :  { %5408 = vst [vmem:[#allocation34_spill] sm:$0xff] %v3490_v8 }
 0x41c   :  { %2224 = vrot.lane.b32.xlu0 %v3258_v41, %s2801_s29  ;;  %5411 = vst [vmem:[#allocation37_spill] sm:$0xff] %v3516_v56 }
 0x41e   :  { %v3457_v18 = vpop.permute.xlu0 %1111 }
 0x41f   :  { %v3459_v30 = vpop.permute.xlu2 %1618 }
 0x420   :  { %5405 = vst [vmem:[#allocation31_spill] sm:$0xff] %v3459_v30  ;;  %v3478_v48 = vpop.permute.xlu1 %1283 }
 0x422   :  { %1432 = vrot.lane.b32.xlu1 %v3462_v14, %s2799_s0  ;;  %1434 = vrot.lane.b32.xlu2 %v3334_v27, %s2799_s0 }
 0x424   :  { %1237 = vrot.lane.b32.xlu0 %v3410_v31, %s2798_s24 }
 0x426   :  { %v3470_v28 = vpop.permute.xlu0 %1113 }
 0x427   :  { %v3472_v47 = vpop.permute.xlu2 %1876 }
 0x428   :  { %5407 = vst [vmem:[#allocation33_spill] sm:$0xff] %v3472_v47  ;;  %v3500_v11 = vpop.permute.xlu1 %1890 }
 0x429   :  { %5410 = vst [vmem:[#allocation36_spill] sm:$0xff] %v3500_v11 }
 0x42a   :  { %1991 = vrot.lane.b32.xlu1 %v3306_v26, %s2800_s28  ;;  %1606 = vrot.lane.b32.xlu2 %v3334_v27, %s2783_s25 }
 0x42c   :  { %1259 = vrot.lane.b32.xlu0 %v3462_v14, %s2798_s24 }
 0x42e   :  { %v3483_v44 = vpop.permute.xlu0 %1123 }
 0x42f   :  { %v3494_v10 = vpop.permute.xlu2 %2049 }
 0x430   :  { %5409 = vst [vmem:[#allocation35_spill] sm:$0xff] %v3494_v10 }
 0x432   :  { %1604 = vrot.lane.b32.xlu1 %v3462_v14, %s2783_s25  ;;  %2013 = vrot.lane.b32.xlu2 %v3337_v49, %s2800_s28 }
 0x434   :  { %1309 = vrot.lane.b32.xlu0 %v3490_v8, %s2798_s24 }
 0x436   :  { %v1130_v62 = vpop.permute.xlu0 %1129 }
 0x437   :  { %v1134_v50 = vsel %vm1133_vm4, %v1130_v62, %v1132_v13  ;;  %v1135_v1 = vsel %vm1133_vm4, %v1132_v13, %v1130_v62  ;;  %v3524_v21 = vpop.permute.xlu2 %2222  ;;  %v3530_v62 = vpop.permute.xlu1 %2063  ;;  %vm1375_vm4 = vcmp.lt.s32.totalorder %v2865_v3, 2 }
 0x438   :  { %v3511_v22 = vmul.f32 %v1134_v50, %v103_v5  ;;  %v3514_v20 = vmul.f32 %v1135_v1, %v3349_v4  ;;  %5412 = vst [vmem:[#allocation38_spill] sm:$0xff] %v3524_v21 }
 0x439   :  { %5413 = vst [vmem:[#allocation39_spill] sm:$0xff] %v3530_v62 }
 0x43a   :  { %1842 = vrot.lane.b32.xlu1 %v3410_v31, %s2784_s26  ;;  %1866 = vrot.lane.b32.xlu2 %v3334_v27, %s2784_s26 }
 0x43c   :  { %1331 = vrot.lane.b32.xlu0 %v3516_v56, %s2798_s24 }
 0x43e   :  { %v1139_v39 = vpop.permute.xlu0 %1138 }
 0x43f   :  { %v1143_v13 = vsel %vm1142_vm15, %v1139_v39, %v1141_v58  ;;  %v1144_v4 = vsel %vm1142_vm15, %v1141_v58, %v1139_v39  ;;  %v3548_v1 = vpop.permute.xlu1 %2236 }
 0x440   :  { %v3533_v5 = vmul.f32 %v1143_v13, %v3380_v57  ;;  %v3536_v0 = vmul.f32 %v1144_v4, %v3383_v32  ;;  %5415 = vst [vmem:[#allocation41_spill] sm:$0xff] %v3548_v1 }
 0x442   :  { %2164 = vrot.lane.b32.xlu1 %v3306_v26, %s2801_s29  ;;  %2186 = vrot.lane.b32.xlu2 %v3337_v49, %s2801_s29 }
 0x444   :  { %1386 = vrot.lane.b32.xlu0 %v3306_v26, %s2799_s0  ;;  %v3544_v50 = vpop.permute.xlu2 %1213 }
 0x446   :  { %v3546_v58 = vpop.permute.xlu0 %1458 }
 0x447   :  { %5414 = vst [vmem:[#allocation40_spill] sm:$0xff] %v3546_v58  ;;  %v3564_v39 = vpop.permute.xlu1 %1616 }
 0x448   :  { %5417 = vst [vmem:[#allocation43_spill] sm:$0xff] %v3564_v39 }
 0x44a   :  { %1864 = vrot.lane.b32.xlu1 %v3462_v14, %s2784_s26  ;;  %1482 = vrot.lane.b32.xlu2 %v3490_v8, %s2799_s0 }
 0x44c   :  { %1408 = vrot.lane.b32.xlu0 %v3337_v49, %s2799_s0  ;;  %v3556_v57 = vpop.permute.xlu2 %1235 }
 0x44e   :  { %v3558_v32 = vpop.permute.xlu0 %1630 }
 0x44f   :  { %5416 = vst [vmem:[#allocation42_spill] sm:$0xff] %v3558_v32 }
 0x452   :  { %1480 = vrot.lane.b32.xlu1 %v3366_v51, %s2799_s0  ;;  %2039 = vrot.lane.b32.xlu2 %v3334_v27, %s2800_s28 }
 0x454   :  { %1556 = vrot.lane.b32.xlu0 %v3303_v23, %s2783_s25  ;;  %v3568_v13 = vpop.permute.xlu2 %1307 }
 0x456   :  { %v3570_v4 = vpop.permute.xlu0 %1888 }
 0x457   :  { %5418 = vst [vmem:[#allocation44_spill] sm:$0xff] %v3570_v4 }
 0x45a   :  { %2037 = vrot.lane.b32.xlu1 %v3462_v14, %s2800_s28  ;;  %1654 = vrot.lane.b32.xlu2 %v3490_v8, %s2783_s25 }
 0x45c   :  { %1818 = vrot.lane.b32.xlu0 %v3306_v26, %s2784_s26  ;;  %v3578_v19 = vpop.permute.xlu1 %1211  ;;  %v3580_v55 = vpop.permute.xlu2 %1357 }
 0x45e   :  { %v3582_v43 = vpop.permute.xlu0 %2061 }
 0x45f   :  { %5419 = vst [vmem:[#allocation45_spill] sm:$0xff] %v3582_v43 }
 0x462   :  { %1652 = vrot.lane.b32.xlu1 %v3366_v51, %s2783_s25  ;;  %2212 = vrot.lane.b32.xlu2 %v3334_v27, %s2801_s29 }
 0x464   :  { %1989 = vrot.lane.b32.xlu0 %v3303_v23, %s2800_s28  ;;  %v3590_v42 = vpop.permute.xlu1 %1261  ;;  %v3592_v34 = vpop.permute.xlu2 %1384 }
 0x466   :  { %v3594_v36 = vpop.permute.xlu0 %2234 }
 0x467   :  { %5420 = vst [vmem:[#allocation46_spill] sm:$0xff] %v3594_v36 }
 0x46a   :  { %2210 = vrot.lane.b32.xlu1 %v3462_v14, %s2801_s29  ;;  %1912 = vrot.lane.b32.xlu2 %v3366_v51, %s2784_s26 }
 0x46c   :  { %1840 = vrot.lane.b32.xlu0 %v3337_v49, %s2784_s26  ;;  %v3602_v38 = vpop.permute.xlu1 %1333  ;;  %v3604_v37 = vpop.permute.xlu2 %1582 }
 0x46d   :  { %5421 = vst [vmem:[#allocation47_spill] sm:$0xff] %v3604_v37 }
 0x46e   :  { %v3606_v7 = vpop.permute.xlu0 %1273 }
 0x472   :  { %1506 = vrot.lane.b32.xlu1 %v3369_v52, %s2799_s0  ;;  %1528 = vrot.lane.b32.xlu2 %v3392_v61, %s2799_s0 }
 0x474   :  { %2162 = vrot.lane.b32.xlu0 %v3303_v23, %s2801_s29  ;;  %v3614_v17 = vpop.permute.xlu1 %1355  ;;  %v3616_v16 = vpop.permute.xlu2 %1816 }
 0x475   :  { %5422 = vst [vmem:[#allocation48_spill] sm:$0xff] %v3616_v16  ;;  %v1115_v16 = vsel %vm206_vm12, %v3457_v18, %v3470_v28 }
 0x476   :  { %v3618_v21 = vpop.permute.xlu0 %1446  ;;  %v3709_v60 = vmul.f32 %v1115_v16, %v2930_v35 }
 0x477   :  { %5423 = vst [vmem:[#allocation49_spill] sm:$0xff] %v3618_v21 }
 0x478   :  { %5434 = vst [vmem:[#allocation60_spill] sm:$0xff] %v3709_v60 }
 0x47a   :  { %1678 = vrot.lane.b32.xlu1 %v3369_v52, %s2783_s25  ;;  %2085 = vrot.lane.b32.xlu2 %v3366_v51, %s2800_s28 }
 0x47c   :  { %2015 = vrot.lane.b32.xlu0 %v3410_v31, %s2800_s28  ;;  %v3626_v10 = vpop.permute.xlu1 %1410  ;;  %v1435_v47 = vpop.permute.xlu2 %1434 }
 0x47d   :  { %5424 = vst [vmem:[#allocation50_spill] sm:$0xff] %v3626_v10 }
 0x47e   :  { %v3628_v54 = vpop.permute.xlu0 %1878 }
 0x47f   :  { %5425 = vst [vmem:[#allocation51_spill] sm:$0xff] %v3628_v54 }
 0x482   :  { %1702 = vrot.lane.b32.xlu1 %v3395_v6, %s2783_s25  ;;  %1936 = vrot.lane.b32.xlu2 %v3516_v56, %s2784_s26 }
 0x484   :  { %2188 = vrot.lane.b32.xlu0 %v3410_v31, %s2801_s29  ;;  %v3636_v21 = vpop.permute.xlu1 %1558  ;;  %v1607_v36 = vpop.permute.xlu2 %1606 }
 0x486   :  { %v3638_v1 = vpop.permute.xlu0 %2051 }
 0x487   :  { %5426 = vst [vmem:[#allocation52_spill] sm:$0xff] %v3638_v1 }
 0x48a   :  { %2260 = vrot.lane.b32.xlu1 %v3490_v8, %s2801_s29  ;;  %2111 = vrot.lane.b32.xlu2 %v3369_v52, %s2800_s28 }
 0x48c   :  { %1504 = vrot.lane.b32.xlu0 %v3516_v56, %s2799_s0  ;;  %v3646_v54 = vpop.permute.xlu1 %1580  ;;  %v3648_v43 = vpop.permute.xlu2 %2013 }
 0x48d   :  { %5427 = vst [vmem:[#allocation53_spill] sm:$0xff] %v3646_v54 }
 0x48e   :  { %5428 = vst [vmem:[#allocation54_spill] sm:$0xff] %v3648_v43  ;;  %v3650_v62 = vpop.permute.xlu0 %2224 }
 0x48f   :  { %5429 = vst [vmem:[#allocation55_spill] sm:$0xff] %v3650_v62 }
 0x492   :  { %2109 = vrot.lane.b32.xlu1 %v3516_v56, %s2800_s28  ;;  %1960 = vrot.lane.b32.xlu2 %v3392_v61, %s2784_s26 }
 0x494   :  { %1676 = vrot.lane.b32.xlu0 %v3516_v56, %s2783_s25  ;;  %v1433_v1 = vpop.permute.xlu1 %1432  ;;  %v1867_v62 = vpop.permute.xlu2 %1866 }
 0x495   :  { %v3661_v4 = vsel %vm1375_vm4, %v1433_v1, %v1435_v47  ;;  %v3665_v43 = vsel %vm1375_vm4, %v1435_v47, %v1433_v1  ;;  %v1116_v1 = vsel %vm206_vm12, %v3470_v28, %v3457_v18  ;;  %v1126_v18 = vsel %vm711_vm0, %v3483_v44, %v3331_v53 }
 0x496   :  { %5430 = vst [vmem:[#allocation56_spill] sm:$0xff] %v3661_v4  ;;  %v3667_v11 = vpop.permute.xlu0 %1237  ;;  %v3706_v9 = vmul.f32 %v1116_v1, %v2920_v33  ;;  %v3724_v16 = vmul.f32 %v1126_v18, %v3029_v25  ;;  %vm1980_vm12 = vcmp.lt.s32.totalorder %v2865_v3, 126 }
 0x497   :  { %5431 = vst [vmem:[#allocation57_spill] sm:$0xff] %v3665_v43 }
 0x498   :  { %5435 = vst [vmem:[#allocation61_spill] sm:$0xff] %v3724_v16 }
 0x49a   :  { %2284 = vrot.lane.b32.xlu1 %v3369_v52, %s2801_s29  ;;  %2133 = vrot.lane.b32.xlu2 %v3392_v61, %s2800_s28 }
 0x49c   :  { %1914 = vrot.lane.b32.xlu0 %v3490_v8, %s2784_s26  ;;  %v3675_v29 = vpop.permute.xlu1 %1991  ;;  %v3677_v32 = vpop.permute.xlu2 %2186 }
 0x49e   :  { %v3679_v58 = vpop.permute.xlu0 %1259 }
 0x4a2   :  { %1225 = vrot.lane.b32.xlu1 %v3445_v63, %s2798_s24  ;;  %1198 = vrot.lane.b32.xlu2 %v3425_v40, %s2798_s24 }
 0x4a4   :  { %1530 = vrot.lane.b32.xlu0 %v3395_v6, %s2799_s0  ;;  %v1605_v47 = vpop.permute.xlu1 %1604  ;;  %v1483_v39 = vpop.permute.xlu2 %1482 }
 0x4a5   :  { %v3693_v2 = vsel %vm414_vm3, %v1605_v47, %v1607_v36  ;;  %v3697_v30 = vsel %vm414_vm3, %v1607_v36, %v1605_v47 }
 0x4a6   :  { %5432 = vst [vmem:[#allocation58_spill] sm:$0xff] %v3693_v2  ;;  %v3703_v59 = vpop.permute.xlu0 %1309 }
 0x4a7   :  { %5433 = vst [vmem:[#allocation59_spill] sm:$0xff] %v3697_v30 }
 0x4aa   :  { %1247 = vrot.lane.b32.xlu1 %v3706_v9, %s2798_s24  ;;  %1249 = vrot.lane.b32.xlu2 %v3709_v60, %s2798_s24 }
 0x4ac   :  { %2087 = vrot.lane.b32.xlu0 %v3490_v8, %s2800_s28  ;;  %v1843_v36 = vpop.permute.xlu1 %1842  ;;  %v2040_v33 = vpop.permute.xlu2 %2039 }
 0x4ae   :  { %v3721_v28 = vpop.permute.xlu0 %1331 }
 0x4b2   :  { %1297 = vrot.lane.b32.xlu1 %v3724_v16, %s2798_s24  ;;  %1321 = vrot.lane.b32.xlu2 %v3514_v20, %s2798_s24 }
 0x4b4   :  { %1700 = vrot.lane.b32.xlu0 %v3392_v61, %s2783_s25  ;;  %v2165_v35 = vpop.permute.xlu1 %2164  ;;  %v1655_v47 = vpop.permute.xlu2 %1654 }
 0x4b6   :  { %v3732_v1 = vpop.permute.xlu0 %1386 }
 0x4ba   :  { %1319 = vrot.lane.b32.xlu1 %v3511_v22, %s2798_s24  ;;  %1343 = vrot.lane.b32.xlu2 %v3533_v5, %s2798_s24 }
 0x4bc   :  { %1938 = vrot.lane.b32.xlu0 %v3369_v52, %s2784_s26  ;;  %v1865_v25 = vpop.permute.xlu1 %1864  ;;  %v2213_v30 = vpop.permute.xlu2 %2212 }
 0x4bd   :  { %v3742_v18 = vsel %vm559_vm13, %v1865_v25, %v1867_v62  ;;  %v3746_v2 = vsel %vm559_vm13, %v1867_v62, %v1865_v25 }
 0x4be   :  { %5436 = vst [vmem:[#allocation62_spill] sm:$0xff] %v3742_v18  ;;  %v3748_v8 = vpop.permute.xlu0 %1408 }
 0x4bf   :  { %5437 = vst [vmem:[#allocation63_spill] sm:$0xff] %v3746_v2 }
 0x4c0   :  { %5438 = vst [vmem:[#allocation64_spill] sm:$0xff] %v3748_v8 }
 0x4c2   :  { %1373 = vrot.lane.b32.xlu1 %v3428_v45, %s2799_s0  ;;  %1398 = vrot.lane.b32.xlu2 %v3445_v63, %s2799_s0 }
 0x4c4   :  { %2258 = vrot.lane.b32.xlu0 %v3366_v51, %s2801_s29  ;;  %v1481_v52 = vpop.permute.xlu1 %1480  ;;  %v3764_v25 = vpop.permute.xlu2 %1912 }
 0x4c5   :  { %v3758_v18 = vsel %vm1375_vm4, %v1481_v52, %v1483_v39  ;;  %v3762_v62 = vsel %vm1375_vm4, %v1483_v39, %v1481_v52  ;;  %5441 = vst [vmem:[#allocation67_spill] sm:$0xff] %v3764_v25 }
 0x4c6   :  { %5439 = vst [vmem:[#allocation65_spill] sm:$0xff] %v3758_v18  ;;  %v3766_v2 = vpop.permute.xlu0 %1556 }
 0x4c7   :  { %5440 = vst [vmem:[#allocation66_spill] sm:$0xff] %v3762_v62 }
 0x4ca   :  { %1396 = vrot.lane.b32.xlu1 %v3443_v12, %s2799_s0  ;;  %1420 = vrot.lane.b32.xlu2 %v3706_v9, %s2799_s0 }
 0x4cc   :  { %1962 = vrot.lane.b32.xlu0 %v3395_v6, %s2784_s26  ;;  %v2038_v18 = vpop.permute.xlu1 %2037  ;;  %v3783_v62 = vpop.permute.xlu2 %1528 }
 0x4cd   :  { %v3777_v52 = vsel %vm1980_vm12, %v2038_v18, %v2040_v33  ;;  %v3781_v39 = vsel %vm1980_vm12, %v2040_v33, %v2038_v18  ;;  %5444 = vst [vmem:[#allocation70_spill] sm:$0xff] %v3783_v62 }
 0x4ce   :  { %5442 = vst [vmem:[#allocation68_spill] sm:$0xff] %v3777_v52  ;;  %v3785_v25 = vpop.permute.xlu0 %1818 }
 0x4cf   :  { %5443 = vst [vmem:[#allocation69_spill] sm:$0xff] %v3781_v39 }
 0x4d0   :  { %5445 = vst [vmem:[#allocation71_spill] sm:$0xff] %v3785_v25 }
 0x4d2   :  { %1544 = vrot.lane.b32.xlu1 %v3425_v40, %s2783_s25  ;;  %1546 = vrot.lane.b32.xlu2 %v3428_v45, %s2783_s25 }
 0x4d4   :  { %2282 = vrot.lane.b32.xlu0 %v3516_v56, %s2801_s29  ;;  %v1653_v51 = vpop.permute.xlu1 %1652  ;;  %v3801_v18 = vpop.permute.xlu2 %2085 }
 0x4d5   :  { %v3795_v52 = vsel %vm414_vm3, %v1653_v51, %v1655_v47  ;;  %v3799_v33 = vsel %vm414_vm3, %v1655_v47, %v1653_v51  ;;  %5448 = vst [vmem:[#allocation74_spill] sm:$0xff] %v3801_v18 }
 0x4d6   :  { %5446 = vst [vmem:[#allocation72_spill] sm:$0xff] %v3795_v52  ;;  %v1990_v62 = vpop.permute.xlu0 %1989 }
 0x4d7   :  { %5447 = vst [vmem:[#allocation73_spill] sm:$0xff] %v3799_v33  ;;  %v3806_v39 = vsel %vm1980_vm12, %v1990_v62, %v3675_v29  ;;  %v3811_v56 = vsel %vm1980_vm12, %v3675_v29, %v1990_v62 }
 0x4da   :  { %1806 = vrot.lane.b32.xlu1 %v3428_v45, %s2784_s26  ;;  %1568 = vrot.lane.b32.xlu2 %v3443_v12, %s2783_s25 }
 0x4dc   :  { %2135 = vrot.lane.b32.xlu0 %v3395_v6, %s2800_s28  ;;  %v2211_v51 = vpop.permute.xlu1 %2210  ;;  %v3828_v62 = vpop.permute.xlu2 %1936 }
 0x4dd   :  { %v3822_v47 = vsel %vm2153_vm11, %v2211_v51, %v2213_v30  ;;  %v3826_v29 = vsel %vm2153_vm11, %v2213_v30, %v2211_v51  ;;  %5451 = vst [vmem:[#allocation77_spill] sm:$0xff] %v3828_v62 }
 0x4de   :  { %5449 = vst [vmem:[#allocation75_spill] sm:$0xff] %v3822_v47  ;;  %v1841_v18 = vpop.permute.xlu0 %1840 }
 0x4df   :  { %5450 = vst [vmem:[#allocation76_spill] sm:$0xff] %v3826_v29  ;;  %v3832_v52 = vsel %vm559_vm13, %v1841_v18, %v1843_v36  ;;  %v3836_v33 = vsel %vm559_vm13, %v1843_v36, %v1841_v18 }
 0x4e0   :  { %5452 = vst [vmem:[#allocation78_spill] sm:$0xff] %v3832_v52 }
 0x4e1   :  { %5453 = vst [vmem:[#allocation79_spill] sm:$0xff] %v3836_v33 }
 0x4e2   :  { %1594 = vrot.lane.b32.xlu1 %v3709_v60, %s2783_s25  ;;  %1828 = vrot.lane.b32.xlu2 %v3443_v12, %s2784_s26 }
 0x4e4   :  { %1200 = vrot.lane.b32.xlu0 %v3428_v45, %s2798_s24  ;;  %v1507_v30 = vpop.permute.xlu1 %1506  ;;  %v2112_v51 = vpop.permute.xlu2 %2111 }
 0x4e6   :  { %v2163_v62 = vpop.permute.xlu0 %2162 }
 0x4e7   :  { %v3846_v29 = vsel %vm2153_vm11, %v2163_v62, %v2165_v35  ;;  %v3850_v36 = vsel %vm2153_vm11, %v2165_v35, %v2163_v62  ;;  %v1125_v35 = vsel %vm711_vm0, %v3331_v53, %v3483_v44  ;;  %vm1202_vm0 = vcmp.lt.s32.totalorder %v2865_v3, 3 }
 0x4e8   :  { %v3867_v62 = vmul.f32 %v1125_v35, %v3026_v24 }
 0x4ea   :  { %1976 = vrot.lane.b32.xlu1 %v3425_v40, %s2800_s28  ;;  %1978 = vrot.lane.b32.xlu2 %v3428_v45, %s2800_s28  ;;  %5456 = vst [vmem:[#allocation82_spill] sm:$0xff] %v3867_v62 }
 0x4ec   :  { %1223 = vrot.lane.b32.xlu0 %v3443_v12, %s2798_s24  ;;  %v1679_v18 = vpop.permute.xlu1 %1678  ;;  %v3858_v47 = vpop.permute.xlu2 %1960 }
 0x4ed   :  { %5454 = vst [vmem:[#allocation80_spill] sm:$0xff] %v3858_v47 }
 0x4ee   :  { %v3860_v33 = vpop.permute.xlu0 %2015 }
 0x4ef   :  { %5455 = vst [vmem:[#allocation81_spill] sm:$0xff] %v3860_v33 }
 0x4f2   :  { %2149 = vrot.lane.b32.xlu1 %v3425_v40, %s2801_s29  ;;  %2001 = vrot.lane.b32.xlu2 %v3443_v12, %s2800_s28 }
 0x4f4   :  { %1295 = vrot.lane.b32.xlu0 %v3867_v62, %s2798_s24  ;;  %v1703_v47 = vpop.permute.xlu1 %1702  ;;  %v3875_v52 = vpop.permute.xlu2 %2133 }
 0x4f5   :  { %5457 = vst [vmem:[#allocation83_spill] sm:$0xff] %v3875_v52 }
 0x4f6   :  { %v3877_v33 = vpop.permute.xlu0 %2188 }
 0x4fa   :  { %1854 = vrot.lane.b32.xlu1 %v3709_v60, %s2784_s26  ;;  %2151 = vrot.lane.b32.xlu2 %v3428_v45, %s2801_s29 }
 0x4fc   :  { %1345 = vrot.lane.b32.xlu0 %v3536_v0, %s2798_s24  ;;  %v2261_v24 = vpop.permute.xlu1 %2260  ;;  %v3885_v53 = vpop.permute.xlu2 %1198  ;;  %s4218_s24 = sld [smem:[#allocation2 + $0x9c]] }
 0x4fe   :  { %v1505_v44 = vpop.permute.xlu0 %1504 }
 0x4ff   :  { %v3889_v35 = vsel %vm1375_vm4, %v1505_v44, %v1507_v30  ;;  %v3893_v52 = vsel %vm1375_vm4, %v1507_v30, %v1505_v44 }
 0x500   :  { %5458 = vst [vmem:[#allocation84_spill] sm:$0xff] %v3889_v35 }
 0x501   :  { %5459 = vst [vmem:[#allocation85_spill] sm:$0xff] %v3893_v52 }
 0x502   :  { %2174 = vrot.lane.b32.xlu1 %v3443_v12, %s2801_s29  ;;  %2176 = vrot.lane.b32.xlu2 %v3445_v63, %s2801_s29 }
 0x504   :  { %1371 = vrot.lane.b32.xlu0 %v3425_v40, %s2799_s0  ;;  %v2110_v25 = vpop.permute.xlu1 %2109  ;;  %v1250_v30 = vpop.permute.xlu2 %1249 }
 0x505   :  { %v3903_v61 = vsel %vm1980_vm12, %v2110_v25, %v2112_v51  ;;  %v3907_v35 = vsel %vm1980_vm12, %v2112_v51, %v2110_v25 }
 0x506   :  { %5460 = vst [vmem:[#allocation86_spill] sm:$0xff] %v3903_v61  ;;  %v1677_v44 = vpop.permute.xlu0 %1676 }
 0x507   :  { %5461 = vst [vmem:[#allocation87_spill] sm:$0xff] %v3907_v35  ;;  %v3911_v52 = vsel %vm414_vm3, %v1677_v44, %v1679_v18  ;;  %v3915_v54 = vsel %vm414_vm3, %v1679_v18, %v1677_v44 }
 0x508   :  { %5462 = vst [vmem:[#allocation88_spill] sm:$0xff] %v3911_v52 }
 0x509   :  { %5463 = vst [vmem:[#allocation89_spill] sm:$0xff] %v3915_v54 }
 0x50a   :  { %1470 = vrot.lane.b32.xlu1 %v3724_v16, %s2799_s0  ;;  %1492 = vrot.lane.b32.xlu2 %v3511_v22, %s2799_s0 }
 0x50c   :  { %1422 = vrot.lane.b32.xlu0 %v3709_v60, %s2799_s0  ;;  %v3923_v25 = vpop.permute.xlu1 %2284  ;;  %v1322_v51 = vpop.permute.xlu2 %1321 }
 0x50e   :  { %v3925_v35 = vpop.permute.xlu0 %1914 }
 0x50f   :  { %5464 = vst [vmem:[#allocation90_spill] sm:$0xff] %v3925_v35 }
 0x512   :  { %2027 = vrot.lane.b32.xlu1 %v3709_v60, %s2800_s28  ;;  %1664 = vrot.lane.b32.xlu2 %v3511_v22, %s2783_s25 }
 0x514   :  { %1570 = vrot.lane.b32.xlu0 %v3445_v63, %s2783_s25  ;;  %v3933_v18 = vpop.permute.xlu1 %1225  ;;  %v3935_v44 = vpop.permute.xlu2 %1343 }
 0x516   :  { %v3937_v52 = vpop.permute.xlu0 %1530 }
 0x517   :  { %5465 = vst [vmem:[#allocation91_spill] sm:$0xff] %v3937_v52 }
 0x51a   :  { %1642 = vrot.lane.b32.xlu1 %v3724_v16, %s2783_s25  ;;  %1902 = vrot.lane.b32.xlu2 %v3724_v16, %s2784_s26 }
 0x51c   :  { %1804 = vrot.lane.b32.xlu0 %v3425_v40, %s2784_s26  ;;  %v1248_v54 = vpop.permute.xlu1 %1247  ;;  %v1399_v52 = vpop.permute.xlu2 %1398 }
 0x51d   :  { %v3948_v61 = vsel %vm1202_vm0, %v1248_v54, %v1250_v30  ;;  %v3952_v35 = vsel %vm1202_vm0, %v1250_v30, %v1248_v54 }
 0x51e   :  { %v3954_v37 = vpop.permute.xlu0 %2087 }
 0x51f   :  { %5466 = vst [vmem:[#allocation92_spill] sm:$0xff] %v3954_v37 }
 0x522   :  { %2200 = vrot.lane.b32.xlu1 %v3709_v60, %s2801_s29  ;;  %1518 = vrot.lane.b32.xlu2 %v3536_v0, %s2799_s0 }
 0x524   :  { %1592 = vrot.lane.b32.xlu0 %v3706_v9, %s2783_s25  ;;  %v3962_v41 = vpop.permute.xlu1 %1297  ;;  %v3972_v30 = vpop.permute.xlu2 %1420 }
 0x525   :  { %5469 = vst [vmem:[#allocation95_spill] sm:$0xff] %v3972_v30 }
 0x526   :  { %v1701_v14 = vpop.permute.xlu0 %1700 }
 0x527   :  { %v3966_v27 = vsel %vm414_vm3, %v1701_v14, %v1703_v47  ;;  %v3970_v54 = vsel %vm414_vm3, %v1703_v47, %v1701_v14 }
 0x528   :  { %5467 = vst [vmem:[#allocation93_spill] sm:$0xff] %v3966_v27 }
 0x529   :  { %5468 = vst [vmem:[#allocation94_spill] sm:$0xff] %v3970_v54 }
 0x52a   :  { %1900 = vrot.lane.b32.xlu1 %v3867_v62, %s2784_s26  ;;  %2075 = vrot.lane.b32.xlu2 %v3724_v16, %s2800_s28 }
 0x52c   :  { %1830 = vrot.lane.b32.xlu0 %v3445_v63, %s2784_s26  ;;  %v1320_v37 = vpop.permute.xlu1 %1319  ;;  %v1547_v27 = vpop.permute.xlu2 %1546 }
 0x52d   :  { %v3982_v4 = vsel %vm1202_vm0, %v1320_v37, %v1322_v51  ;;  %v3986_v14 = vsel %vm1202_vm0, %v1322_v51, %v1320_v37 }
 0x52e   :  { %v3988_v47 = vpop.permute.xlu0 %1938 }
 0x52f   :  { %5470 = vst [vmem:[#allocation96_spill] sm:$0xff] %v3988_v47 }
 0x532   :  { %1516 = vrot.lane.b32.xlu1 %v3533_v5, %s2799_s0  ;;  %1690 = vrot.lane.b32.xlu2 %v3536_v0, %s2783_s25 }
 0x534   :  { %2003 = vrot.lane.b32.xlu0 %v3445_v63, %s2800_s28  ;;  %v3996_v54 = vpop.permute.xlu1 %1373  ;;  %v4010_v51 = vpop.permute.xlu2 %1568 }
 0x535   :  { %5471 = vst [vmem:[#allocation97_spill] sm:$0xff] %v3996_v54 }
 0x536   :  { %v2259_v43 = vpop.permute.xlu0 %2258  ;;  %5474 = vst [vmem:[#allocation100_spill] sm:$0xff] %v4010_v51  ;;  %v1561_v51 = vsel %vm414_vm3, %v3636_v21, %v3766_v2 }
 0x537   :  { %v4000_v30 = vsel %vm2153_vm11, %v2259_v43, %v2261_v24  ;;  %v4004_v37 = vsel %vm2153_vm11, %v2261_v24, %v2259_v43 }
 0x538   :  { %5472 = vst [vmem:[#allocation98_spill] sm:$0xff] %v4000_v30 }
 0x539   :  { %5473 = vst [vmem:[#allocation99_spill] sm:$0xff] %v4004_v37  ;;  %v1562_v37 = vstv %s2626_s22  ;;  %s4227_s22 = sld [smem:[#allocation2 + $0xa3]] }
 0x53a   :  { %2073 = vrot.lane.b32.xlu1 %v3867_v62, %s2800_s28  ;;  %2248 = vrot.lane.b32.xlu2 %v3724_v16, %s2801_s29  ;;  %v1560_v16 = vsel %vm414_vm3, %v3766_v2, %v3636_v21  ;;  %v1563_v31 = vmul.f32 %v1562_v37, %v1561_v51 }
 0x53c   :  { %1852 = vrot.lane.b32.xlu0 %v3706_v9, %s2784_s26  ;;  %v1397_v47 = vpop.permute.xlu1 %1396 }
 0x53d   :  { %v4016_v30 = vsel %vm1375_vm4, %v1397_v47, %v1399_v52  ;;  %v4020_v43 = vsel %vm1375_vm4, %v1399_v52, %v1397_v47  ;;  %v1550_v52 = vstv %s2625_s27  ;;  %s4236_s27 = sld [smem:[#allocation2 + $0x23]] }
 0x53e   :  { %5475 = vst [vmem:[#allocation101_spill] sm:$0xff] %v4016_v30  ;;  %v4022_v24 = vpop.permute.xlu0 %1962  ;;  %v1564_v30 = vmul.f32 %v1562_v37, %v1560_v16  ;;  %v1716_v16 = vstv %s4058_s30  ;;  %s4242_s30 = sld [smem:[#allocation2 + $0x81]] }
 0x53f   :  { %5476 = vst [vmem:[#allocation102_spill] sm:$0xff] %v4020_v43  ;;  %v4042_v43 = vpop.permute.xlu2 %1828  ;;  %v1717_v37 = vmul.f32 %v1716_v16, %v3425_v40 }
 0x540   :  { %5477 = vst [vmem:[#allocation103_spill] sm:$0xff] %v4022_v24 }
 0x541   :  { %5478 = vst [vmem:[#allocation104_spill] sm:$0xff] %v4042_v43  ;;  %v1288_v43 = vsel %vm1202_vm0, %v3363_v46, %v3478_v48 }
 0x542   :  { %1688 = vrot.lane.b32.xlu1 %v3533_v5, %s2783_s25  ;;  %2099 = vrot.lane.b32.xlu2 %v3514_v20, %s2800_s28 }
 0x544   :  { %1468 = vrot.lane.b32.xlu0 %v3867_v62, %s2799_s0  ;;  %v1545_v47 = vpop.permute.xlu1 %1544 }
 0x545   :  { %v1548_v24 = vsel %vm414_vm3, %v1545_v47, %v1547_v27  ;;  %v1549_v60 = vsel %vm414_vm3, %v1547_v27, %v1545_v47  ;;  %v1216_v47 = vsel %vm1202_vm0, %v3544_v50, %v3578_v19 }
 0x546   :  { %v1551_v6 = vmul.f32 %v1550_v52, %v1549_v60  ;;  %v1552_v2 = vmul.f32 %v1550_v52, %v1548_v24  ;;  %v2283_v21 = vpop.permute.xlu0 %2282  ;;  %v1217_v24 = vstv %s4068_s7  ;;  %v1215_v52 = vsel %vm1202_vm0, %v3578_v19, %v3544_v50  ;;  %s4273_s7 = sld [smem:[#allocation2 + $0x8d]] }
 0x547   :  { %v4047_v10 = vsel %vm2153_vm11, %v2283_v21, %v3923_v25  ;;  %v4052_v8 = vsel %vm2153_vm11, %v3923_v25, %v2283_v21  ;;  %v1722_v25 = vstv %s4060_s5  ;;  %v1219_v50 = vmul.f32 %v1217_v24, %v1215_v52  ;;  %s4266_s5 = sld [smem:[#allocation2 + $0x2a]] }
 0x548   :  { %5479 = vst [vmem:[#allocation105_spill] sm:$0xff] %v4047_v10  ;;  %v4054_v54 = vadd.f32 %v1563_v31, %v1551_v6  ;;  %v4056_v27 = vadd.f32 %v1564_v30, %v1552_v2  ;;  %v1979_v31 = vpop.permute.xlu2 %1978  ;;  %v1205_v2 = vstv %s4074_s8  ;;  %v1723_v40 = vmul.f32 %v1722_v25, %v3303_v23  ;;  %s4290_s8 = sld [smem:[#allocation2 + $0xd]] }
 0x549   :  { %5480 = vst [vmem:[#allocation106_spill] sm:$0xff] %v4052_v8  ;;  %v1724_v21 = vmul.f32 %v1722_v25, %v3306_v26  ;;  %v1718_v30 = vmul.f32 %v1716_v16, %v3428_v45  ;;  %v1728_v8 = vstv %s4076_s9  ;;  %v1218_v26 = vmul.f32 %v1217_v24, %v1216_v47  ;;  %s4345_s9 = sld [smem:[#allocation2 + $0xf]] }
 0x54a   :  { %1926 = vrot.lane.b32.xlu1 %v3514_v20, %s2784_s26  ;;  %1948 = vrot.lane.b32.xlu2 %v3533_v5, %s2784_s26  ;;  %v5484_v25 = vstv %s4064_s6  ;;  %v4150_v24 = vmul.f32 %v1728_v8, %v3443_v12  ;;  %v1983_v12 = vstv %s4094_s14  ;;  %s4424_s14 = sld [smem:[#allocation2 + $0x1f]] }
 0x54c   :  { %2025 = vrot.lane.b32.xlu0 %v3706_v9, %s2800_s28  ;;  %v4072_v60 = vpop.permute.xlu1 %1806 }
 0x54d   :  { %5481 = vst [vmem:[#allocation107_spill] sm:$0xff] %v4072_v60  ;;  %v1287_v60 = vsel %vm1202_vm0, %v3478_v48, %v3363_v46  ;;  %v4159_v46 = vmul.f32 %v1728_v8, %v3445_v63  ;;  %v1240_v8 = vsel %vm1202_vm0, %v3667_v11, %v3556_v57 }
 0x54e   :  { %v4078_v6 = vpop.permute.xlu0 %2135 }
 0x54f   :  { %5482 = vst [vmem:[#allocation108_spill] sm:$0xff] %v4078_v6  ;;  %v1289_v6 = vstv %s4080_s10  ;;  %s4347_s10 = sld [smem:[#allocation2 + $0x8f]] }
 0x550   :  { %v4161_v48 = vmul.f32 %v1289_v6, %v1288_v43  ;;  %v4169_v47 = vmul.f32 %v1289_v6, %v1287_v60  ;;  %v1229_v6 = vstv %s4114_s16  ;;  %s4438_s16 = sld [smem:[#allocation2 + $0x4]] }
 0x552   :  { %2246 = vrot.lane.b32.xlu1 %v3867_v62, %s2801_s29  ;;  %2123 = vrot.lane.b32.xlu2 %v3536_v0, %s2800_s28 }
 0x554   :  { %1640 = vrot.lane.b32.xlu0 %v3867_v62, %s2783_s25  ;;  %v4102_v51 = vpop.permute.xlu1 %1594  ;;  %v4138_v62 = vadd.f32 %v1723_v40, %v1717_v37  ;;  %v1239_v40 = vsel %vm1202_vm0, %v3556_v57, %v3667_v11  ;;  %v1263_v11 = vsel %vm1202_vm0, %v3679_v58, %v3590_v42  ;;  %v1264_v57 = vsel %vm1202_vm0, %v3590_v42, %v3679_v58 }
 0x555   :  { %5483 = vst [vmem:[#allocation109_spill] sm:$0xff] %v4102_v51  ;;  %v4136_v51 = vmul.f32 %v5484_v25, %v3337_v49  ;;  %v4154_v49 = vpop.permute.xlu2 %2001  ;;  %v1275_v42 = vsel %vm1202_vm0, %v3422_v15, %v3606_v7 }
 0x556   :  { %v1201_v10 = vpop.permute.xlu0 %1200 }
 0x557   :  { %v1203_v19 = vsel %vm1202_vm0, %v3885_v53, %v1201_v10  ;;  %v1204_v23 = vsel %vm1202_vm0, %v1201_v10, %v3885_v53  ;;  %v1740_v10 = vstv %s4082_s11  ;;  %v4147_v53 = vadd.f32 %v1724_v21, %v1718_v30  ;;  %s4406_s11 = sld [smem:[#allocation2 + $0x89]] }
 0x558   :  { %v1206_v45 = vmul.f32 %v1205_v2, %v1204_v23  ;;  %v1207_v16 = vmul.f32 %v1205_v2, %v1203_v19  ;;  %v1995_v30 = vstv %s4087_s13  ;;  %v1241_v2 = vstv %s4085_s12  ;;  %s4356_s12 = sld [smem:[#allocation2 + $0x91]] }
 0x559   :  { %v1265_v21 = vstv %s4098_s15  ;;  %v1996_v19 = vmul.f32 %v1995_v30, %v3806_v39  ;;  %v1997_v23 = vmul.f32 %v1995_v30, %v3811_v56  ;;  %v1242_v58 = vmul.f32 %v1241_v2, %v1240_v8  ;;  %s4382_s13 = sld [smem:[#allocation2 + $0x18]] }
 0x55a   :  { %v1220_v37 = vadd.f32 %v1218_v26, %v1206_v45  ;;  %v1221_v52 = vadd.f32 %v1219_v50, %v1207_v16  ;;  %2097 = vrot.lane.b32.xlu1 %v3511_v22, %s2800_s28  ;;  %2296 = vrot.lane.b32.xlu2 %v3536_v0, %s2801_s29  ;;  %v2156_v8 = vstv %s4167_s19  ;;  %s4427_s15 = sld [smem:[#allocation2 + $0x84]] }
 0x55b   :  { %s4488_s19 = sld [smem:[#allocation2 + $0xad]] }
 0x55c   :  { %2198 = vrot.lane.b32.xlu0 %v3706_v9, %s2801_s29  ;;  %v1977_v63 = vpop.permute.xlu1 %1976 }
 0x55d   :  { %v1981_v43 = vsel %vm1980_vm12, %v1977_v63, %v1979_v31  ;;  %v1982_v60 = vsel %vm1980_vm12, %v1979_v31, %v1977_v63  ;;  %v1253_v63 = vstv %s4145_s18  ;;  %s4462_s18 = sld [smem:[#allocation2 + $0x26]] }
 0x55e   :  { %v1984_v26 = vmul.f32 %v1983_v12, %v1981_v43  ;;  %v1985_v50 = vmul.f32 %v1983_v12, %v1982_v60  ;;  %v1224_v45 = vpop.permute.xlu0 %1223  ;;  %v1277_v12 = vstv %s4131_s17  ;;  %v2168_v43 = vstv %s4152_s1  ;;  %s4457_s17 = sld [smem:[#allocation2 + $0x9f]] }
 0x55f   :  { %v1227_v39 = vsel %vm1202_vm0, %v1224_v45, %v3933_v18  ;;  %v1228_v56 = vsel %vm1202_vm0, %v3933_v18, %v1224_v45  ;;  %v1243_v18 = vmul.f32 %v1241_v2, %v1239_v40  ;;  %v1254_v2 = vmul.f32 %v1253_v63, %v3952_v35  ;;  %s4473_s1 = sld [smem:[#allocation2 + $0xa6]] }
 0x560   :  { %v4206_v31 = vadd.f32 %v1996_v19, %v1984_v26  ;;  %v4208_v16 = vadd.f32 %v1997_v23, %v1985_v50  ;;  %v1230_v25 = vmul.f32 %v1229_v6, %v1228_v56  ;;  %v1231_v30 = vmul.f32 %v1229_v6, %v1227_v39  ;;  %v2152_v50 = vpop.permute.xlu2 %2151 }
 0x561   :  { %v1276_v6 = vsel %vm1202_vm0, %v3606_v7, %v3422_v15  ;;  %v1266_v23 = vmul.f32 %v1265_v21, %v1264_v57  ;;  %v1267_v26 = vmul.f32 %v1265_v21, %v1263_v11  ;;  %v1255_v40 = vmul.f32 %v1253_v63, %v3948_v61 }
 0x562   :  { %v1232_v60 = vadd.f32 %v1230_v25, %v1220_v37  ;;  %v1233_v19 = vadd.f32 %v1231_v30, %v1221_v52  ;;  %2272 = vrot.lane.b32.xlu1 %v3514_v20, %s2801_s29  ;;  %v2169_v39 = vmul.f32 %v2168_v43, %v3846_v29  ;;  %v2170_v7 = vmul.f32 %v2168_v43, %v3850_v36 }
 0x563   :  { %v1278_v56 = vmul.f32 %v1277_v12, %v1276_v6  ;;  %v1279_v36 = vmul.f32 %v1277_v12, %v1275_v42  ;;  %v1359_v12 = vsel %vm1202_vm0, %v3614_v17, %v3580_v55  ;;  %v1360_v42 = vsel %vm1202_vm0, %v3580_v55, %v3614_v17 }
 0x564   :  { %v1244_v37 = vadd.f32 %v1242_v58, %v1232_v60  ;;  %v1245_v52 = vadd.f32 %v1243_v18, %v1233_v19  ;;  %1494 = vrot.lane.b32.xlu0 %v3514_v20, %s2799_s0  ;;  %v2150_v45 = vpop.permute.xlu1 %2149  ;;  %s4244_s0 = sld [smem:[#allocation2 + $0x88]]  ;;  %v1361_v60 = vstv %s4204_s20  ;;  %v1301_v19 = vstv %s4216_s3 }
 0x565   :  { %v2154_v15 = vsel %vm2153_vm11, %v2150_v45, %v2152_v50  ;;  %v2155_v35 = vsel %vm2153_vm11, %v2152_v50, %v2150_v45  ;;  %v1312_v6 = vsel %vm1202_vm0, %v3703_v59, %v3568_v13  ;;  %v4279_v17 = vadd.f32 %v4150_v24, %v4138_v62  ;;  %s4490_s20 = sld [smem:[#allocation2 + $0x90]] }
 0x566   :  { %v1256_v61 = vadd.f32 %v1254_v2, %v1244_v37  ;;  %v1257_v21 = vadd.f32 %v1255_v40, %v1245_v52  ;;  %v2157_v11 = vmul.f32 %v2156_v8, %v2154_v15  ;;  %v2158_v57 = vmul.f32 %v2156_v8, %v2155_v35  ;;  %v1296_v29 = vpop.permute.xlu0 %1295  ;;  %s4499_s3 = sld [smem:[#allocation2 + $0x17]] }
 0x567   :  { %v1299_v25 = vsel %vm1202_vm0, %v1296_v29, %v3962_v41  ;;  %v1300_v30 = vsel %vm1202_vm0, %v3962_v41, %v1296_v29  ;;  %v1313_v41 = vstv %s4218_s24  ;;  %v1311_v55 = vsel %vm1202_vm0, %v3568_v13, %v3703_v59  ;;  %s4502_s24 = sld [smem:[#allocation2 + $0x2d]] }
 0x568   :  { %v4252_v58 = vadd.f32 %v2169_v39, %v2157_v11  ;;  %v4254_v63 = vadd.f32 %v2170_v7, %v2158_v57  ;;  %v1268_v18 = vadd.f32 %v1266_v23, %v1256_v61  ;;  %v1269_v43 = vadd.f32 %v1267_v26, %v1257_v21 }
 0x569   :  { %v1337_v8 = vstv %s4227_s22  ;;  %v1336_v2 = vsel %vm1202_vm0, %v3602_v38, %v3721_v28  ;;  %v1302_v62 = vmul.f32 %v1301_v19, %v1300_v30  ;;  %v1303_v24 = vmul.f32 %v1301_v19, %v1299_v25  ;;  %v2177_v19 = vpop.permute.xlu2 %2176  ;;  %s4504_s22 = sld [smem:[#allocation2 + $0x96]] }
 0x56a   :  { %v1280_v23 = vadd.f32 %v1278_v56, %v1268_v18  ;;  %v1281_v26 = vadd.f32 %v1279_v36, %v1269_v43  ;;  %2121 = vrot.lane.b32.xlu1 %v3533_v5, %s2800_s28  ;;  %v1362_v13 = vmul.f32 %v1361_v60, %v1360_v42  ;;  %v1363_v37 = vmul.f32 %v1361_v60, %v1359_v12  ;;  %s4299_s28 = sld [smem:[#allocation2 + $0x1]] }
 0x56b   :  { %v1314_v52 = vmul.f32 %v1313_v41, %v1312_v6  ;;  %v1325_v45 = vstv %s4236_s27  ;;  %v1315_v39 = vmul.f32 %v1313_v41, %v1311_v55  ;;  %v1338_v35 = vmul.f32 %v1337_v8, %v1336_v2  ;;  %s4511_s27 = sld [smem:[#allocation2 + $0x97]] }
 0x56c   :  { %v1292_v40 = vadd.f32 %v4161_v48, %v1280_v23  ;;  %v1293_v50 = vadd.f32 %v4169_v47, %v1281_v26  ;;  %1666 = vrot.lane.b32.xlu0 %v3514_v20, %s2783_s25  ;;  %v4296_v59 = vpop.permute.xlu1 %1854  ;;  %v1335_v48 = vsel %vm1202_vm0, %v3721_v28, %v3602_v38  ;;  %v1390_v61 = vstv %s4242_s30  ;;  %s4311_s25 = sld [smem:[#allocation2 + $0x8]] }
 0x56d   :  { %v1389_v21 = vsel %vm1375_vm4, %v3732_v1, %v3592_v34  ;;  %v1414_v11 = vstv %s4244_s0  ;;  %v1326_v57 = vmul.f32 %v1325_v45, %v3986_v14  ;;  %v1327_v29 = vmul.f32 %v1325_v45, %v3982_v4  ;;  %v5485_v45 = vld [vmem:[#allocation97_spill] sm:$0xff]  ;;  %s4513_s30 = sld [smem:[#allocation2 + $0x99]] }
 0x56e   :  { %v1304_v47 = vadd.f32 %v1302_v62, %v1292_v40  ;;  %v1305_v7 = vadd.f32 %v1303_v24, %v1293_v50  ;;  %v1346_v15 = vpop.permute.xlu0 %1345  ;;  %v1339_v56 = vmul.f32 %v1337_v8, %v1335_v48  ;;  %v1349_v36 = vstv %s4266_s5  ;;  %s4519_s0 = sld [smem:[#allocation2 + $0xb]] }
 0x56f   :  { %v1347_v25 = vsel %vm1202_vm0, %v3935_v44, %v1346_v15  ;;  %v1348_v30 = vsel %vm1202_vm0, %v1346_v15, %v3935_v44  ;;  %v2192_v18 = vstv %s4273_s7  ;;  %v2190_v14 = vsel %vm2153_vm11, %v3677_v32, %v3877_v33  ;;  %s4524_s5 = sld [smem:[#allocation2 + $0x9a]] }
 0x570   :  { %v1316_v38 = vadd.f32 %v1314_v52, %v1304_v47  ;;  %v1317_v28 = vadd.f32 %v1315_v39, %v1305_v7  ;;  %v1388_v60 = vsel %vm1375_vm4, %v3592_v34, %v3732_v1  ;;  %v1391_v12 = vmul.f32 %v1390_v61, %v1389_v21  ;;  %s4529_s7 = sld [smem:[#allocation2 + $0x8b]] }
 0x571   :  { %v2191_v44 = vsel %vm2153_vm11, %v3877_v33, %v3677_v32  ;;  %v2180_v42 = vstv %s4290_s8  ;;  %v1350_v23 = vmul.f32 %v1349_v36, %v1348_v30  ;;  %v1351_v26 = vmul.f32 %v1349_v36, %v1347_v25  ;;  %v5490_v36 = vld [vmem:[#allocation102_spill] sm:$0xff]  ;;  %v5491_v30 = vld [vmem:[#allocation101_spill] sm:$0xff]  ;;  %s4542_s8 = sld [smem:[#allocation2 + $0x9b]] }
 0x572   :  { %v1328_v43 = vadd.f32 %v1326_v57, %v1316_v38  ;;  %v1329_v4 = vadd.f32 %v1327_v29, %v1317_v28  ;;  %2294 = vrot.lane.b32.xlu1 %v3533_v5, %s2801_s29  ;;  %v2193_v8 = vmul.f32 %v2192_v18, %v2190_v14  ;;  %v1378_v2 = vstv %s4299_s28  ;;  %v5487_v57 = vld [vmem:[#allocation64_spill] sm:$0xff]  ;;  %v5488_v29 = vld [vmem:[#allocation50_spill] sm:$0xff]  ;;  %s4555_s28 = sld [smem:[#allocation2 + $0x16]] }
 0x573   :  { %v2194_v24 = vmul.f32 %v2192_v18, %v2191_v44  ;;  %v1402_v52 = vstv %s4311_s25  ;;  %v1392_v21 = vmul.f32 %v1390_v61, %v1388_v60  ;;  %v1413_v38 = vsel %vm1375_vm4, %v5488_v29, %v5487_v57  ;;  %v5494_v44 = vld [vmem:[#allocation60_spill] sm:$0xff]  ;;  %s4571_s25 = sld [smem:[#allocation2 + $0xc]] }
 0x574   :  { %v1340_v41 = vadd.f32 %v1338_v35, %v1328_v43  ;;  %v1341_v6 = vadd.f32 %v1339_v56, %v1329_v4  ;;  %1924 = vrot.lane.b32.xlu0 %v3511_v22, %s2784_s26  ;;  %v2175_v55 = vpop.permute.xlu1 %2174  ;;  %v1403_v25 = vmul.f32 %v1402_v52, %v5490_v36  ;;  %v1404_v18 = vmul.f32 %v1402_v52, %v5491_v30  ;;  %v5497_v52 = vld [vmem:[#allocation56_spill] sm:$0xff] }
 0x575   :  { %v2178_v34 = vsel %vm2153_vm11, %v2175_v55, %v2177_v19  ;;  %v2179_v1 = vsel %vm2153_vm11, %v2177_v19, %v2175_v55  ;;  %v5493_v43 = vstv %s4064_s6  ;;  %v1741_v60 = vmul.f32 %v1740_v10, %v3706_v9  ;;  %s4402_s6 = sld [smem:[#allocation2 + $0x9]] }
 0x576   :  { %v1352_v32 = vadd.f32 %v1350_v23, %v1340_v41  ;;  %v1353_v33 = vadd.f32 %v1351_v26, %v1341_v6  ;;  %v2181_v40 = vmul.f32 %v2180_v42, %v2178_v34  ;;  %v2182_v50 = vmul.f32 %v2180_v42, %v2179_v1  ;;  %v1372_v62 = vpop.permute.xlu0 %1371 }
 0x577   :  { %v1376_v39 = vsel %vm1375_vm4, %v1372_v62, %v5485_v45  ;;  %v1377_v48 = vsel %vm1375_vm4, %v5485_v45, %v1372_v62  ;;  %v1742_v42 = vmul.f32 %v1740_v10, %v5494_v44  ;;  %v1415_v19 = vmul.f32 %v1414_v11, %v1413_v38  ;;  %v5496_v62 = vld [vmem:[#allocation57_spill] sm:$0xff]  ;;  %v5503_v44 = vld [vmem:[#allocation100_spill] sm:$0xff] }
 0x578   :  { %v4358_v47 = vadd.f32 %v1362_v13, %v1352_v32  ;;  %v4360_v7 = vadd.f32 %v1363_v37, %v1353_v33  ;;  %v2183_v15 = vadd.f32 %v2181_v40, %v4252_v58  ;;  %v2184_v35 = vadd.f32 %v2182_v50, %v4254_v63  ;;  %v5489_v63 = vld [vmem:[#allocation27_spill] sm:$0xff] }
 0x579   :  { %v1379_v28 = vmul.f32 %v1378_v2, %v1377_v48  ;;  %v1380_v56 = vmul.f32 %v1378_v2, %v1376_v39  ;;  %v1732_v13 = vadd.f32 %v4159_v46, %v4147_v53  ;;  %v1412_v58 = vsel %vm1375_vm4, %v5487_v57, %v5488_v29  ;;  %v5492_v46 = vld [vmem:[#allocation29_spill] sm:$0xff]  ;;  %v5495_v2 = vld [vmem:[#allocation95_spill] sm:$0xff]  ;;  %v4420_v39 = vpop.permute.xlu2 %1492  ;;  %v5499_v29 = vld [vmem:[#allocation32_spill] sm:$0xff] }
 0x57a   :  { %5486 = vst [vmem:[#allocation97_spill] sm:$0xff] %v4360_v7  ;;  %2308 = vrot.lane.b32.xlu1 %v5489_v63, %s2801_s29  ;;  %v4376_v37 = vadd.f32 %v2193_v8, %v2183_v15  ;;  %v4378_v61 = vadd.f32 %v2194_v24, %v2184_v35  ;;  %v1736_v4 = vmul.f32 %v5493_v43, %v5492_v46  ;;  %v1426_v26 = vstv %s4345_s9  ;;  %v5498_v35 = vld [vmem:[#allocation22_spill] sm:$0xff]  ;;  %v5501_v46 = vld [vmem:[#allocation47_spill] sm:$0xff]  ;;  %v5502_v43 = vld [vmem:[#allocation53_spill] sm:$0xff]  ;;  %s4575_s9 = sld [smem:[#allocation2 + $0x8c]] }
 0x57b   :  { %v1393_v14 = vadd.f32 %v1391_v12, %v1379_v28  ;;  %v1394_v53 = vadd.f32 %v1392_v21, %v1380_v56  ;;  %v1416_v41 = vmul.f32 %v1414_v11, %v1412_v58  ;;  %v1737_v9 = vadd.f32 %v4136_v51, %v4279_v17 }
 0x57c   :  { %1950 = vrot.lane.b32.xlu0 %v3536_v0, %s2784_s26  ;;  %v4397_v12 = vpop.permute.xlu1 %1470  ;;  %v1738_v55 = vadd.f32 %v1736_v4, %v1732_v13  ;;  %v1438_v10 = vstv %s4347_s10  ;;  %v1746_v33 = vstv %s4356_s12  ;;  %s4416_s26 = sld [smem:[#allocation2 + $0x98]]  ;;  %v1752_v57 = vstv %s4382_s13 }
 0x57d   :  { %v1405_v6 = vadd.f32 %v1403_v25, %v1393_v14  ;;  %v1406_v23 = vadd.f32 %v1404_v18, %v1394_v53  ;;  %v1743_v51 = vadd.f32 %v1741_v60, %v1737_v9  ;;  %v1439_v24 = vmul.f32 %v1438_v10, %v5496_v62  ;;  %v5500_v14 = vld [vmem:[#allocation21_spill] sm:$0xff]  ;;  %v5504_v9 = vld [vmem:[#allocation20_spill] sm:$0xff]  ;;  %s4610_s10 = sld [smem:[#allocation2 + $0x19]] }
 0x57e   :  { %v1423_v8 = vpop.permute.xlu0 %1422  ;;  %v1744_v17 = vadd.f32 %v1742_v42, %v1738_v55  ;;  %v1440_v45 = vmul.f32 %v1438_v10, %v5497_v52  ;;  %v1748_v21 = vmul.f32 %v1746_v33, %v5498_v35  ;;  %v1747_v38 = vmul.f32 %v1746_v33, %v5499_v29  ;;  %v5506_v33 = vld [vmem:[#allocation26_spill] sm:$0xff]  ;;  %v5509_v52 = vld [vmem:[#allocation71_spill] sm:$0xff]  ;;  %v5511_v29 = vld [vmem:[#allocation61_spill] sm:$0xff]  ;;  %s4626_s12 = sld [smem:[#allocation2 + $0x1a]] }
 0x57f   :  { %v1417_v34 = vadd.f32 %v1415_v19, %v1405_v6  ;;  %v1418_v1 = vadd.f32 %v1416_v41, %v1406_v23  ;;  %v1424_v11 = vsel %vm1375_vm4, %v5495_v2, %v1423_v8  ;;  %v1425_v32 = vsel %vm1375_vm4, %v1423_v8, %v5495_v2  ;;  %s4635_s13 = sld [smem:[#allocation2 + $0x1b]] }
 0x580   :  { %v1427_v40 = vmul.f32 %v1426_v26, %v1425_v32  ;;  %v1428_v50 = vmul.f32 %v1426_v26, %v1424_v11  ;;  %v1574_v58 = vstv %s4402_s6  ;;  %v1750_v36 = vadd.f32 %v1748_v21, %v1744_v17  ;;  %v5507_v17 = vld [vmem:[#allocation19_spill] sm:$0xff]  ;;  %s4651_s6 = sld [smem:[#allocation2 + $0x12]] }
 0x581   :  { %v1586_v25 = vstv %s4406_s11  ;;  %v1749_v18 = vadd.f32 %v1747_v38, %v1743_v51  ;;  %v1754_v53 = vmul.f32 %v1752_v57, %v5500_v14  ;;  %v1584_v4 = vsel %vm414_vm3, %v5502_v43, %v5501_v46  ;;  %v4465_v32 = vpop.permute.xlu2 %1664  ;;  %s4663_s11 = sld [smem:[#allocation2 + $0x92]] }
 0x582   :  { %v1429_v48 = vadd.f32 %v1427_v40, %v1417_v34  ;;  %v1430_v15 = vadd.f32 %v1428_v50, %v1418_v1  ;;  %v1585_v60 = vsel %vm414_vm3, %v5501_v46, %v5502_v43  ;;  %v1758_v26 = vstv %s4416_s26  ;;  %5505 = vst [vmem:[#allocation64_spill] sm:$0xff] %v4465_v32  ;;  %s4666_s26 = sld [smem:[#allocation2 + $0x9d]]  ;;  %v5552_v32 = vld [vmem:[#allocation63_spill] sm:$0xff] }
 0x583   :  { %v1756_v23 = vadd.f32 %v1754_v53, %v1750_v36  ;;  %v1753_v55 = vmul.f32 %v1752_v57, %v5504_v9  ;;  %v1587_v10 = vmul.f32 %v1586_v25, %v1585_v60  ;;  %v1588_v8 = vmul.f32 %v1586_v25, %v1584_v4 }
 0x584   :  { %v4429_v28 = vadd.f32 %v1439_v24, %v1429_v48  ;;  %v4431_v56 = vadd.f32 %v1440_v45, %v1430_v15  ;;  %2270 = vrot.lane.b32.xlu0 %v3511_v22, %s2801_s29  ;;  %v4435_v13 = vpop.permute.xlu1 %2027  ;;  %v1764_v2 = vstv %s4424_s14  ;;  %v1759_v62 = vmul.f32 %v1758_v26, %v5507_v17  ;;  %v5508_v24 = vld [vmem:[#allocation18_spill] sm:$0xff]  ;;  %v5510_v45 = vld [vmem:[#allocation48_spill] sm:$0xff]  ;;  %s4690_s14 = sld [smem:[#allocation2 + $0x93]] }
 0x585   :  { %v1755_v11 = vadd.f32 %v1753_v55, %v1749_v18  ;;  %v1820_v48 = vsel %vm559_vm13, %v5510_v45, %v5509_v52  ;;  %v1821_v15 = vsel %vm559_vm13, %v5509_v52, %v5510_v45  ;;  %v1810_v35 = vstv %s4438_s16  ;;  %s4705_s16 = sld [smem:[#allocation2 + $0x94]] }
 0x586   :  { %v1571_v30 = vpop.permute.xlu0 %1570  ;;  %v1766_v38 = vmul.f32 %v1764_v2, %v5511_v29  ;;  %v1770_v60 = vstv %s4457_s17  ;;  %v1782_v45 = vstv %s4473_s1  ;;  %v5518_v29 = vld [vmem:[#allocation58_spill] sm:$0xff]  ;;  %s4720_s17 = sld [smem:[#allocation2 + $0xa0]] }
 0x587   :  { %v1572_v42 = vsel %vm414_vm3, %v5503_v44, %v1571_v30  ;;  %v1573_v19 = vsel %vm414_vm3, %v1571_v30, %v5503_v44  ;;  %v5513_v30 = vld [vmem:[#allocation82_spill] sm:$0xff]  ;;  %v1761_v14 = vadd.f32 %v1759_v62, %v1755_v11  ;;  %v1610_v62 = vstv %s4490_s20  ;;  %s4744_s1 = sld [smem:[#allocation2 + $0x1d]] }
 0x588   :  { %v1575_v41 = vmul.f32 %v1574_v58, %v1573_v19  ;;  %v1576_v6 = vmul.f32 %v1574_v58, %v1572_v42  ;;  %v5512_v58 = vld [vmem:[#allocation107_spill] sm:$0xff]  ;;  %v1765_v18 = vmul.f32 %v1764_v2, %v5513_v30  ;;  %v5519_v30 = vld [vmem:[#allocation37_spill] sm:$0xff]  ;;  %s4788_s20 = sld [smem:[#allocation2 + $0xa8]] }
 0x589   :  { %v4526_v2 = vpop.permute.xlu2 %1902 }
 0x58a   :  { %v1577_v34 = vadd.f32 %v1575_v41, %v4054_v54  ;;  %v1578_v1 = vadd.f32 %v1576_v6, %v4056_v27  ;;  %v1760_v54 = vmul.f32 %v1758_v26, %v5508_v24  ;;  %v1822_v27 = vstv %s4427_s15  ;;  %v5514_v26 = vld [vmem:[#allocation34_spill] sm:$0xff]  ;;  %v5516_v24 = vld [vmem:[#allocation109_spill] sm:$0xff]  ;;  %s4703_s15 = sld [smem:[#allocation2 + $0x9e]] }
 0x58b   :  { %v1823_v53 = vmul.f32 %v1822_v27, %v1820_v48  ;;  %v1824_v46 = vmul.f32 %v1822_v27, %v1821_v15  ;;  %v1776_v41 = vstv %s4462_s18  ;;  %v1767_v6 = vadd.f32 %v1765_v18, %v1761_v14  ;;  %v5520_v14 = vld [vmem:[#allocation24_spill] sm:$0xff]  ;;  %s4727_s18 = sld [smem:[#allocation2 + $0x20]] }
 0x58c   :  { %2306 = vrot.lane.b32.xlu0 %v5506_v33, %s2801_s29  ;;  %v4469_v40 = vpop.permute.xlu1 %1642  ;;  %v1589_v50 = vadd.f32 %v1587_v10, %v1577_v34  ;;  %v1590_v51 = vadd.f32 %v1588_v8, %v1578_v1  ;;  %s4485_s29 = sld [smem:[#allocation2 + $0x10]]  ;;  %v1762_v57 = vadd.f32 %v1760_v54, %v1756_v23  ;;  %v1772_v9 = vmul.f32 %v1770_v60, %v5514_v26  ;;  %v5515_v10 = vld [vmem:[#allocation23_spill] sm:$0xff] }
 0x58d   :  { %v1771_v8 = vmul.f32 %v1770_v60, %v5515_v10  ;;  %v1777_v34 = vmul.f32 %v1776_v41, %v3511_v22  ;;  %v1778_v1 = vmul.f32 %v1776_v41, %v3514_v20  ;;  %v5360_v48 = vstv %s4488_s19 }
 0x58e   :  { %v1805_v21 = vpop.permute.xlu0 %1804  ;;  %v1768_v19 = vadd.f32 %v1766_v38, %v1762_v57  ;;  %v1612_v38 = vmul.f32 %v1610_v62, %v5518_v29  ;;  %v1783_v18 = vmul.f32 %v1782_v45, %v5519_v30  ;;  %v1788_v41 = vstv %s4502_s24  ;;  %v5530_v29 = vld [vmem:[#allocation28_spill] sm:$0xff]  ;;  %s4804_s24 = sld [smem:[#allocation2 + $0xa5]] }
 0x58f   :  { %v1808_v36 = vsel %vm559_vm13, %v1805_v21, %v5512_v58  ;;  %v1809_v25 = vsel %vm559_vm13, %v5512_v58, %v1805_v21  ;;  %v1773_v20 = vadd.f32 %v1771_v8, %v1767_v6  ;;  %v5517_v21 = vld [vmem:[#allocation59_spill] sm:$0xff]  ;;  %v1462_v6 = vstv %s4504_s22  ;;  %s4818_s22 = sld [smem:[#allocation2 + $0xab]] }
 0x590   :  { %v1811_v43 = vmul.f32 %v1810_v35, %v1808_v36  ;;  %v1812_v4 = vmul.f32 %v1810_v35, %v1809_v25  ;;  %v1774_v17 = vadd.f32 %v1772_v9, %v1768_v19  ;;  %v1611_v57 = vmul.f32 %v1610_v62, %v5517_v21  ;;  %v5526_v62 = vld [vmem:[#allocation104_spill] sm:$0xff] }
 0x591   :  { %v1779_v35 = vadd.f32 %v1777_v34, %v1773_v20  ;;  %v1622_v25 = vstv %s4499_s3  ;;  %v1634_v26 = vstv %s4511_s27  ;;  %v1834_v9 = vstv %s4519_s0  ;;  %v5527_v20 = vld [vmem:[#allocation25_spill] sm:$0xff]  ;;  %s4802_s3 = sld [smem:[#allocation2 + $0x13]] }
 0x592   :  { %v4506_v44 = vadd.f32 %v1823_v53, %v1811_v43  ;;  %v4508_v42 = vadd.f32 %v1824_v46, %v1812_v4  ;;  %v1598_v55 = vstv %s4485_s29  ;;  %v1780_v15 = vadd.f32 %v1778_v1, %v1774_v17  ;;  %v5522_v43 = vld [vmem:[#allocation43_spill] sm:$0xff]  ;;  %s4784_s29 = sld [smem:[#allocation2 + $0xa4]] }
 0x593   :  { %v1784_v53 = vmul.f32 %v1782_v45, %v5520_v14  ;;  %v4549_v46 = vmul.f32 %v5360_v48, %v5489_v63  ;;  %v5523_v4 = vld [vmem:[#allocation31_spill] sm:$0xff]  ;;  %v2067_v10 = vstv %s4524_s5  ;;  %v4579_v1 = vadd.f32 %v1783_v18, %v1779_v35  ;;  %v4596_v45 = vpop.permute.xlu2 %1518  ;;  %s4827_s27 = sld [smem:[#allocation2 + $0xa1]] }
 0x594   :  { %v4515_v23 = vpop.permute.xlu1 %2200  ;;  %v1620_v63 = vsel %vm414_vm3, %v5522_v43, %v5523_v4  ;;  %v1846_v17 = vstv %s4529_s7  ;;  %v5533_v18 = vld [vmem:[#allocation79_spill] sm:$0xff]  ;;  %v1870_v48 = vstv %s4663_s11  ;;  %s4837_s0 = sld [smem:[#allocation2 + $0xa2]] }
 0x595   :  { %5521 = vst [vmem:[#allocation50_spill] sm:$0xff] %v4549_v46  ;;  %v4577_v34 = vadd.f32 %v1784_v53, %v1780_v15  ;;  %v1848_v14 = vmul.f32 %v1846_v17, %v5533_v18  ;;  %v5541_v18 = vld [vmem:[#allocation41_spill] sm:$0xff]  ;;  %v1872_v7 = vmul.f32 %v1870_v48, %v5552_v32  ;;  %s4839_s5 = sld [smem:[#allocation2 + $0x21]] }
 0x596   :  { %v1593_v11 = vpop.permute.xlu0 %1592  ;;  %5525 = vst [vmem:[#allocation102_spill] sm:$0xff] %v4579_v1  ;;  %s4853_s7 = sld [smem:[#allocation2 + $0x1e]] }
 0x597   :  { %v1596_v54 = vsel %vm414_vm3, %v1593_v11, %v5516_v24  ;;  %v1597_v22 = vsel %vm414_vm3, %v5516_v24, %v1593_v11  ;;  %5524 = vst [vmem:[#allocation27_spill] sm:$0xff] %v4577_v34  ;;  %s5048_s11 = sld [smem:[#allocation2 + $0x25]] }
 0x598   :  { %v1599_v27 = vmul.f32 %v1598_v55, %v1597_v22  ;;  %v1600_v52 = vmul.f32 %v1598_v55, %v1596_v54  ;;  %v1894_v55 = vstv %s4513_s30  ;;  %v4590_v22 = vmul.f32 %v1622_v25, %v1620_v63  ;;  %v5535_v63 = vld [vmem:[#allocation44_spill] sm:$0xff]  ;;  %s4832_s30 = sld [smem:[#allocation2 + $0xac]] }
 0x59a   :  { %v1601_v58 = vadd.f32 %v1599_v27, %v1589_v50  ;;  %v1602_v36 = vadd.f32 %v1600_v52, %v1590_v51  ;;  %v1621_v50 = vsel %vm414_vm3, %v5523_v4, %v5522_v43  ;;  %v5528_v27 = vld [vmem:[#allocation40_spill] sm:$0xff] }
 0x59b   :  { %v4581_v11 = vmul.f32 %v1622_v25, %v1621_v50  ;;  %v1461_v52 = vsel %vm1375_vm4, %v5528_v27, %v5527_v20  ;;  %v1460_v21 = vsel %vm1375_vm4, %v5527_v20, %v5528_v27  ;;  %v5532_v25 = vld [vmem:[#allocation78_spill] sm:$0xff]  ;;  %v5534_v50 = vld [vmem:[#allocation36_spill] sm:$0xff]  ;;  %v5537_v27 = vld [vmem:[#allocation39_spill] sm:$0xff] }
 0x59c   :  { %v4557_v51 = vadd.f32 %v1611_v57, %v1601_v58  ;;  %v4559_v60 = vadd.f32 %v1612_v38, %v1602_v36  ;;  %v4561_v19 = vpop.permute.xlu1 %1900  ;;  %v5529_v57 = vld [vmem:[#allocation42_spill] sm:$0xff]  ;;  %v4613_v36 = vmul.f32 %v1788_v41, %v3533_v5  ;;  %v1847_v30 = vmul.f32 %v1846_v17, %v5532_v25 }
 0x59d   :  { %v1632_v38 = vsel %vm414_vm3, %v5530_v29, %v5529_v57  ;;  %v1633_v58 = vsel %vm414_vm3, %v5529_v57, %v5530_v29  ;;  %v4619_v4 = vmul.f32 %v1462_v6, %v1461_v52  ;;  %v4629_v5 = vmul.f32 %v1788_v41, %v3536_v0  ;;  %v5538_v52 = vld [vmem:[#allocation45_spill] sm:$0xff]  ;;  %v5540_v29 = vld [vmem:[#allocation54_spill] sm:$0xff] }
 0x59e   :  { %v1831_v8 = vpop.permute.xlu0 %1830  ;;  %5531 = vst [vmem:[#allocation101_spill] sm:$0xff] %v4613_v36  ;;  %v4631_v17 = vmul.f32 %v1462_v6, %v1460_v21  ;;  %v1893_v0 = vsel %vm559_vm13, %v5534_v50, %v5535_v63  ;;  %v1450_v41 = vstv %s4555_s28  ;;  %v2007_v6 = vstv %s4571_s25  ;;  %v5539_v57 = vld [vmem:[#allocation81_spill] sm:$0xff]  ;;  %s4928_s28 = sld [smem:[#allocation2 + $0x14]] }
 0x59f   :  { %v1832_v24 = vsel %vm559_vm13, %v5526_v62, %v1831_v8  ;;  %v1833_v54 = vsel %vm559_vm13, %v1831_v8, %v5526_v62  ;;  %v2240_v8 = vstv %s4542_s8  ;;  %5536 = vst [vmem:[#allocation29_spill] sm:$0xff] %v4629_v5  ;;  %v5551_v5 = vld [vmem:[#allocation62_spill] sm:$0xff]  ;;  %s4909_s8 = sld [smem:[#allocation2 + $0x28]] }
 0x5a0   :  { %v1835_v15 = vmul.f32 %v1834_v9, %v1832_v24  ;;  %v1836_v35 = vmul.f32 %v1834_v9, %v1833_v54  ;;  %v1892_v9 = vsel %vm559_vm13, %v5535_v63, %v5534_v50  ;;  %v4643_v54 = vmul.f32 %v1634_v26, %v1632_v38  ;;  %s4930_s25 = sld [smem:[#allocation2 + $0xaf]] }
 0x5a1   :  { %v4653_v20 = vmul.f32 %v1894_v55, %v1892_v9  ;;  %v2017_v38 = vsel %vm1980_vm12, %v5540_v29, %v5539_v57  ;;  %v4692_v9 = vmul.f32 %v1894_v55, %v1893_v0  ;;  %v1871_v34 = vmul.f32 %v1870_v48, %v5551_v5 }
 0x5a2   :  { %v1837_v53 = vadd.f32 %v1835_v15, %v4506_v44  ;;  %v1838_v43 = vadd.f32 %v1836_v35, %v4508_v42  ;;  %v4633_v44 = vmul.f32 %v1634_v26, %v1633_v58  ;;  %v2065_v15 = vsel %vm1980_vm12, %v5538_v52, %v5537_v27 }
 0x5a3   :  { %v2066_v26 = vsel %vm1980_vm12, %v5537_v27, %v5538_v52  ;;  %v2019_v35 = vstv %s4575_s9  ;;  %v2018_v58 = vsel %vm1980_vm12, %v5539_v57, %v5540_v29  ;;  %v5543_v27 = vld [vmem:[#allocation30_spill] sm:$0xff]  ;;  %v5544_v52 = vld [vmem:[#allocation49_spill] sm:$0xff]  ;;  %v1882_v57 = vstv %s4610_s10  ;;  %s4952_s9 = sld [smem:[#allocation2 + $0x2b]] }
 0x5a4   :  { %v4637_v42 = vpop.permute.xlu1 %1516  ;;  %v4639_v62 = vadd.f32 %v1847_v30, %v1837_v53  ;;  %v4641_v24 = vadd.f32 %v1848_v14, %v1838_v43  ;;  %v5542_v14 = vld [vmem:[#allocation46_spill] sm:$0xff]  ;;  %v2020_v29 = vmul.f32 %v2019_v35, %v2017_v38  ;;  %v2228_v38 = vstv %s4635_s13  ;;  %s4959_s10 = sld [smem:[#allocation2 + $0x22]] }
 0x5a5   :  { %v2238_v53 = vsel %vm2153_vm11, %v5542_v14, %v5541_v18  ;;  %v2239_v43 = vsel %vm2153_vm11, %v5541_v18, %v5542_v14  ;;  %v4707_v18 = vpop.permute.xlu2 %2075  ;;  %v2055_v14 = vstv %s4626_s12  ;;  %s4972_s12 = sld [smem:[#allocation2 + $0x24]] }
 0x5a6   :  { %v2004_v21 = vpop.permute.xlu0 %2003  ;;  %s5011_s13 = sld [smem:[#allocation2 + $0x2c]] }
 0x5a7   :  { %v2005_v25 = vsel %vm1980_vm12, %v4154_v49, %v2004_v21  ;;  %v2006_v30 = vsel %vm1980_vm12, %v2004_v21, %v4154_v49  ;;  %v4696_v49 = vmul.f32 %v2067_v10, %v2065_v15  ;;  %v1449_v21 = vsel %vm1375_vm4, %v5544_v52, %v5543_v27 }
 0x5a8   :  { %v2008_v50 = vmul.f32 %v2007_v6, %v2005_v25  ;;  %v2009_v63 = vmul.f32 %v2007_v6, %v2006_v30  ;;  %v2021_v25 = vmul.f32 %v2019_v35, %v2018_v58  ;;  %v4713_v6 = vmul.f32 %v2067_v10, %v2066_v26  ;;  %v5545_v26 = vld [vmem:[#allocation51_spill] sm:$0xff]  ;;  %v5546_v58 = vld [vmem:[#allocation33_spill] sm:$0xff] }
 0x5a9   :  { %v4715_v15 = vmul.f32 %v2240_v8, %v2238_v53  ;;  %v4717_v30 = vmul.f32 %v2240_v8, %v2239_v43  ;;  %v1448_v35 = vsel %vm1375_vm4, %v5543_v27, %v5544_v52  ;;  %v1451_v8 = vmul.f32 %v1450_v41, %v1449_v21  ;;  %v5548_v27 = vld [vmem:[#allocation35_spill] sm:$0xff] }
 0x5aa   :  { %v2010_v55 = vadd.f32 %v2008_v50, %v4206_v31  ;;  %v2011_v0 = vadd.f32 %v2009_v63, %v4208_v16  ;;  %v1880_v53 = vsel %vm559_vm13, %v5546_v58, %v5545_v26  ;;  %v1881_v43 = vsel %vm559_vm13, %v5545_v26, %v5546_v58  ;;  %v5547_v63 = vld [vmem:[#allocation52_spill] sm:$0xff] }
 0x5ab   :  { %v1858_v50 = vstv %s4651_s6  ;;  %v2053_v52 = vsel %vm1980_vm12, %v5548_v27, %v5547_v63  ;;  %v2054_v21 = vsel %vm1980_vm12, %v5547_v63, %v5548_v27  ;;  %v1452_v58 = vmul.f32 %v1450_v41, %v1448_v35  ;;  %s5030_s6 = sld [smem:[#allocation2 + $0x2f]] }
 0x5ac   :  { %v4729_v31 = vpop.permute.xlu1 %2073  ;;  %v4731_v16 = vadd.f32 %v2020_v29, %v2010_v55  ;;  %v4733_v10 = vadd.f32 %v2021_v25, %v2011_v0  ;;  %v5549_v29 = vld [vmem:[#allocation55_spill] sm:$0xff]  ;;  %v5550_v25 = vld [vmem:[#allocation38_spill] sm:$0xff]  ;;  %v1883_v27 = vmul.f32 %v1882_v57, %v1880_v53  ;;  %v1884_v33 = vmul.f32 %v1882_v57, %v1881_v43 }
 0x5ad   :  { %v2226_v55 = vsel %vm2153_vm11, %v5550_v25, %v5549_v29  ;;  %v2227_v0 = vsel %vm2153_vm11, %v5549_v29, %v5550_v25  ;;  %v4769_v29 = vmul.f32 %v2055_v14, %v2053_v52  ;;  %v4771_v41 = vmul.f32 %v2055_v14, %v2054_v21  ;;  %v4790_v5 = vpop.permute.xlu2 %1690 }
 0x5ae   :  { %v1853_v26 = vpop.permute.xlu0 %1852  ;;  %v4773_v35 = vmul.f32 %v2228_v38, %v2226_v55  ;;  %v4775_v25 = vmul.f32 %v2228_v38, %v2227_v0  ;;  %v2043_v53 = vstv %s4690_s14  ;;  %v1658_v43 = vstv %s4703_s15  ;;  %s5095_s14 = sld [smem:[#allocation2 + $0x27]] }
 0x5af   :  { %v1856_v46 = vsel %vm559_vm13, %v1853_v26, %v4296_v59  ;;  %v1857_v63 = vsel %vm559_vm13, %v4296_v59, %v1853_v26  ;;  %v1453_v14 = vadd.f32 %v1451_v8, %v4429_v28  ;;  %v2216_v38 = vstv %s4705_s16  ;;  %s5140_s15 = sld [smem:[#allocation2 + $0x2e]] }
 0x5b0   :  { %v1859_v36 = vmul.f32 %v1858_v50, %v1856_v46  ;;  %v1860_v1 = vmul.f32 %v1858_v50, %v1857_v63  ;;  %v1486_v46 = vstv %s4666_s26  ;;  %v1906_v21 = vstv %s4727_s18  ;;  %s5079_s26 = sld [smem:[#allocation2 + $0xa7]] }
 0x5b1   :  { %v1474_v55 = vstv %s4744_s1  ;;  %v1905_v28 = vsel %vm559_vm13, %v4526_v2, %v4561_v19  ;;  %v1465_v26 = vadd.f32 %v4619_v4, %v1453_v14  ;;  %s5156_s16 = sld [smem:[#allocation2 + $0xae]] }
 0x5b2   :  { %v1861_v59 = vadd.f32 %v1859_v36, %v4639_v62  ;;  %v1862_v57 = vadd.f32 %v1860_v1, %v4641_v24  ;;  %v1454_v36 = vadd.f32 %v1452_v58, %v4431_v56  ;;  %v1918_v1 = vstv %s4720_s17  ;;  %v5553_v62 = vld [vmem:[#allocation90_spill] sm:$0xff]  ;;  %v5554_v24 = vld [vmem:[#allocation67_spill] sm:$0xff]  ;;  %s5167_s17 = sld [smem:[#allocation2 + $0xa9]] }
 0x5b3   :  { %v1916_v52 = vsel %vm559_vm13, %v5554_v24, %v5553_v62  ;;  %v1917_v0 = vsel %vm559_vm13, %v5553_v62, %v5554_v24  ;;  %v1908_v14 = vmul.f32 %v1906_v21, %v1905_v28  ;;  %s5181_s18 = sld [smem:[#allocation2 + $0x29]] }
 0x5b4   :  { %v1873_v50 = vadd.f32 %v1871_v34, %v1861_v59  ;;  %v1874_v32 = vadd.f32 %v1872_v7, %v1862_v57  ;;  %v4792_v48 = vpop.permute.xlu1 %1688  ;;  %v1904_v7 = vsel %vm559_vm13, %v4561_v19, %v4526_v2  ;;  %v5555_v59 = vld [vmem:[#allocation66_spill] sm:$0xff]  ;;  %s5210_s1 = sld [smem:[#allocation2 + $0xb0]] }
 0x5b5   :  { %v1487_v57 = vmul.f32 %v1486_v46, %v5555_v59  ;;  %v1907_v4 = vmul.f32 %v1906_v21, %v1904_v7  ;;  %v5558_v21 = vld [vmem:[#allocation69_spill] sm:$0xff]  ;;  %v2115_v59 = vstv %s4788_s20 }
 0x5b6   :  { %v1885_v56 = vadd.f32 %v1883_v27, %v1873_v50  ;;  %v1886_v34 = vadd.f32 %v1884_v33, %v1874_v32  ;;  %v1469_v8 = vpop.permute.xlu0 %1468  ;;  %v1466_v33 = vadd.f32 %v4631_v17, %v1454_v36  ;;  %v5556_v32 = vld [vmem:[#allocation65_spill] sm:$0xff]  ;;  %v2045_v28 = vmul.f32 %v2043_v53, %v5558_v21  ;;  %v5566_v21 = vld [vmem:[#allocation87_spill] sm:$0xff] }
 0x5b7   :  { %v1472_v58 = vsel %vm1375_vm4, %v1469_v8, %v4397_v12  ;;  %v1473_v2 = vsel %vm1375_vm4, %v4397_v12, %v1469_v8  ;;  %v1488_v62 = vmul.f32 %v1486_v46, %v5556_v32  ;;  %v5557_v12 = vld [vmem:[#allocation68_spill] sm:$0xff] }
 0x5b8   :  { %v1475_v19 = vmul.f32 %v1474_v55, %v1473_v2  ;;  %v1476_v63 = vmul.f32 %v1474_v55, %v1472_v58  ;;  %v1897_v27 = vadd.f32 %v4653_v20, %v1885_v56  ;;  %v1898_v50 = vadd.f32 %v4692_v9, %v1886_v34  ;;  %v5559_v9 = vld [vmem:[#allocation73_spill] sm:$0xff] }
 0x5b9   :  { %v2044_v24 = vmul.f32 %v2043_v53, %v5557_v12  ;;  %v1919_v55 = vmul.f32 %v1918_v1, %v1916_v52  ;;  %v1920_v20 = vmul.f32 %v1918_v1, %v1917_v0  ;;  %v4843_v34 = vmul.f32 %v1658_v43, %v5559_v9  ;;  %v5560_v53 = vld [vmem:[#allocation72_spill] sm:$0xff] }
 0x5ba   :  { %v1477_v17 = vadd.f32 %v1475_v19, %v1465_v26  ;;  %v1478_v36 = vadd.f32 %v1476_v63, %v1466_v33  ;;  %v1909_v56 = vadd.f32 %v1907_v4, %v1897_v27  ;;  %v1910_v7 = vadd.f32 %v1908_v14, %v1898_v50  ;;  %v5561_v33 = vld [vmem:[#allocation75_spill] sm:$0xff]  ;;  %v5562_v63 = vld [vmem:[#allocation76_spill] sm:$0xff] }
 0x5bb   :  { %v1510_v52 = vstv %s4784_s29  ;;  %v2031_v1 = vstv %s4802_s3  ;;  %v4860_v2 = vmul.f32 %v1658_v43, %v5560_v53  ;;  %v4863_v19 = vmul.f32 %v2216_v38, %v5561_v33  ;;  %s2695_s29 = sld [smem:[#allocation2 + $0x31]] }
 0x5bc   :  { %v4845_v46 = vpop.permute.xlu1 %1926  ;;  %v4847_v8 = vadd.f32 %v1487_v57, %v1477_v17  ;;  %v4849_v26 = vadd.f32 %v1488_v62, %v1478_v36  ;;  %v4855_v0 = vadd.f32 %v1919_v55, %v1909_v56  ;;  %v4857_v58 = vadd.f32 %v1920_v20, %v1910_v7  ;;  %v4869_v57 = vpop.permute.xlu2 %2248  ;;  %v5563_v62 = vld [vmem:[#allocation85_spill] sm:$0xff]  ;;  %v5564_v55 = vld [vmem:[#allocation84_spill] sm:$0xff]  ;;  %v5565_v56 = vld [vmem:[#allocation86_spill] sm:$0xff] }
 0x5bd   :  { %v4866_v27 = vmul.f32 %v2216_v38, %v5562_v63  ;;  %v4880_v12 = vmul.f32 %v1510_v52, %v5563_v62  ;;  %v2091_v38 = vstv %s4827_s27  ;;  %v4884_v20 = vmul.f32 %v1510_v52, %v5564_v55  ;;  %v5567_v52 = vld [vmem:[#allocation70_spill] sm:$0xff]  ;;  %v5571_v55 = vld [vmem:[#allocation5_spill] sm:$0xff]  ;;  %s2802_s27 = smov 64  }
 0x5be   :  { %v2026_v4 = vpop.permute.xlu0 %2025  ;;  %v4887_v7 = vmul.f32 %v2115_v59, %v5565_v56  ;;  %v4890_v9 = vmul.f32 %v2115_v59, %v5566_v21  ;;  %v1625_v63 = vadd.f32 %v4581_v11, %v4557_v51  ;;  %v5570_v59 = vld [vmem:[#allocation74_spill] sm:$0xff]  ;;  %v2077_v51 = vsel %vm1980_vm12, %v4729_v31, %v4707_v18 }
 0x5bf   :  { %v2029_v32 = vsel %vm1980_vm12, %v2026_v4, %v4435_v13  ;;  %v2030_v43 = vsel %vm1980_vm12, %v4435_v13, %v2026_v4  ;;  %v5568_v4 = vld [vmem:[#allocation91_spill] sm:$0xff]  ;;  %v115_v56 = vadd.f32 -3.0, %v5571_v55  ;;  %v5572_v21 = vld [vmem:[#allocation6_spill] sm:$0xff]  ;;  %v1646_v14 = vstv %s4853_s7 }
 0x5c0   :  { %v2032_v17 = vmul.f32 %v2031_v1, %v2029_v32  ;;  %v2033_v36 = vmul.f32 %v2031_v1, %v2030_v43  ;;  %v1626_v1 = vadd.f32 %v4590_v22, %v4559_v60  ;;  %v1533_v32 = vsel %vm1375_vm4, %v5568_v4, %v5567_v52  ;;  %v5569_v43 = vld [vmem:[#allocation92_spill] sm:$0xff] }
 0x5c1   :  { %v2089_v62 = vsel %vm1980_vm12, %v5570_v59, %v5569_v43  ;;  %v2078_v60 = vsel %vm1980_vm12, %v4707_v18, %v4729_v31  ;;  %v116_v53 = vadd.f32 -3.0, %v5572_v21  ;;  %vm117_vm14 = vcmp.ge.f32.partialorder %v115_v56, 0.0 }
 0x5c2   :  { %v2034_v33 = vadd.f32 %v2032_v17, %v4731_v16  ;;  %v2035_v13 = vadd.f32 %v2033_v36, %v4733_v10  ;;  %v2079_v17 = vstv %s4839_s5  ;;  %v2090_v36 = vsel %vm1980_vm12, %v5569_v43, %v5570_v59 }
 0x5c3   :  { %v2081_v43 = vmul.f32 %v2079_v17, %v2078_v60  ;;  %vm119_vm2 = vcmp.le.f32.partialorder %v115_v56, 15.0  ;;  %vm118_vm15 = vcmp.ge.f32.partialorder %v116_v53, 0.0  ;;  %vm120_vm5 = vcmp.le.f32.partialorder %v116_v53, 15.0 }
 0x5c4   :  { %v2046_v11 = vadd.f32 %v2044_v24, %v2034_v33  ;;  %v2047_v22 = vadd.f32 %v2045_v28, %v2035_v13  ;;  %v4919_v10 = vpop.permute.xlu1 %2246  ;;  %v1637_v28 = vadd.f32 %v4633_v44, %v1625_v63  ;;  %v1638_v33 = vadd.f32 %v4643_v54, %v1626_v1  ;;  %v2100_v50 = vpop.permute.xlu2 %2099  ;;  %vm4955_vm6 = vmand %vm117_vm14, %vm119_vm2 }
 0x5c5   :  { %v2080_v13 = vmul.f32 %v2079_v17, %v2077_v51  ;;  %v2092_v54 = vmul.f32 %v2091_v38, %v2089_v62  ;;  %v2093_v63 = vmul.f32 %v2091_v38, %v2090_v36  ;;  %v2204_v56 = vstv %s4928_s28  ;;  %vm4993_vm7 = vmand %vm118_vm15, %vm120_vm5 }
 0x5c6   :  { %v2058_v18 = vadd.f32 %v4769_v29, %v2046_v11  ;;  %v2059_v31 = vadd.f32 %v4771_v41, %v2047_v22  ;;  %v1641_v24 = vpop.permute.xlu0 %1640 }
 0x5c7   :  { %v1644_v59 = vsel %vm414_vm3, %v1641_v24, %v4469_v40  ;;  %v1645_v16 = vsel %vm414_vm3, %v4469_v40, %v1641_v24  ;;  %v1532_v40 = vsel %vm1375_vm4, %v5567_v52, %v5568_v4  ;;  %v5577_v24 = vld [vmem:[#allocation83_spill] sm:$0xff] }
 0x5c8   :  { %v1647_v29 = vmul.f32 %v1646_v14, %v1645_v16  ;;  %v1648_v41 = vmul.f32 %v1646_v14, %v1644_v59  ;;  %v2070_v11 = vadd.f32 %v4696_v49, %v2058_v18  ;;  %v2071_v44 = vadd.f32 %v4713_v6, %v2059_v31  ;;  %v5576_v31 = vld [vmem:[#allocation108_spill] sm:$0xff] }
 0x5c9   :  { %v5573_v16 = vstv %s4818_s22  ;;  %v2103_v49 = vstv %s4909_s8  ;;  %v2139_v18 = vstv %s4930_s25 }
 0x5ca   :  { %v1649_v1 = vadd.f32 %v1647_v29, %v1637_v28  ;;  %v1650_v17 = vadd.f32 %v1648_v41, %v1638_v33  ;;  %v2082_v51 = vadd.f32 %v2080_v13, %v2070_v11  ;;  %v2083_v60 = vadd.f32 %v2081_v43, %v2071_v44  ;;  %v5586_v41 = vld [vmem:[#allocation97_spill] sm:$0xff] }
 0x5cb   :  { %v4950_v14 = vmul.f32 %v5573_v16, %v1533_v32  ;;  %v5578_v13 = vmov 0.0  }
 0x5cc   :  { %v2098_v38 = vpop.permute.xlu1 %2097  ;;  %v2094_v62 = vadd.f32 %v2092_v54, %v2082_v51  ;;  %v2095_v22 = vadd.f32 %v2093_v63, %v2083_v60  ;;  %v4962_v36 = vadd.f32 %v4843_v34, %v1649_v1  ;;  %v4965_v52 = vadd.f32 %v4860_v2, %v1650_v17  ;;  %v5582_v51 = vld [vmem:[#allocation98_spill] sm:$0xff]  ;;  %v5009_v53 = vpop.permute.xlu2 %1948 }
 0x5cd   :  { %v2101_v4 = vsel %vm1980_vm12, %v2098_v38, %v2100_v50  ;;  %v2102_v32 = vsel %vm1980_vm12, %v2100_v50, %v2098_v38  ;;  %v2137_v34 = vsel %vm1980_vm12, %v5577_v24, %v5576_v31  ;;  %v2138_v50 = vsel %vm1980_vm12, %v5576_v31, %v5577_v24 }
 0x5ce   :  { %v2104_v2 = vmul.f32 %v2103_v49, %v2101_v4  ;;  %v2105_v28 = vmul.f32 %v2103_v49, %v2102_v32  ;;  %v2199_v33 = vpop.permute.xlu0 %2198  ;;  %v123_v43 = vsel %vm4955_vm6, 1.0, %v5578_v13  ;;  %v5581_v1 = vmov %v5573_v16  ;;  %v5584_v49 = vld [vmem:[#allocation99_spill] sm:$0xff] }
 0x5cf   :  { %v2202_v59 = vsel %vm2153_vm11, %v2199_v33, %v4515_v23  ;;  %v2203_v29 = vsel %vm2153_vm11, %v4515_v23, %v2199_v33  ;;  %v4999_v17 = vmul.f32 %v5581_v1, %v1532_v40  ;;  %v5583_v60 = vstv %s4837_s0 }
 0x5d0   :  { %v2106_v11 = vadd.f32 %v2104_v2, %v2094_v62  ;;  %v2107_v44 = vadd.f32 %v2105_v28, %v2095_v22  ;;  %v2205_v54 = vmul.f32 %v2204_v56, %v2202_v59  ;;  %v2206_v63 = vmul.f32 %v2204_v56, %v2203_v29 }
 0x5d1   :  { %v2265_v16 = vmul.f32 %v5583_v60, %v5582_v51  ;;  %v5585_v6 = vmov %v5583_v60  ;;  %v5007_v23 = vmul.f32 %v2139_v18, %v2137_v34  ;;  %v5021_v32 = vmul.f32 %v2139_v18, %v2138_v50 }
 0x5d2   :  { %v2266_v38 = vmul.f32 %v5585_v6, %v5584_v49  ;;  %v2207_v62 = vadd.f32 %v2205_v54, %v4376_v37  ;;  %v2208_v22 = vadd.f32 %v2206_v63, %v4378_v61  ;;  %v5016_v40 = vadd.f32 %v4887_v7, %v2106_v11 }
 0x5d3   :  { %v5019_v4 = vadd.f32 %v4890_v9, %v2107_v44  ;;  %v124_v56 = vsel %vm4993_vm7, 1.0, %v5578_v13  ;;  %v5027_v31 = vmul.f32 %v4358_v47, %v123_v43  ;;  %v125_v37 = vadd.f32 -2.0, %v5571_v55 }
 0x5d4   :  { %v1522_v61 = vstv %s4952_s9  ;;  %v1520_v7 = vsel %vm1375_vm4, %v4637_v42, %v4596_v45  ;;  %v2219_v9 = vadd.f32 %v4863_v19, %v2207_v62  ;;  %v2220_v18 = vadd.f32 %v4866_v27, %v2208_v22  ;;  %v5039_v24 = vpop.permute.xlu1 %2272  ;;  %v2124_v49 = vpop.permute.xlu2 %2123 }
 0x5d5   :  { %v2252_v34 = vstv %s4959_s10  ;;  %v2250_v47 = vsel %vm2153_vm11, %v4919_v10, %v4869_v57  ;;  %v1498_v2 = vstv %s4972_s12  ;;  %v126_v28 = vadd.f32 -2.0, %v5572_v21 }
 0x5d6   :  { %v1521_v19 = vsel %vm1375_vm4, %v4596_v45, %v4637_v42  ;;  %v2251_v27 = vsel %vm2153_vm11, %v4869_v57, %v4919_v10  ;;  %v2231_v33 = vadd.f32 %v4773_v35, %v2219_v9  ;;  %v2232_v50 = vadd.f32 %v4775_v25, %v2220_v18  ;;  %v1495_v43 = vpop.permute.xlu0 %1494 }
 0x5d7   :  { %vm127_vm8 = vcmp.ge.f32.partialorder %v125_v37, 0.0  ;;  %vm129_vm1 = vcmp.le.f32.partialorder %v125_v37, 15.0  ;;  %v1496_v59 = vsel %vm1375_vm4, %v4420_v39, %v1495_v43  ;;  %v1497_v45 = vsel %vm1375_vm4, %v1495_v43, %v4420_v39 }
 0x5d8   :  { %v2253_v42 = vmul.f32 %v2252_v34, %v2250_v47  ;;  %v1499_v29 = vmul.f32 %v1498_v2, %v1497_v45  ;;  %v1500_v57 = vmul.f32 %v1498_v2, %v1496_v59  ;;  %v2243_v35 = vadd.f32 %v4715_v15, %v2231_v33  ;;  %vm5074_vm4 = vmand %vm127_vm8, %vm129_vm1  ;;  %v5591_v2 = vld [vmem:[#allocation64_spill] sm:$0xff] }
 0x5d9   :  { %v2254_v10 = vmul.f32 %v2252_v34, %v2251_v27  ;;  %vm128_vm10 = vcmp.ge.f32.partialorder %v126_v28, 0.0  ;;  %vm130_vm0 = vcmp.le.f32.partialorder %v126_v28, 15.0  ;;  %v2244_v25 = vadd.f32 %v4717_v30, %v2232_v50 }
 0x5da   :  { %v1367_v11 = vmul.f32 %v5586_v41, %v124_v56  ;;  %v1501_v44 = vadd.f32 %v1499_v29, %v4847_v8  ;;  %v1502_v54 = vadd.f32 %v1500_v57, %v4849_v26  ;;  %v2255_v63 = vadd.f32 %v2253_v42, %v2243_v35  ;;  %vm5082_vm14 = vmand %vm128_vm10, %vm130_vm0  ;;  %v5598_v8 = vld [vmem:[#allocation93_spill] sm:$0xff] }
 0x5db   :  { %v1523_v39 = vmul.f32 %v1522_v61, %v1521_v19  ;;  %v1694_v1 = vstv %s5011_s13  ;;  %v2127_v15 = vstv %s5030_s6  ;;  %v2256_v60 = vadd.f32 %v2254_v10, %v2244_v25  ;;  %v5594_v10 = vld [vmem:[#allocation88_spill] sm:$0xff] }
 0x5dc   :  { %v1524_v30 = vmul.f32 %v1522_v61, %v1520_v7  ;;  %v1513_v26 = vadd.f32 %v4880_v12, %v1501_v44  ;;  %v1514_v6 = vadd.f32 %v4884_v20, %v1502_v54  ;;  %v2122_v62 = vpop.permute.xlu1 %2121  ;;  %v5088_v22 = vadd.f32 %v2265_v16, %v2255_v63 }
 0x5dd   :  { %v2125_v56 = vsel %vm1980_vm12, %v2122_v62, %v2124_v49  ;;  %v2126_v37 = vsel %vm1980_vm12, %v2124_v49, %v2122_v62  ;;  %v1670_v61 = vstv %s5048_s11  ;;  %v5097_v7 = vadd.f32 %v2266_v38, %v2256_v60  ;;  %v5596_v60 = vld [vmem:[#allocation94_spill] sm:$0xff]  ;;  %v5601_v62 = vld [vmem:[#allocation77_spill] sm:$0xff] }
 0x5de   :  { %v1525_v9 = vadd.f32 %v1523_v39, %v1513_v26  ;;  %v1526_v18 = vadd.f32 %v1524_v30, %v1514_v6  ;;  %v2128_v34 = vmul.f32 %v2127_v15, %v2125_v56  ;;  %v2129_v12 = vmul.f32 %v2127_v15, %v2126_v37  ;;  %v1667_v47 = vpop.permute.xlu0 %1666 }
 0x5df   :  { %v133_v20 = vsel %vm5074_vm4, 1.0, %v5578_v13  ;;  %v134_v16 = vsel %vm5082_vm14, 1.0, %v5578_v13  ;;  %v1668_v38 = vsel %vm414_vm3, %v5591_v2, %v1667_v47  ;;  %v1669_v28 = vsel %vm414_vm3, %v1667_v47, %v5591_v2  ;;  %v5603_v47 = vld [vmem:[#allocation29_spill] sm:$0xff] }
 0x5e0   :  { %v1537_v19 = vadd.f32 %v4950_v14, %v1525_v9  ;;  %v1538_v27 = vadd.f32 %v4999_v17, %v1526_v18  ;;  %v2130_v33 = vadd.f32 %v2128_v34, %v5016_v40  ;;  %v2131_v50 = vadd.f32 %v2129_v12, %v5019_v4  ;;  %v5592_v4 = vld [vmem:[#allocation89_spill] sm:$0xff]  ;;  %v5602_v12 = vld [vmem:[#allocation27_spill] sm:$0xff] }
 0x5e1   :  { %v1692_v43 = vsel %vm414_vm3, %v4792_v48, %v4790_v5  ;;  %v1693_v59 = vsel %vm414_vm3, %v4790_v5, %v4792_v48  ;;  %v1671_v45 = vmul.f32 %v1670_v61, %v1669_v28  ;;  %v1672_v42 = vmul.f32 %v1670_v61, %v1668_v38  ;;  %v5604_v28 = vld [vmem:[#allocation102_spill] sm:$0xff] }
 0x5e2   :  { %v1539_v14 = vmul.f32 %v1537_v19, %v133_v20  ;;  %v1540_v29 = vmul.f32 %v1538_v27, %v134_v16  ;;  %v5124_v17 = vadd.f32 %v5007_v23, %v2130_v33  ;;  %v5127_v40 = vadd.f32 %v5021_v32, %v2131_v50  ;;  %v5605_v19 = vld [vmem:[#allocation101_spill] sm:$0xff] }
 0x5e3   :  { %v5593_v57 = vstv %s4804_s24  ;;  %v1673_v5 = vadd.f32 %v1671_v45, %v4962_v36  ;;  %v1674_v48 = vadd.f32 %v1672_v42, %v4965_v52  ;;  %v1942_v44 = vstv %s5079_s26  ;;  %v5600_v36 = vld [vmem:[#allocation96_spill] sm:$0xff]  ;;  %v5607_v42 = vld [vmem:[#allocation10_spill] sm:$0xff] }
 0x5e4   :  { %v1683_v35 = vmul.f32 %v5593_v57, %v5592_v4  ;;  %v5595_v25 = vmov %v5593_v57  ;;  %v1695_v54 = vmul.f32 %v1694_v1, %v1693_v59  ;;  %v1541_v63 = vadd.f32 %v1539_v14, %v5027_v31  ;;  %v5606_v59 = vld [vmem:[#allocation9_spill] sm:$0xff] }
 0x5e5   :  { %v1684_v41 = vmul.f32 %v5595_v25, %v5594_v10  ;;  %v1542_v23 = vadd.f32 %v1540_v29, %v1367_v11  ;;  %v1696_v39 = vmul.f32 %v1694_v1, %v1692_v43  ;;  %v1930_v32 = vstv %s5095_s14  ;;  %v5608_v29 = vld [vmem:[#allocation26_spill] sm:$0xff] }
 0x5e6   :  { %v1685_v51 = vadd.f32 %v1683_v35, %v1673_v5  ;;  %v5597_v30 = vstv %s4832_s30  ;;  %v1940_v52 = vsel %vm559_vm13, %v5601_v62, %v5600_v36  ;;  %v1941_v31 = vsel %vm559_vm13, %v5600_v36, %v5601_v62  ;;  %v1925_v11 = vpop.permute.xlu0 %1924  ;;  %v5610_v35 = vld [vmem:[#allocation50_spill] sm:$0xff]  ;;  %v5613_v62 = vld [vmem:[#allocation8_spill] sm:$0xff] }
 0x5e7   :  { %v1686_v15 = vadd.f32 %v1684_v41, %v1674_v48  ;;  %v1707_v49 = vmul.f32 %v5597_v30, %v5596_v60  ;;  %v5599_v26 = vmov %v5597_v30  ;;  %v1928_v37 = vsel %vm559_vm13, %v1925_v11, %v4845_v46 }
 0x5e8   :  { %v1708_v6 = vmul.f32 %v5599_v26, %v5598_v8  ;;  %v1697_v1 = vadd.f32 %v1695_v54, %v1685_v51  ;;  %v1929_v61 = vsel %vm559_vm13, %v4845_v46, %v1925_v11  ;;  %v165_v9 = vadd.f32 2.0, %v5571_v55  ;;  %v5612_v51 = vld [vmem:[#allocation80_spill] sm:$0xff] }
 0x5e9   :  { %v1698_v56 = vadd.f32 %v1696_v39, %v1686_v15  ;;  %v1931_v18 = vmul.f32 %v1930_v32, %v1928_v37  ;;  %v1932_v34 = vmul.f32 %v1930_v32, %v1929_v61  ;;  %v1792_v20 = vadd.f32 %v5603_v47, %v5602_v12  ;;  %v5611_v39 = vld [vmem:[#allocation103_spill] sm:$0xff] }
 0x5ea   :  { %v1943_v16 = vmul.f32 %v1942_v44, %v1940_v52  ;;  %v1709_v2 = vadd.f32 %v1707_v49, %v1697_v1  ;;  %v1791_v27 = vadd.f32 %v5605_v19, %v5604_v28  ;;  %v1944_v33 = vmul.f32 %v1942_v44, %v1941_v31  ;;  %v5614_v31 = vld [vmem:[#allocation7_spill] sm:$0xff]  ;;  %v5617_v28 = vld [vmem:[#allocation12_spill] sm:$0xff] }
 0x5eb   :  { %v1710_v38 = vadd.f32 %v1708_v6, %v1698_v56  ;;  %v166_v46 = vadd.f32 2.0, %v5572_v21  ;;  %v1933_v50 = vadd.f32 %v1931_v18, %v4855_v0  ;;  %v1934_v43 = vadd.f32 %v1932_v34, %v4857_v58  ;;  %v2295_v56 = vpop.permute.xlu1 %2294 }
 0x5ec   :  { %v1711_v45 = vmul.f32 %v1709_v2, %v5606_v59  ;;  %v5609_v4 = vstv %s4488_s19  ;;  %vm167_vm3 = vcmp.ge.f32.partialorder %v165_v9, 0.0  ;;  %v1798_v10 = vadd.f32 %v5610_v35, %v1792_v20  ;;  %s5200_s19 = sld [smem:[#allocation2 + $0x30]]  ;;  %v5616_v2 = vld [vmem:[#allocation11_spill] sm:$0xff] }
 0x5ed   :  { %v1712_v14 = vmul.f32 %v1710_v38, %v5607_v42  ;;  %v1795_v57 = vmul.f32 %v5609_v4, %v5608_v29  ;;  %v1945_v25 = vadd.f32 %v1943_v16, %v1933_v50  ;;  %v1946_v41 = vadd.f32 %v1944_v33, %v1934_v43  ;;  %v5618_v42 = vld [vmem:[#allocation106_spill] sm:$0xff] }
 0x5ee   :  { %vm169_vm12 = vcmp.le.f32.partialorder %v165_v9, 15.0  ;;  %v1954_v5 = vstv %s5140_s15  ;;  %v1713_v48 = vadd.f32 %v1711_v45, %v1541_v63  ;;  %v1966_v0 = vstv %s5156_s16  ;;  %v1951_v58 = vpop.permute.xlu0 %1950  ;;  %v5615_v9 = vld [vmem:[#allocation105_spill] sm:$0xff] }
 0x5ef   :  { %v1714_v44 = vadd.f32 %v1712_v14, %v1542_v23  ;;  %vm168_vm2 = vcmp.ge.f32.partialorder %v166_v46, 0.0  ;;  %vm170_vm15 = vcmp.le.f32.partialorder %v166_v46, 15.0  ;;  %v1797_v54 = vadd.f32 %v1795_v57, %v1791_v27  ;;  %vm171_vm6 = vmand %vm167_vm3, %vm169_vm12 }
 0x5f0   :  { %v1964_v15 = vsel %vm559_vm13, %v5612_v51, %v5611_v39  ;;  %v1965_v32 = vsel %vm559_vm13, %v5611_v39, %v5612_v51  ;;  %v1952_v63 = vsel %vm559_vm13, %v5009_v53, %v1951_v58  ;;  %v1953_v23 = vsel %vm559_vm13, %v1951_v58, %v5009_v53  ;;  %vm172_vm5 = vmand %vm168_vm2, %vm170_vm15 }
 0x5f1   :  { %v1955_v60 = vmul.f32 %v1954_v5, %v1952_v63  ;;  %v1956_v30 = vmul.f32 %v1954_v5, %v1953_v23  ;;  %v2288_v49 = vstv %s5167_s17  ;;  %v1967_v8 = vmul.f32 %v1966_v0, %v1964_v15 }
 0x5f2   :  { %v1968_v26 = vmul.f32 %v1966_v0, %v1965_v32  ;;  %v1800_v52 = vmul.f32 %v1798_v10, %v5613_v62  ;;  %v1799_v11 = vmul.f32 %v1797_v54, %v5614_v31  ;;  %v173_v1 = vsel %vm171_vm6, 1.0, %v5578_v13 }
 0x5f3   :  { %v1957_v6 = vadd.f32 %v1955_v60, %v1945_v25  ;;  %v1958_v36 = vadd.f32 %v1956_v30, %v1946_v41  ;;  %v174_v53 = vsel %vm172_vm5, 1.0, %v5578_v13  ;;  %v2289_v18 = vmul.f32 %v2288_v49, %v5615_v9 }
 0x5f4   :  { %v2276_v34 = vstv %s5181_s18  ;;  %v175_v12 = vadd.f32 3.0, %v5571_v55  ;;  %v176_v47 = vadd.f32 3.0, %v5572_v21  ;;  %v1801_v20 = vadd.f32 %v1799_v11, %v1713_v48 }
 0x5f5   :  { %v1969_v37 = vadd.f32 %v1967_v8, %v1957_v6  ;;  %v1970_v61 = vadd.f32 %v1968_v26, %v1958_v36  ;;  %v1802_v16 = vadd.f32 %v1800_v52, %v1714_v44  ;;  %v2144_v33 = vmul.f32 %v5124_v17, %v173_v1  ;;  %v2297_v17 = vpop.permute.xlu2 %2296 }
 0x5f6   :  { %v2271_v27 = vpop.permute.xlu0 %2270  ;;  %v2145_v46 = vmul.f32 %v5127_v40, %v174_v53  ;;  %v2290_v14 = vmul.f32 %v2288_v49, %v5618_v42  ;;  %v2300_v29 = vstv %s5200_s19  ;;  %vm177_vm13 = vcmp.ge.f32.partialorder %v175_v12, 0.0  ;;  %v5619_v42 = vld [vmem:[#allocation16_spill] sm:$0xff] }
 0x5f7   :  { %v1971_v38 = vmul.f32 %v1969_v37, %v5616_v2  ;;  %v1972_v19 = vmul.f32 %v1970_v61, %v5617_v28  ;;  %v2274_v55 = vsel %vm2153_vm11, %v2271_v27, %v5039_v24  ;;  %v2275_v21 = vsel %vm2153_vm11, %v5039_v24, %v2271_v27 }
 0x5f8   :  { %v2277_v59 = vmul.f32 %v2276_v34, %v2274_v55  ;;  %v2278_v45 = vmul.f32 %v2276_v34, %v2275_v21  ;;  %vm179_vm7 = vcmp.le.f32.partialorder %v175_v12, 15.0  ;;  %v2298_v24 = vsel %vm2153_vm11, %v2295_v56, %v2297_v17 }
 0x5f9   :  { %v1973_v50 = vadd.f32 %v1971_v38, %v1801_v20  ;;  %v1974_v43 = vadd.f32 %v1972_v19, %v1802_v16  ;;  %v2299_v10 = vsel %vm2153_vm11, %v2297_v17, %v2295_v56  ;;  %vm178_vm8 = vcmp.ge.f32.partialorder %v176_v47, 0.0  ;;  %vm181_vm10 = vmand %vm177_vm13, %vm179_vm7 }
 0x5fa   :  { %v2279_v40 = vadd.f32 %v2277_v59, %v5088_v22  ;;  %v2280_v4 = vadd.f32 %v2278_v45, %v5097_v7  ;;  %vm180_vm1 = vcmp.le.f32.partialorder %v176_v47, 15.0  ;;  %v2312_v5 = vstv %s5210_s1  ;;  %v2309_v22 = vpop.permute.xlu1 %2308 }
 0x5fb   :  { %v2146_v57 = vadd.f32 %v2144_v33, %v1973_v50  ;;  %v2147_v35 = vadd.f32 %v2145_v46, %v1974_v43  ;;  %v2301_v48 = vmul.f32 %v2300_v29, %v2298_v24  ;;  %v2302_v44 = vmul.f32 %v2300_v29, %v2299_v10  ;;  %vm182_vm0 = vmand %vm178_vm8, %vm180_vm1  ;;  %v5620_v29 = vld [vmem:[#allocation14_spill] sm:$0xff] }
 0x5fc   :  { %v2291_v25 = vadd.f32 %v2289_v18, %v2279_v40  ;;  %v2292_v41 = vadd.f32 %v2290_v14, %v2280_v4  ;;  %v183_v32 = vsel %vm181_vm10, 1.0, %v5578_v13  ;;  %v184_v63 = vsel %vm182_vm0, 1.0, %v5578_v13  ;;  %v5621_v40 = vld [vmem:[#allocation17_spill] sm:$0xff] }
 0x5fd   :  { %v2322_v8 = vstv %s2695_s29 }
 0x5fe   :  { %v2307_v7 = vpop.permute.xlu0 %2306  ;;  %v2303_v54 = vadd.f32 %v2301_v48, %v2291_v25  ;;  %v2304_v39 = vadd.f32 %v2302_v44, %v2292_v41  ;;  %v2363_v25 = vld [vmem:[%s5274_s2] sm:$0xff] }
 0x5ff   :  { %v2310_v0 = vsel %vm2153_vm11, %v2307_v7, %v2309_v22  ;;  %v2311_v58 = vsel %vm2153_vm11, %v2309_v22, %v2307_v7  ;;  %v5623_v48 = vld [vmem:[#allocation13_spill] sm:$0xff] }
 0x600   :  { %v2313_v51 = vmul.f32 %v2312_v5, %v2310_v0  ;;  %v2314_v15 = vmul.f32 %v2312_v5, %v2311_v58 }
 0x602   :  { %v2315_v23 = vadd.f32 %v2313_v51, %v2303_v54  ;;  %v2316_v60 = vadd.f32 %v2314_v15, %v2304_v39 }
 0x604   :  { %v2317_v30 = vmul.f32 %v2315_v23, %v183_v32  ;;  %v2318_v49 = vmul.f32 %v2316_v60, %v184_v63 }
 0x606   :  { %v2319_v26 = vadd.f32 %v2317_v30, %v2146_v57  ;;  %v2320_v6 = vadd.f32 %v2318_v49, %v2147_v35  ;;  %v5622_v57 = vld [vmem:[#allocation15_spill] sm:$0xff]  ;;  %v2364_v30 = vld [vmem:[%s5274_s2 + $0x8] sm:$0x1] }
 0x608   :  { %v2323_v36 = vadd.f32 %v2322_v8, %v2319_v26  ;;  %v2324_v62 = vadd.f32 %v2322_v8, %v2320_v6 }
 0x60a   :  { %v2696_v52 = vmul.f32 -1.442695, %v2323_v36  ;;  %v2697_v3 = vmul.f32 -1.442695, %v2324_v62 }
 0x60c   :  { %2741 = vpow2.f32 %v2696_v52 }
 0x60d   :  { %2743 = vpow2.f32 %v2697_v3 }
 0x612   :  { %v2742_v31 = vpop.eup %2741 }
 0x613   :  { %v2744_v11 = vpop.eup %2743  ;;  %v2331_v1 = vadd.f32 1.0, %v2742_v31 }
 0x614   :  { %v2332_v53 = vadd.f32 1.0, %v2744_v11 }
 0x615   :  { %2745 = vrcp.f32 %v2331_v1  ;;  %v2344_v18 = vand.u32 2147483648, %v2331_v1  ;;  %v2342_v47 = vand.u32 2147483647, %v2331_v1  ;;  %vm2338_vm14 = vweird.f32 %v2331_v1 }
 0x616   :  { %2747 = vrcp.f32 %v2332_v53  ;;  %v2359_v20 = vand.u32 2147483648, %v2332_v53  ;;  %v2357_v2 = vand.u32 2147483647, %v2332_v53  ;;  %vm2353_vm12 = vweird.f32 %v2332_v53 }
 0x617   :  { %v2345_v28 = vor.u32 1.1754944e-38, %v2344_v18  ;;  %vm2343_vm2 = vcmp.eq.f32.partialorder %v2342_v47, 8.507059e+37 }
 0x618   :  { %v2360_v33 = vor.u32 1.1754944e-38, %v2359_v20  ;;  %vm2358_vm6 = vcmp.eq.f32.partialorder %v2357_v2, 8.507059e+37 }
 0x61b   :  { %v2746_v13 = vpop.eup %2745 }
 0x61c   :  { %v2748_v56 = vpop.eup %2747  ;;  %v2334_v37 = vmul.f32 %v2746_v13, %v2331_v1  ;;  %vm2339_vm11 = vweird.f32 %v2746_v13 }
 0x61d   :  { %v2349_v61 = vmul.f32 %v2748_v56, %v2332_v53  ;;  %vm2354_vm4 = vweird.f32 %v2748_v56  ;;  %vm2340_vm3 = vmor %vm2338_vm14, %vm2339_vm11  ;;  %vm2519_vm14 = vcmask 394240  }
 0x61e   :  { %v2335_v9 = vsub.f32 1.0, %v2334_v37  ;;  %vm2355_vm15 = vmor %vm2353_vm12, %vm2354_vm4  ;;  %vm2420_vm4 = vcmask 261120  }
 0x61f   :  { %v2350_v34 = vsub.f32 1.0, %v2349_v61 }
 0x620   :  { %v2336_v12 = vmul.f32 %v2746_v13, %v2335_v9 }
 0x621   :  { %v2351_v16 = vmul.f32 %v2748_v56, %v2350_v34 }
 0x622   :  { %v2337_v38 = vadd.f32 %v2746_v13, %v2336_v12 }
 0x623   :  { %v2352_v19 = vadd.f32 %v2748_v56, %v2351_v16 }
 0x624   :  { %v2341_v27 = vsel %vm2340_vm3, %v2746_v13, %v2337_v38 }
 0x625   :  { %v2346_v46 = vsel %vm2343_vm2, %v2345_v28, %v2341_v27  ;;  %v2356_v55 = vsel %vm2355_vm15, %v2748_v56, %v2352_v19 }
 0x626   :  { %v2361_v21 = vsel %vm2358_vm6, %v2360_v33, %v2356_v55  ;;  %v2443_v50 = vperm.slane %v2346_v46, 1  ;;  %v2370_v43 = vperm.slane %v2346_v46, 0 }
 0x627   :  { %v2444_v59 = vperm.slane %v2361_v21, 1  ;;  %v2371_v45 = vperm.slane %v2361_v21, 0 }
 0x628   :  { %v2445_v14 = vmul.f32 %v2443_v50, %v5619_v42  ;;  %v2372_v17 = vmul.f32 %v2370_v43, %v5620_v29 }
 0x629   :  { %v2446_v4 = vmul.f32 %v2444_v59, %v5621_v40  ;;  %v2373_v35 = vmul.f32 %v2371_v45, %v5622_v57  ;;  %v2367_v40 = vld [vmem:[%s5274_s2 + $0x20] sm:$0xff]  ;;  %v2365_v57 = vld [vmem:[%s5274_s2 + $0x10] sm:$0xff] }
 0x62b   :  { %v2447_v24 = vadd.f32 %v2446_v4, %v2445_v14  ;;  %v2374_v10 = vadd.f32 %v2373_v35, %v2372_v17  ;;  %v2368_v17 = vld [vmem:[%s5274_s2 + $0x28] sm:$0xff]  ;;  %v2366_v4 = vld [vmem:[%s5274_s2 + $0x18] sm:$0xff] }
 0x62c   :  { %2435 = vmatpush.msra.mxu2 %v2368_v17  ;;  %2507 = vmatpush.msra.mxu3 %v2368_v17 }
 0x62d   :  { %2448 = vadd.xlane.f32.xlu2 %v2447_v24  ;;  %2375 = vadd.xlane.f32.xlu0 %v2374_v10 }
 0x62e   :  { %2436 = vmatpush.msra.mxu2 %v2367_v40  ;;  %2508 = vmatpush.msra.mxu3 %v2367_v40 }
 0x630   :  { %2437 = vmatpush.msra.mxu2 %v2366_v4  ;;  %2509 = vmatpush.msra.mxu3 %v2366_v4 }
 0x632   :  { %2438 = vmatpush.msra.mxu2 %v2365_v57  ;;  %2510 = vmatpush.msra.mxu3 %v2365_v57 }
 0x6a0   :  { %v2449_v41 = vpop.xlane.xlu2 %2448  ;;  %v2376_v5 = vpop.xlane.xlu0 %2375 }
 0x6a1   :  { %v2450_v44 = vmul.f32 %v2449_v41, %v5623_v48  ;;  %v2377_v22 = vmul.f32 %v2376_v5, %v5623_v48  ;;  %v2369_v48 = vld [vmem:[%s5274_s2 + $0x30] sm:$0x1] }
 0x6a3   :  { %v2451_v7 = vmul.f32 %v2450_v44, %v2363_v25  ;;  %v2378_v0 = vmul.f32 %v2377_v22, %v2363_v25 }
 0x6a5   :  { %v2452_v58 = vrot.slane %v2451_v7, 4  ;;  %v2379_v54 = vrot.slane %v2378_v0, 4 }
 0x6a7   :  { %v2453_v39 = vadd.f32 %v2452_v58, %v2451_v7  ;;  %v2380_v51 = vadd.f32 %v2379_v54, %v2378_v0 }
 0x6a9   :  { %v2454_v15 = vrot.slane %v2453_v39, 2  ;;  %v2381_v32 = vrot.slane %v2380_v51, 2 }
 0x6ab   :  { %v2455_v63 = vadd.f32 %v2454_v15, %v2453_v39  ;;  %v2382_v23 = vadd.f32 %v2381_v32, %v2380_v51 }
 0x6ad   :  { %v2456_v60 = vrot.slane %v2455_v63, 1  ;;  %v2383_v8 = vrot.slane %v2382_v23, 1 }
 0x6af   :  { %v2457_v49 = vadd.f32 %v2456_v60, %v2455_v63  ;;  %v2384_v6 = vadd.f32 %v2383_v8, %v2382_v23 }
 0x6b1   :  { %v2458_v26 = vadd.f32 %v2457_v49, %v2364_v30  ;;  %v2385_v36 = vadd.f32 %v2384_v6, %v2364_v30 }
 0x6b3   :  { %2749 = vtanh.f32 %v2458_v26  ;;  %v2700_v3 = vmul.f32 -1.442695, %v2458_v26  ;;  %v2698_v31 = vmul.f32 -1.442695, %v2385_v36 }
 0x6b4   :  { %2751 = vtanh.f32 %v2385_v36 }
 0x6b5   :  { %2753 = vpow2.f32 %v2700_v3 }
 0x6b6   :  { %2755 = vpow2.f32 %v2698_v31 }
 0x6b9   :  { %v2750_v62 = vpop.eup %2749 }
 0x6ba   :  { %2480 = vrot.lane.b32.xlu1 %v2750_v62, %s2802_s27  ;;  %v2752_v52 = vpop.eup %2751 }
 0x6bb   :  { %v2754_v11 = vpop.eup %2753 }
 0x6bc   :  { %v2462_v1 = vadd.f32 1.0, %v2754_v11  ;;  %v2756_v53 = vpop.eup %2755 }
 0x6bd   :  { %v2389_v13 = vadd.f32 1.0, %v2756_v53 }
 0x6be   :  { %2757 = vrcp.f32 %v2462_v1  ;;  %v2474_v20 = vand.u32 2147483648, %v2462_v1  ;;  %vm2468_vm13 = vweird.f32 %v2462_v1  ;;  %v2472_v16 = vand.u32 2147483647, %v2462_v1 }
 0x6bf   :  { %2759 = vrcp.f32 %v2389_v13  ;;  %v2401_v55 = vand.u32 2147483648, %v2389_v13  ;;  %vm2395_vm10 = vweird.f32 %v2389_v13  ;;  %v2399_v21 = vand.u32 2147483647, %v2389_v13 }
 0x6c0   :  { %v2475_v28 = vor.u32 1.1754944e-38, %v2474_v20  ;;  %vm2473_vm8 = vcmp.eq.f32.partialorder %v2472_v16, 8.507059e+37 }
 0x6c1   :  { %v2402_v43 = vor.u32 1.1754944e-38, %v2401_v55  ;;  %vm2400_vm11 = vcmp.eq.f32.partialorder %v2399_v21, 8.507059e+37 }
 0x6c2   :  { %2407 = vrot.lane.b32.xlu1 %v2752_v52, %s2802_s27 }
 0x6c4   :  { %v2758_v56 = vpop.eup %2757 }
 0x6c5   :  { %v2464_v37 = vmul.f32 %v2758_v56, %v2462_v1  ;;  %v2760_v9 = vpop.eup %2759  ;;  %vm2469_vm5 = vweird.f32 %v2758_v56 }
 0x6c6   :  { %v2391_v34 = vmul.f32 %v2760_v9, %v2389_v13  ;;  %vm2470_vm7 = vmor %vm2468_vm13, %vm2469_vm5  ;;  %vm2396_vm1 = vweird.f32 %v2760_v9 }
 0x6c7   :  { %v2465_v61 = vsub.f32 1.0, %v2464_v37  ;;  %vm2397_vm0 = vmor %vm2395_vm10, %vm2396_vm1 }
 0x6c8   :  { %v2392_v47 = vsub.f32 1.0, %v2391_v34 }
 0x6c9   :  { %v2466_v18 = vmul.f32 %v2758_v56, %v2465_v61 }
 0x6ca   :  { %v2393_v38 = vmul.f32 %v2760_v9, %v2392_v47 }
 0x6cb   :  { %v2467_v12 = vadd.f32 %v2758_v56, %v2466_v18 }
 0x6cc   :  { %v2394_v46 = vadd.f32 %v2760_v9, %v2393_v38 }
 0x6cd   :  { %v2471_v2 = vsel %vm2470_vm7, %v2758_v56, %v2467_v12 }
 0x6ce   :  { %v2476_v27 = vsel %vm2473_vm8, %v2475_v28, %v2471_v2  ;;  %v2398_v50 = vsel %vm2397_vm0, %v2760_v9, %v2394_v46 }
 0x6cf   :  { %v2403_v45 = vsel %vm2400_vm11, %v2402_v43, %v2398_v50 }
 0x72c   :  { %v2481_v19 = vpop.permute.xlu1 %2480 }
 0x72d   :  { %v2483_v33 = vmul.f32 %v2481_v19, %v2476_v27 }
 0x72f   :  { %2761 = vtanh.f32 %v2483_v33 }
 0x734   :  { %v2408_v59 = vpop.permute.xlu1 %2407 }
 0x735   :  { %v2762_v42 = vpop.eup %2761  ;;  %v2410_v14 = vmul.f32 %v2408_v59, %v2403_v45 }
 0x736   :  { %2486 = vrot.lane.b32.xlu1 %v2762_v42, %s2796_s23 }
 0x737   :  { %2763 = vtanh.f32 %v2410_v14 }
 0x73d   :  { %v2764_v29 = vpop.eup %2763 }
 0x73e   :  { %2413 = vrot.lane.b32.xlu1 %v2764_v29, %s2796_s23 }
 0x7a8   :  { %v2487_v35 = vpop.permute.xlu1 %2486 }
 0x7a9   :  { %v2489_v24 = vmul.f32 %v2487_v35, %v2476_v27 }
 0x7ab   :  { %2491 = vrot.lane.b32.xlu1 %v2489_v24, %s2794_s21 }
 0x7b0   :  { %v2414_v10 = vpop.permute.xlu1 %2413 }
 0x7b1   :  { %v2416_v25 = vmul.f32 %v2414_v10, %v2403_v45 }
 0x7b3   :  { %2418 = vrot.lane.b32.xlu2 %v2416_v25, %s2794_s21 }
 0x80d   :  { %v2419_v41 = vpop.permute.xlu2 %2418 }
 0x80e   :  { %2699 = vmatmul.msk.f32.vlgmr.msra.gmra.mxu2 %vm2420_vm4, %v2419_v41 }
 0x81d   :  { %v2492_v5 = vpop.permute.xlu1 %2491 }
 0x81e   :  { %2701 = vmatmul.msk.f32.vlgmr.msra.gmra.mxu3 %vm2420_vm4, %v2492_v5 }
 0x891   :  { %v2440_v44 = vpop.f32.mrf.mxu2 }
 0x892   :  { %v2441_v0 = vadd.f32 %v2440_v44, %v2369_v48 }
 0x8a1   :  { %v2512_v22 = vpop.f32.mrf.mxu3 }
 0x8a2   :  { %v2513_v7 = vadd.f32 %v2512_v22, %v2369_v48 }
 0x8a4   :  { %v2516_v58 = vrot.slane %v2513_v7, 7 }
 0x8a6   :  { %v2518_v54 = vsel %vm1064_vm9, %v2441_v0, %v2516_v58 }
 0x8a7   :  { %2520 = vst.msk [vmem:[%s5276_s4] sm:$0x3] %vm2519_vm14, %v2518_v54 }
 0x8a8   :  { %2525 = vsyncpa [#allocation3], 1 }

</bundles_post_ra>
